<compile_context>
chip_gen: v6e
topology: v6e:2x2x1
jax: 0.10.0
libtpu: 0.0.40
codegen_flags: <defaults>
</compile_context>

<pallas_src>
import jax
import jax.numpy as jnp
from jax import lax
from jax.experimental import pallas as pl
from jax.experimental.pallas import tpu as pltpu


def _bigru_encoder_kernel(emb_ref, lens_ref, h0_ref, wih_ref, whh_ref, bias_ref,
                          out_ref, hid_ref):
    L, B, H = emb_ref.shape
    lens = lens_ref[...]                       # (B, 1) int32

    wih_f = wih_ref[0]                         # (H, 3H)
    whh_f = whh_ref[0]                         # (H, 3H)
    wih_b = wih_ref[1]
    whh_b = whh_ref[1]
    bias_f = bias_ref[0]                       # (4, H): [b_r, b_z, b_in, b_hn]
    bias_b = bias_ref[1]

    def gru_cell(x, h, wih, whh, bias):
        # Fused gate matmuls: one (B,H)x(H,3H) per operand, gate columns sliced after.
        gi = jnp.dot(x, wih, preferred_element_type=jnp.float32)   # (B, 3H)
        gh = jnp.dot(h, whh, preferred_element_type=jnp.float32)   # (B, 3H)
        r = jax.nn.sigmoid(gi[:, 0:H] + gh[:, 0:H] + bias[0:1, :])
        z = jax.nn.sigmoid(gi[:, H:2 * H] + gh[:, H:2 * H] + bias[1:2, :])
        n = jnp.tanh(gi[:, 2 * H:3 * H] + bias[2:3, :]
                     + r * (gh[:, 2 * H:3 * H] + bias[3:4, :]))
        return (1.0 - z) * n + z * h

    # ---- forward direction ----
    def fwd_body(t, h):
        x = emb_ref[t]                                       # (B, H)
        h_new = gru_cell(x, h, wih_f, whh_f, bias_f)
        valid = lens > t                                     # packed-sequence mask (B, 1)
        out_ref[t] = jnp.where(valid, h_new, 0.0)
        return jnp.where(valid, h_new, h)

    h_f = lax.fori_loop(0, L, fwd_body, h0_ref[0], unroll=True)

    # ---- backward direction (starts at each sequence's true last token) ----
    def bwd_body(i, h):
        t = L - 1 - i
        x = emb_ref[t]
        h_new = gru_cell(x, h, wih_b, whh_b, bias_b)
        valid = lens > t
        out_ref[t] = out_ref[t] + jnp.where(valid, h_new, 0.0)   # sum fwd + bwd halves
        return jnp.where(valid, h_new, h)

    h_b = lax.fori_loop(0, L, bwd_body, h0_ref[1], unroll=True)

    hid_ref[0] = h_f
    hid_ref[1] = h_b


def init_params(key, hidden_size, vocab_size):
    """Deterministic init matching PyTorch EncoderRNN parameter shapes (n_layers=1, bidir)."""
    H, V = hidden_size, vocab_size
    ks = jax.random.split(key, 9)
    s = 0.1
    return {
        "embedding": jax.random.normal(ks[0], (V, H), jnp.float32) * s,
        "w_ih_l0": jax.random.normal(ks[1], (3 * H, H), jnp.float32) * s,
        "w_hh_l0": jax.random.normal(ks[2], (3 * H, H), jnp.float32) * s,
        "b_ih_l0": jax.random.normal(ks[3], (3 * H,), jnp.float32) * s,
        "b_hh_l0": jax.random.normal(ks[4], (3 * H,), jnp.float32) * s,
        "w_ih_l0_reverse": jax.random.normal(ks[5], (3 * H, H), jnp.float32) * s,
        "w_hh_l0_reverse": jax.random.normal(ks[6], (3 * H, H), jnp.float32) * s,
        "b_ih_l0_reverse": jax.random.normal(ks[7], (3 * H,), jnp.float32) * s,
        "b_hh_l0_reverse": jax.random.normal(ks[8], (3 * H,), jnp.float32) * s,
    }


def encoder_rnn_forward(params, input_seq, input_lengths, hidden=None):
    """Forward pass of EncoderRNN (embedding -> packed bidirectional GRU -> sum halves)."""
    H = params["w_ih_l0"].shape[1]
    L, B = input_seq.shape

    # --- glue: embedding lookup (EncoderRNN applies no dropout to embeddings) ---
    embedded = jnp.take(params["embedding"], input_seq, axis=0)          # (L, B, H)

    # --- glue: fuse / transpose GRU weights (one (H,3H) per operand per direction) ---
    wih = jnp.stack([params["w_ih_l0"].T, params["w_ih_l0_reverse"].T])  # (2, H, 3H)
    whh = jnp.stack([params["w_hh_l0"].T, params["w_hh_l0_reverse"].T])  # (2, H, 3H)

    def pack_bias(b_ih, b_hh):
        # pre-sum r/z biases; keep b_in / b_hn separate (b_hn sits inside r * (...))
        return jnp.stack([b_ih[0:H] + b_hh[0:H],
                          b_ih[H:2 * H] + b_hh[H:2 * H],
                          b_ih[2 * H:3 * H],
                          b_hh[2 * H:3 * H]])                            # (4, H)

    bias = jnp.stack([pack_bias(params["b_ih_l0"], params["b_hh_l0"]),
                      pack_bias(params["b_ih_l0_reverse"],
                                params["b_hh_l0_reverse"])])             # (2, 4, H)

    if hidden is None:
        hidden = jnp.zeros((2, B, H), jnp.float32)
    lens = input_lengths.astype(jnp.int32).reshape(B, 1)

    vmem = pl.BlockSpec(memory_space=pltpu.MemorySpace.VMEM)
    outputs, hidden_out = pl.pallas_call(
        _bigru_encoder_kernel,
        out_shape=(jax.ShapeDtypeStruct((L, B, H), jnp.float32),
                   jax.ShapeDtypeStruct((2, B, H), jnp.float32)),
        in_specs=[vmem] * 6,
        out_specs=(vmem, vmem),
    )(embedded, lens, hidden, wih, whh, bias)
    return outputs, hidden_out


def _reference(params, input_seq, input_lengths, hidden=None):
    """Pure-JAX reference mirroring the PyTorch forward (packed bidirectional GRU)."""
    H = params["w_ih_l0"].shape[1]
    emb = jnp.take(params["embedding"], input_seq, axis=0)               # (L, B, H)
    L, B, _ = emb.shape
    lens = input_lengths

    def cell(x, h, w_ih, w_hh, b_ih, b_hh):
        gi = x @ w_ih.T + b_ih
        gh = h @ w_hh.T + b_hh
        r = jax.nn.sigmoid(gi[:, :H] + gh[:, :H])
        z = jax.nn.sigmoid(gi[:, H:2 * H] + gh[:, H:2 * H])
        n = jnp.tanh(gi[:, 2 * H:] + r * gh[:, 2 * H:])
        return (1.0 - z) * n + z * h

    h_f = hidden[0] if hidden is not None else jnp.zeros((B, H), jnp.float32)
    h_b = hidden[1] if hidden is not None else jnp.zeros((B, H), jnp.float32)
    out_f = []
    for t in range(L):
        h_new = cell(emb[t], h_f, params["w_ih_l0"], params["w_hh_l0"],
                     params["b_ih_l0"], params["b_hh_l0"])
        m = (lens > t)[:, None]
        h_f = jnp.where(m, h_new, h_f)
        out_f.append(jnp.where(m, h_new, 0.0))
    out_b = [None] * L
    for t in range(L - 1, -1, -1):
        h_new = cell(emb[t], h_b, params["w_ih_l0_reverse"], params["w_hh_l0_reverse"],
                     params["b_ih_l0_reverse"], params["b_hh_l0_reverse"])
        m = (lens > t)[:, None]
        h_b = jnp.where(m, h_new, h_b)
        out_b[t] = jnp.where(m, h_new, 0.0)
    outputs = jnp.stack(out_f) + jnp.stack(out_b)
    return outputs, jnp.stack([h_f, h_b])


if __name__ == "__main__":
    L, B, H, V = 8, 8, 32, 48
    key = jax.random.PRNGKey(0)
    k_par, k_tok = jax.random.split(key, 2)

    params = init_params(k_par, H, V)
    input_seq = jax.random.randint(k_tok, (L, B), 0, V, dtype=jnp.int32)      # (L, B)
    input_lengths = jnp.array([8, 8, 7, 6, 5, 4, 3, 2], dtype=jnp.int32)      # sorted desc

    outputs, hidden_out = encoder_rnn_forward(params, input_seq, input_lengths, hidden=None)
    jax.block_until_ready((outputs, hidden_out))

    ref_out, ref_hid = _reference(params, input_seq, input_lengths, hidden=None)
    assert outputs.shape == (L, B, H) and hidden_out.shape == (2, B, H)
    assert jnp.allclose(outputs, ref_out, rtol=1e-5, atol=1e-5)
    assert jnp.allclose(hidden_out, ref_hid, rtol=1e-5, atol=1e-5)

    print("KERNEL_OK")
</pallas_src>

<mosaic_0001>
module attributes {stable_mosaic.version = 11 : i64} {
  func.func @_bigru_encoder_kernel(%arg0: memref<8x8x32xf32, #tpu.memory_space<vmem>>, %arg1: memref<8x1xi32, #tpu.memory_space<vmem>>, %arg2: memref<2x8x32xf32, #tpu.memory_space<vmem>>, %arg3: memref<2x32x96xf32, #tpu.memory_space<vmem>>, %arg4: memref<2x32x96xf32, #tpu.memory_space<vmem>>, %arg5: memref<2x4x32xf32, #tpu.memory_space<vmem>>, %arg6: memref<8x8x32xf32, #tpu.memory_space<vmem>>, %arg7: memref<2x8x32xf32, #tpu.memory_space<vmem>>) attributes {dimension_semantics = [], scalar_prefetch = 0 : i64, scratch_operands = 0 : i64, tpu.core_type = #tpu.core_type<tc>} {
    %c0 = arith.constant 0 : index
    %c0_0 = arith.constant 0 : index
    %0 = vector.load %arg1[%c0, %c0_0] : memref<8x1xi32, #tpu.memory_space<vmem>>, vector<8x1xi32>
    %c0_1 = arith.constant 0 : index
    %c0_2 = arith.constant 0 : index
    %c0_3 = arith.constant 0 : index
    %1 = vector.load %arg3[%c0_1, %c0_2, %c0_3] : memref<2x32x96xf32, #tpu.memory_space<vmem>>, vector<1x32x96xf32>
    %2 = vector.shape_cast %1 : vector<1x32x96xf32> to vector<32x96xf32>
    %c0_4 = arith.constant 0 : index
    %c0_5 = arith.constant 0 : index
    %c0_6 = arith.constant 0 : index
    %3 = vector.load %arg4[%c0_4, %c0_5, %c0_6] : memref<2x32x96xf32, #tpu.memory_space<vmem>>, vector<1x32x96xf32>
    %4 = vector.shape_cast %3 : vector<1x32x96xf32> to vector<32x96xf32>
    %c1 = arith.constant 1 : index
    %c0_7 = arith.constant 0 : index
    %c0_8 = arith.constant 0 : index
    %5 = vector.load %arg3[%c1, %c0_7, %c0_8] : memref<2x32x96xf32, #tpu.memory_space<vmem>>, vector<1x32x96xf32>
    %6 = vector.shape_cast %5 : vector<1x32x96xf32> to vector<32x96xf32>
    %c1_9 = arith.constant 1 : index
    %c0_10 = arith.constant 0 : index
    %c0_11 = arith.constant 0 : index
    %7 = vector.load %arg4[%c1_9, %c0_10, %c0_11] : memref<2x32x96xf32, #tpu.memory_space<vmem>>, vector<1x32x96xf32>
    %8 = vector.shape_cast %7 : vector<1x32x96xf32> to vector<32x96xf32>
    %c0_12 = arith.constant 0 : index
    %c0_13 = arith.constant 0 : index
    %c0_14 = arith.constant 0 : index
    %9 = vector.load %arg5[%c0_12, %c0_13, %c0_14] : memref<2x4x32xf32, #tpu.memory_space<vmem>>, vector<1x4x32xf32>
    %10 = vector.shape_cast %9 : vector<1x4x32xf32> to vector<4x32xf32>
    %c1_15 = arith.constant 1 : index
    %c0_16 = arith.constant 0 : index
    %c0_17 = arith.constant 0 : index
    %11 = vector.load %arg5[%c1_15, %c0_16, %c0_17] : memref<2x4x32xf32, #tpu.memory_space<vmem>>, vector<1x4x32xf32>
    %12 = vector.shape_cast %11 : vector<1x4x32xf32> to vector<4x32xf32>
    %c0_18 = arith.constant 0 : index
    %c0_19 = arith.constant 0 : index
    %c0_20 = arith.constant 0 : index
    %13 = vector.load %arg2[%c0_18, %c0_19, %c0_20] : memref<2x8x32xf32, #tpu.memory_space<vmem>>, vector<1x8x32xf32>
    %14 = vector.shape_cast %13 : vector<1x8x32xf32> to vector<8x32xf32>
    %c0_i32 = arith.constant 0 : i32
    %15 = arith.index_cast %c0_i32 : i32 to index
    %c0_21 = arith.constant 0 : index
    %c0_22 = arith.constant 0 : index
    %16 = vector.load %arg0[%15, %c0_21, %c0_22] : memref<8x8x32xf32, #tpu.memory_space<vmem>>, vector<1x8x32xf32>
    %17 = vector.shape_cast %16 : vector<1x8x32xf32> to vector<8x32xf32>
    %cst = arith.constant dense<0.000000e+00> : vector<8x96xf32>
    %18 = tpu.matmul %17, %2, %cst {dimension_numbers = #tpu.dot_dimension_numbers<[1], [0], [0], [1], [0, 0, 1, 1], [], []>} : vector<8x32xf32>, vector<32x96xf32>, vector<8x96xf32> -> vector<8x96xf32>
    %cst_23 = arith.constant dense<0.000000e+00> : vector<8x96xf32>
    %19 = tpu.matmul %14, %4, %cst_23 {dimension_numbers = #tpu.dot_dimension_numbers<[1], [0], [0], [1], [0, 0, 1, 1], [], []>} : vector<8x32xf32>, vector<32x96xf32>, vector<8x96xf32> -> vector<8x96xf32>
    %20 = vector.extract_strided_slice %18 {offsets = [0, 0], sizes = [8, 32], strides = [1, 1]} : vector<8x96xf32> to vector<8x32xf32>
    %21 = vector.extract_strided_slice %19 {offsets = [0, 0], sizes = [8, 32], strides = [1, 1]} : vector<8x96xf32> to vector<8x32xf32>
    %22 = arith.addf %20, %21 : vector<8x32xf32>
    %23 = vector.extract_strided_slice %10 {offsets = [0, 0], sizes = [1, 32], strides = [1, 1]} : vector<4x32xf32> to vector<1x32xf32>
    %24 = vector.broadcast %23 : vector<1x32xf32> to vector<8x32xf32>
    %25 = arith.addf %22, %24 : vector<8x32xf32>
    %26 = arith.negf %25 : vector<8x32xf32>
    %27 = math.exp %26 : vector<8x32xf32>
    %cst_24 = arith.constant 1.000000e+00 : f32
    %28 = vector.broadcast %cst_24 : f32 to vector<8x32xf32>
    %29 = arith.addf %28, %27 : vector<8x32xf32>
    %30 = arith.divf %28, %29 : vector<8x32xf32>
    %31 = vector.extract_strided_slice %18 {offsets = [0, 32], sizes = [8, 32], strides = [1, 1]} : vector<8x96xf32> to vector<8x32xf32>
    %32 = vector.extract_strided_slice %19 {offsets = [0, 32], sizes = [8, 32], strides = [1, 1]} : vector<8x96xf32> to vector<8x32xf32>
    %33 = arith.addf %31, %32 : vector<8x32xf32>
    %34 = vector.extract_strided_slice %10 {offsets = [1, 0], sizes = [1, 32], strides = [1, 1]} : vector<4x32xf32> to vector<1x32xf32>
    %35 = vector.broadcast %34 : vector<1x32xf32> to vector<8x32xf32>
    %36 = arith.addf %33, %35 : vector<8x32xf32>
    %37 = arith.negf %36 : vector<8x32xf32>
    %38 = math.exp %37 : vector<8x32xf32>
    %cst_25 = arith.constant 1.000000e+00 : f32
    %39 = vector.broadcast %cst_25 : f32 to vector<8x32xf32>
    %40 = arith.addf %39, %38 : vector<8x32xf32>
    %41 = arith.divf %39, %40 : vector<8x32xf32>
    %42 = vector.extract_strided_slice %18 {offsets = [0, 64], sizes = [8, 32], strides = [1, 1]} : vector<8x96xf32> to vector<8x32xf32>
    %43 = vector.extract_strided_slice %10 {offsets = [2, 0], sizes = [1, 32], strides = [1, 1]} : vector<4x32xf32> to vector<1x32xf32>
    %44 = vector.broadcast %43 : vector<1x32xf32> to vector<8x32xf32>
    %45 = arith.addf %42, %44 : vector<8x32xf32>
    %46 = vector.extract_strided_slice %19 {offsets = [0, 64], sizes = [8, 32], strides = [1, 1]} : vector<8x96xf32> to vector<8x32xf32>
    %47 = vector.extract_strided_slice %10 {offsets = [3, 0], sizes = [1, 32], strides = [1, 1]} : vector<4x32xf32> to vector<1x32xf32>
    %48 = vector.broadcast %47 : vector<1x32xf32> to vector<8x32xf32>
    %49 = arith.addf %46, %48 : vector<8x32xf32>
    %50 = arith.mulf %30, %49 : vector<8x32xf32>
    %51 = arith.addf %45, %50 : vector<8x32xf32>
    %52 = math.tanh %51 : vector<8x32xf32>
    %cst_26 = arith.constant 1.000000e+00 : f32
    %53 = vector.broadcast %cst_26 : f32 to vector<8x32xf32>
    %54 = arith.subf %53, %41 : vector<8x32xf32>
    %55 = arith.mulf %54, %52 : vector<8x32xf32>
    %56 = arith.mulf %41, %14 : vector<8x32xf32>
    %57 = arith.addf %55, %56 : vector<8x32xf32>
    %58 = vector.broadcast %c0_i32 : i32 to vector<8x1xi32>
    %59 = arith.cmpi sgt, %0, %58 : vector<8x1xi32>
    %cst_27 = arith.constant 0.000000e+00 : f32
    %60 = vector.shape_cast %59 : vector<8x1xi1> to vector<8x1xi1>
    %61 = vector.broadcast %60 : vector<8x1xi1> to vector<8x32xi1>
    %62 = vector.broadcast %cst_27 : f32 to vector<8x32xf32>
    %63 = arith.select %61, %57, %62 : vector<8x32xi1>, vector<8x32xf32>
    %64 = arith.index_cast %c0_i32 : i32 to index
    %c0_28 = arith.constant 0 : index
    %c0_29 = arith.constant 0 : index
    %65 = vector.load %arg6[%64, %c0_28, %c0_29] : memref<8x8x32xf32, #tpu.memory_space<vmem>>, vector<1x8x32xf32>
    %66 = vector.shape_cast %65 : vector<1x8x32xf32> to vector<8x32xf32>
    %67 = vector.shape_cast %63 : vector<8x32xf32> to vector<1x8x32xf32>
    tpu.vector_store %arg6[%64, %c0_28, %c0_29], %67 {strides = array<i32>} : memref<8x8x32xf32, #tpu.memory_space<vmem>>, vector<1x8x32xf32>,
    %68 = vector.shape_cast %59 : vector<8x1xi1> to vector<8x1xi1>
    %69 = vector.broadcast %68 : vector<8x1xi1> to vector<8x32xi1>
    %70 = arith.select %69, %57, %14 : vector<8x32xi1>, vector<8x32xf32>
    %c1_i32 = arith.constant 1 : i32
    %71 = arith.index_cast %c1_i32 : i32 to index
    %c0_30 = arith.constant 0 : index
    %c0_31 = arith.constant 0 : index
    %72 = vector.load %arg0[%71, %c0_30, %c0_31] : memref<8x8x32xf32, #tpu.memory_space<vmem>>, vector<1x8x32xf32>
    %73 = vector.shape_cast %72 : vector<1x8x32xf32> to vector<8x32xf32>
    %cst_32 = arith.constant dense<0.000000e+00> : vector<8x96xf32>
    %74 = tpu.matmul %73, %2, %cst_32 {dimension_numbers = #tpu.dot_dimension_numbers<[1], [0], [0], [1], [0, 0, 1, 1], [], []>} : vector<8x32xf32>, vector<32x96xf32>, vector<8x96xf32> -> vector<8x96xf32>
    %cst_33 = arith.constant dense<0.000000e+00> : vector<8x96xf32>
    %75 = tpu.matmul %70, %4, %cst_33 {dimension_numbers = #tpu.dot_dimension_numbers<[1], [0], [0], [1], [0, 0, 1, 1], [], []>} : vector<8x32xf32>, vector<32x96xf32>, vector<8x96xf32> -> vector<8x96xf32>
    %76 = vector.extract_strided_slice %74 {offsets = [0, 0], sizes = [8, 32], strides = [1, 1]} : vector<8x96xf32> to vector<8x32xf32>
    %77 = vector.extract_strided_slice %75 {offsets = [0, 0], sizes = [8, 32], strides = [1, 1]} : vector<8x96xf32> to vector<8x32xf32>
    %78 = arith.addf %76, %77 : vector<8x32xf32>
    %79 = vector.extract_strided_slice %10 {offsets = [0, 0], sizes = [1, 32], strides = [1, 1]} : vector<4x32xf32> to vector<1x32xf32>
    %80 = vector.broadcast %79 : vector<1x32xf32> to vector<8x32xf32>
    %81 = arith.addf %78, %80 : vector<8x32xf32>
    %82 = arith.negf %81 : vector<8x32xf32>
    %83 = math.exp %82 : vector<8x32xf32>
    %cst_34 = arith.constant 1.000000e+00 : f32
    %84 = vector.broadcast %cst_34 : f32 to vector<8x32xf32>
    %85 = arith.addf %84, %83 : vector<8x32xf32>
    %86 = arith.divf %84, %85 : vector<8x32xf32>
    %87 = vector.extract_strided_slice %74 {offsets = [0, 32], sizes = [8, 32], strides = [1, 1]} : vector<8x96xf32> to vector<8x32xf32>
    %88 = vector.extract_strided_slice %75 {offsets = [0, 32], sizes = [8, 32], strides = [1, 1]} : vector<8x96xf32> to vector<8x32xf32>
    %89 = arith.addf %87, %88 : vector<8x32xf32>
    %90 = vector.extract_strided_slice %10 {offsets = [1, 0], sizes = [1, 32], strides = [1, 1]} : vector<4x32xf32> to vector<1x32xf32>
    %91 = vector.broadcast %90 : vector<1x32xf32> to vector<8x32xf32>
    %92 = arith.addf %89, %91 : vector<8x32xf32>
    %93 = arith.negf %92 : vector<8x32xf32>
    %94 = math.exp %93 : vector<8x32xf32>
    %cst_35 = arith.constant 1.000000e+00 : f32
    %95 = vector.broadcast %cst_35 : f32 to vector<8x32xf32>
    %96 = arith.addf %95, %94 : vector<8x32xf32>
    %97 = arith.divf %95, %96 : vector<8x32xf32>
    %98 = vector.extract_strided_slice %74 {offsets = [0, 64], sizes = [8, 32], strides = [1, 1]} : vector<8x96xf32> to vector<8x32xf32>
    %99 = vector.extract_strided_slice %10 {offsets = [2, 0], sizes = [1, 32], strides = [1, 1]} : vector<4x32xf32> to vector<1x32xf32>
    %100 = vector.broadcast %99 : vector<1x32xf32> to vector<8x32xf32>
    %101 = arith.addf %98, %100 : vector<8x32xf32>
    %102 = vector.extract_strided_slice %75 {offsets = [0, 64], sizes = [8, 32], strides = [1, 1]} : vector<8x96xf32> to vector<8x32xf32>
    %103 = vector.extract_strided_slice %10 {offsets = [3, 0], sizes = [1, 32], strides = [1, 1]} : vector<4x32xf32> to vector<1x32xf32>
    %104 = vector.broadcast %103 : vector<1x32xf32> to vector<8x32xf32>
    %105 = arith.addf %102, %104 : vector<8x32xf32>
    %106 = arith.mulf %86, %105 : vector<8x32xf32>
    %107 = arith.addf %101, %106 : vector<8x32xf32>
    %108 = math.tanh %107 : vector<8x32xf32>
    %cst_36 = arith.constant 1.000000e+00 : f32
    %109 = vector.broadcast %cst_36 : f32 to vector<8x32xf32>
    %110 = arith.subf %109, %97 : vector<8x32xf32>
    %111 = arith.mulf %110, %108 : vector<8x32xf32>
    %112 = arith.mulf %97, %70 : vector<8x32xf32>
    %113 = arith.addf %111, %112 : vector<8x32xf32>
    %114 = vector.broadcast %c1_i32 : i32 to vector<8x1xi32>
    %115 = arith.cmpi sgt, %0, %114 : vector<8x1xi32>
    %cst_37 = arith.constant 0.000000e+00 : f32
    %116 = vector.shape_cast %115 : vector<8x1xi1> to vector<8x1xi1>
    %117 = vector.broadcast %116 : vector<8x1xi1> to vector<8x32xi1>
    %118 = vector.broadcast %cst_37 : f32 to vector<8x32xf32>
    %119 = arith.select %117, %113, %118 : vector<8x32xi1>, vector<8x32xf32>
    %120 = arith.index_cast %c1_i32 : i32 to index
    %c0_38 = arith.constant 0 : index
    %c0_39 = arith.constant 0 : index
    %121 = vector.load %arg6[%120, %c0_38, %c0_39] : memref<8x8x32xf32, #tpu.memory_space<vmem>>, vector<1x8x32xf32>
    %122 = vector.shape_cast %121 : vector<1x8x32xf32> to vector<8x32xf32>
    %123 = vector.shape_cast %119 : vector<8x32xf32> to vector<1x8x32xf32>
    tpu.vector_store %arg6[%120, %c0_38, %c0_39], %123 {strides = array<i32>} : memref<8x8x32xf32, #tpu.memory_space<vmem>>, vector<1x8x32xf32>,
    %124 = vector.shape_cast %115 : vector<8x1xi1> to vector<8x1xi1>
    %125 = vector.broadcast %124 : vector<8x1xi1> to vector<8x32xi1>
    %126 = arith.select %125, %113, %70 : vector<8x32xi1>, vector<8x32xf32>
    %c2_i32 = arith.constant 2 : i32
    %127 = arith.index_cast %c2_i32 : i32 to index
    %c0_40 = arith.constant 0 : index
    %c0_41 = arith.constant 0 : index
    %128 = vector.load %arg0[%127, %c0_40, %c0_41] : memref<8x8x32xf32, #tpu.memory_space<vmem>>, vector<1x8x32xf32>
    %129 = vector.shape_cast %128 : vector<1x8x32xf32> to vector<8x32xf32>
    %cst_42 = arith.constant dense<0.000000e+00> : vector<8x96xf32>
    %130 = tpu.matmul %129, %2, %cst_42 {dimension_numbers = #tpu.dot_dimension_numbers<[1], [0], [0], [1], [0, 0, 1, 1], [], []>} : vector<8x32xf32>, vector<32x96xf32>, vector<8x96xf32> -> vector<8x96xf32>
    %cst_43 = arith.constant dense<0.000000e+00> : vector<8x96xf32>
    %131 = tpu.matmul %126, %4, %cst_43 {dimension_numbers = #tpu.dot_dimension_numbers<[1], [0], [0], [1], [0, 0, 1, 1], [], []>} : vector<8x32xf32>, vector<32x96xf32>, vector<8x96xf32> -> vector<8x96xf32>
    %132 = vector.extract_strided_slice %130 {offsets = [0, 0], sizes = [8, 32], strides = [1, 1]} : vector<8x96xf32> to vector<8x32xf32>
    %133 = vector.extract_strided_slice %131 {offsets = [0, 0], sizes = [8, 32], strides = [1, 1]} : vector<8x96xf32> to vector<8x32xf32>
    %134 = arith.addf %132, %133 : vector<8x32xf32>
    %135 = vector.extract_strided_slice %10 {offsets = [0, 0], sizes = [1, 32], strides = [1, 1]} : vector<4x32xf32> to vector<1x32xf32>
    %136 = vector.broadcast %135 : vector<1x32xf32> to vector<8x32xf32>
    %137 = arith.addf %134, %136 : vector<8x32xf32>
    %138 = arith.negf %137 : vector<8x32xf32>
    %139 = math.exp %138 : vector<8x32xf32>
    %cst_44 = arith.constant 1.000000e+00 : f32
    %140 = vector.broadcast %cst_44 : f32 to vector<8x32xf32>
    %141 = arith.addf %140, %139 : vector<8x32xf32>
    %142 = arith.divf %140, %141 : vector<8x32xf32>
    %143 = vector.extract_strided_slice %130 {offsets = [0, 32], sizes = [8, 32], strides = [1, 1]} : vector<8x96xf32> to vector<8x32xf32>
    %144 = vector.extract_strided_slice %131 {offsets = [0, 32], sizes = [8, 32], strides = [1, 1]} : vector<8x96xf32> to vector<8x32xf32>
    %145 = arith.addf %143, %144 : vector<8x32xf32>
    %146 = vector.extract_strided_slice %10 {offsets = [1, 0], sizes = [1, 32], strides = [1, 1]} : vector<4x32xf32> to vector<1x32xf32>
    %147 = vector.broadcast %146 : vector<1x32xf32> to vector<8x32xf32>
    %148 = arith.addf %145, %147 : vector<8x32xf32>
    %149 = arith.negf %148 : vector<8x32xf32>
    %150 = math.exp %149 : vector<8x32xf32>
    %cst_45 = arith.constant 1.000000e+00 : f32
    %151 = vector.broadcast %cst_45 : f32 to vector<8x32xf32>
    %152 = arith.addf %151, %150 : vector<8x32xf32>
    %153 = arith.divf %151, %152 : vector<8x32xf32>
    %154 = vector.extract_strided_slice %130 {offsets = [0, 64], sizes = [8, 32], strides = [1, 1]} : vector<8x96xf32> to vector<8x32xf32>
    %155 = vector.extract_strided_slice %10 {offsets = [2, 0], sizes = [1, 32], strides = [1, 1]} : vector<4x32xf32> to vector<1x32xf32>
    %156 = vector.broadcast %155 : vector<1x32xf32> to vector<8x32xf32>
    %157 = arith.addf %154, %156 : vector<8x32xf32>
    %158 = vector.extract_strided_slice %131 {offsets = [0, 64], sizes = [8, 32], strides = [1, 1]} : vector<8x96xf32> to vector<8x32xf32>
    %159 = vector.extract_strided_slice %10 {offsets = [3, 0], sizes = [1, 32], strides = [1, 1]} : vector<4x32xf32> to vector<1x32xf32>
    %160 = vector.broadcast %159 : vector<1x32xf32> to vector<8x32xf32>
    %161 = arith.addf %158, %160 : vector<8x32xf32>
    %162 = arith.mulf %142, %161 : vector<8x32xf32>
    %163 = arith.addf %157, %162 : vector<8x32xf32>
    %164 = math.tanh %163 : vector<8x32xf32>
    %cst_46 = arith.constant 1.000000e+00 : f32
    %165 = vector.broadcast %cst_46 : f32 to vector<8x32xf32>
    %166 = arith.subf %165, %153 : vector<8x32xf32>
    %167 = arith.mulf %166, %164 : vector<8x32xf32>
    %168 = arith.mulf %153, %126 : vector<8x32xf32>
    %169 = arith.addf %167, %168 : vector<8x32xf32>
    %170 = vector.broadcast %c2_i32 : i32 to vector<8x1xi32>
    %171 = arith.cmpi sgt, %0, %170 : vector<8x1xi32>
    %cst_47 = arith.constant 0.000000e+00 : f32
    %172 = vector.shape_cast %171 : vector<8x1xi1> to vector<8x1xi1>
    %173 = vector.broadcast %172 : vector<8x1xi1> to vector<8x32xi1>
    %174 = vector.broadcast %cst_47 : f32 to vector<8x32xf32>
    %175 = arith.select %173, %169, %174 : vector<8x32xi1>, vector<8x32xf32>
    %176 = arith.index_cast %c2_i32 : i32 to index
    %c0_48 = arith.constant 0 : index
    %c0_49 = arith.constant 0 : index
    %177 = vector.load %arg6[%176, %c0_48, %c0_49] : memref<8x8x32xf32, #tpu.memory_space<vmem>>, vector<1x8x32xf32>
    %178 = vector.shape_cast %177 : vector<1x8x32xf32> to vector<8x32xf32>
    %179 = vector.shape_cast %175 : vector<8x32xf32> to vector<1x8x32xf32>
    tpu.vector_store %arg6[%176, %c0_48, %c0_49], %179 {strides = array<i32>} : memref<8x8x32xf32, #tpu.memory_space<vmem>>, vector<1x8x32xf32>,
    %180 = vector.shape_cast %171 : vector<8x1xi1> to vector<8x1xi1>
    %181 = vector.broadcast %180 : vector<8x1xi1> to vector<8x32xi1>
    %182 = arith.select %181, %169, %126 : vector<8x32xi1>, vector<8x32xf32>
    %c3_i32 = arith.constant 3 : i32
    %183 = arith.index_cast %c3_i32 : i32 to index
    %c0_50 = arith.constant 0 : index
    %c0_51 = arith.constant 0 : index
    %184 = vector.load %arg0[%183, %c0_50, %c0_51] : memref<8x8x32xf32, #tpu.memory_space<vmem>>, vector<1x8x32xf32>
    %185 = vector.shape_cast %184 : vector<1x8x32xf32> to vector<8x32xf32>
    %cst_52 = arith.constant dense<0.000000e+00> : vector<8x96xf32>
    %186 = tpu.matmul %185, %2, %cst_52 {dimension_numbers = #tpu.dot_dimension_numbers<[1], [0], [0], [1], [0, 0, 1, 1], [], []>} : vector<8x32xf32>, vector<32x96xf32>, vector<8x96xf32> -> vector<8x96xf32>
    %cst_53 = arith.constant dense<0.000000e+00> : vector<8x96xf32>
    %187 = tpu.matmul %182, %4, %cst_53 {dimension_numbers = #tpu.dot_dimension_numbers<[1], [0], [0], [1], [0, 0, 1, 1], [], []>} : vector<8x32xf32>, vector<32x96xf32>, vector<8x96xf32> -> vector<8x96xf32>
    %188 = vector.extract_strided_slice %186 {offsets = [0, 0], sizes = [8, 32], strides = [1, 1]} : vector<8x96xf32> to vector<8x32xf32>
    %189 = vector.extract_strided_slice %187 {offsets = [0, 0], sizes = [8, 32], strides = [1, 1]} : vector<8x96xf32> to vector<8x32xf32>
    %190 = arith.addf %188, %189 : vector<8x32xf32>
    %191 = vector.extract_strided_slice %10 {offsets = [0, 0], sizes = [1, 32], strides = [1, 1]} : vector<4x32xf32> to vector<1x32xf32>
    %192 = vector.broadcast %191 : vector<1x32xf32> to vector<8x32xf32>
    %193 = arith.addf %190, %192 : vector<8x32xf32>
    %194 = arith.negf %193 : vector<8x32xf32>
    %195 = math.exp %194 : vector<8x32xf32>
    %cst_54 = arith.constant 1.000000e+00 : f32
    %196 = vector.broadcast %cst_54 : f32 to vector<8x32xf32>
    %197 = arith.addf %196, %195 : vector<8x32xf32>
    %198 = arith.divf %196, %197 : vector<8x32xf32>
    %199 = vector.extract_strided_slice %186 {offsets = [0, 32], sizes = [8, 32], strides = [1, 1]} : vector<8x96xf32> to vector<8x32xf32>
    %200 = vector.extract_strided_slice %187 {offsets = [0, 32], sizes = [8, 32], strides = [1, 1]} : vector<8x96xf32> to vector<8x32xf32>
    %201 = arith.addf %199, %200 : vector<8x32xf32>
    %202 = vector.extract_strided_slice %10 {offsets = [1, 0], sizes = [1, 32], strides = [1, 1]} : vector<4x32xf32> to vector<1x32xf32>
    %203 = vector.broadcast %202 : vector<1x32xf32> to vector<8x32xf32>
    %204 = arith.addf %201, %203 : vector<8x32xf32>
    %205 = arith.negf %204 : vector<8x32xf32>
    %206 = math.exp %205 : vector<8x32xf32>
    %cst_55 = arith.constant 1.000000e+00 : f32
    %207 = vector.broadcast %cst_55 : f32 to vector<8x32xf32>
    %208 = arith.addf %207, %206 : vector<8x32xf32>
    %209 = arith.divf %207, %208 : vector<8x32xf32>
    %210 = vector.extract_strided_slice %186 {offsets = [0, 64], sizes = [8, 32], strides = [1, 1]} : vector<8x96xf32> to vector<8x32xf32>
    %211 = vector.extract_strided_slice %10 {offsets = [2, 0], sizes = [1, 32], strides = [1, 1]} : vector<4x32xf32> to vector<1x32xf32>
    %212 = vector.broadcast %211 : vector<1x32xf32> to vector<8x32xf32>
    %213 = arith.addf %210, %212 : vector<8x32xf32>
    %214 = vector.extract_strided_slice %187 {offsets = [0, 64], sizes = [8, 32], strides = [1, 1]} : vector<8x96xf32> to vector<8x32xf32>
    %215 = vector.extract_strided_slice %10 {offsets = [3, 0], sizes = [1, 32], strides = [1, 1]} : vector<4x32xf32> to vector<1x32xf32>
    %216 = vector.broadcast %215 : vector<1x32xf32> to vector<8x32xf32>
    %217 = arith.addf %214, %216 : vector<8x32xf32>
    %218 = arith.mulf %198, %217 : vector<8x32xf32>
    %219 = arith.addf %213, %218 : vector<8x32xf32>
    %220 = math.tanh %219 : vector<8x32xf32>
    %cst_56 = arith.constant 1.000000e+00 : f32
    %221 = vector.broadcast %cst_56 : f32 to vector<8x32xf32>
    %222 = arith.subf %221, %209 : vector<8x32xf32>
    %223 = arith.mulf %222, %220 : vector<8x32xf32>
    %224 = arith.mulf %209, %182 : vector<8x32xf32>
    %225 = arith.addf %223, %224 : vector<8x32xf32>
    %226 = vector.broadcast %c3_i32 : i32 to vector<8x1xi32>
    %227 = arith.cmpi sgt, %0, %226 : vector<8x1xi32>
    %cst_57 = arith.constant 0.000000e+00 : f32
    %228 = vector.shape_cast %227 : vector<8x1xi1> to vector<8x1xi1>
    %229 = vector.broadcast %228 : vector<8x1xi1> to vector<8x32xi1>
    %230 = vector.broadcast %cst_57 : f32 to vector<8x32xf32>
    %231 = arith.select %229, %225, %230 : vector<8x32xi1>, vector<8x32xf32>
    %232 = arith.index_cast %c3_i32 : i32 to index
    %c0_58 = arith.constant 0 : index
    %c0_59 = arith.constant 0 : index
    %233 = vector.load %arg6[%232, %c0_58, %c0_59] : memref<8x8x32xf32, #tpu.memory_space<vmem>>, vector<1x8x32xf32>
    %234 = vector.shape_cast %233 : vector<1x8x32xf32> to vector<8x32xf32>
    %235 = vector.shape_cast %231 : vector<8x32xf32> to vector<1x8x32xf32>
    tpu.vector_store %arg6[%232, %c0_58, %c0_59], %235 {strides = array<i32>} : memref<8x8x32xf32, #tpu.memory_space<vmem>>, vector<1x8x32xf32>,
    %236 = vector.shape_cast %227 : vector<8x1xi1> to vector<8x1xi1>
    %237 = vector.broadcast %236 : vector<8x1xi1> to vector<8x32xi1>
    %238 = arith.select %237, %225, %182 : vector<8x32xi1>, vector<8x32xf32>
    %c4_i32 = arith.constant 4 : i32
    %239 = arith.index_cast %c4_i32 : i32 to index
    %c0_60 = arith.constant 0 : index
    %c0_61 = arith.constant 0 : index
    %240 = vector.load %arg0[%239, %c0_60, %c0_61] : memref<8x8x32xf32, #tpu.memory_space<vmem>>, vector<1x8x32xf32>
    %241 = vector.shape_cast %240 : vector<1x8x32xf32> to vector<8x32xf32>
    %cst_62 = arith.constant dense<0.000000e+00> : vector<8x96xf32>
    %242 = tpu.matmul %241, %2, %cst_62 {dimension_numbers = #tpu.dot_dimension_numbers<[1], [0], [0], [1], [0, 0, 1, 1], [], []>} : vector<8x32xf32>, vector<32x96xf32>, vector<8x96xf32> -> vector<8x96xf32>
    %cst_63 = arith.constant dense<0.000000e+00> : vector<8x96xf32>
    %243 = tpu.matmul %238, %4, %cst_63 {dimension_numbers = #tpu.dot_dimension_numbers<[1], [0], [0], [1], [0, 0, 1, 1], [], []>} : vector<8x32xf32>, vector<32x96xf32>, vector<8x96xf32> -> vector<8x96xf32>
    %244 = vector.extract_strided_slice %242 {offsets = [0, 0], sizes = [8, 32], strides = [1, 1]} : vector<8x96xf32> to vector<8x32xf32>
    %245 = vector.extract_strided_slice %243 {offsets = [0, 0], sizes = [8, 32], strides = [1, 1]} : vector<8x96xf32> to vector<8x32xf32>
    %246 = arith.addf %244, %245 : vector<8x32xf32>
    %247 = vector.extract_strided_slice %10 {offsets = [0, 0], sizes = [1, 32], strides = [1, 1]} : vector<4x32xf32> to vector<1x32xf32>
    %248 = vector.broadcast %247 : vector<1x32xf32> to vector<8x32xf32>
    %249 = arith.addf %246, %248 : vector<8x32xf32>
    %250 = arith.negf %249 : vector<8x32xf32>
    %251 = math.exp %250 : vector<8x32xf32>
    %cst_64 = arith.constant 1.000000e+00 : f32
    %252 = vector.broadcast %cst_64 : f32 to vector<8x32xf32>
    %253 = arith.addf %252, %251 : vector<8x32xf32>
    %254 = arith.divf %252, %253 : vector<8x32xf32>
    %255 = vector.extract_strided_slice %242 {offsets = [0, 32], sizes = [8, 32], strides = [1, 1]} : vector<8x96xf32> to vector<8x32xf32>
    %256 = vector.extract_strided_slice %243 {offsets = [0, 32], sizes = [8, 32], strides = [1, 1]} : vector<8x96xf32> to vector<8x32xf32>
    %257 = arith.addf %255, %256 : vector<8x32xf32>
    %258 = vector.extract_strided_slice %10 {offsets = [1, 0], sizes = [1, 32], strides = [1, 1]} : vector<4x32xf32> to vector<1x32xf32>
    %259 = vector.broadcast %258 : vector<1x32xf32> to vector<8x32xf32>
    %260 = arith.addf %257, %259 : vector<8x32xf32>
    %261 = arith.negf %260 : vector<8x32xf32>
    %262 = math.exp %261 : vector<8x32xf32>
    %cst_65 = arith.constant 1.000000e+00 : f32
    %263 = vector.broadcast %cst_65 : f32 to vector<8x32xf32>
    %264 = arith.addf %263, %262 : vector<8x32xf32>
    %265 = arith.divf %263, %264 : vector<8x32xf32>
    %266 = vector.extract_strided_slice %242 {offsets = [0, 64], sizes = [8, 32], strides = [1, 1]} : vector<8x96xf32> to vector<8x32xf32>
    %267 = vector.extract_strided_slice %10 {offsets = [2, 0], sizes = [1, 32], strides = [1, 1]} : vector<4x32xf32> to vector<1x32xf32>
    %268 = vector.broadcast %267 : vector<1x32xf32> to vector<8x32xf32>
    %269 = arith.addf %266, %268 : vector<8x32xf32>
    %270 = vector.extract_strided_slice %243 {offsets = [0, 64], sizes = [8, 32], strides = [1, 1]} : vector<8x96xf32> to vector<8x32xf32>
    %271 = vector.extract_strided_slice %10 {offsets = [3, 0], sizes = [1, 32], strides = [1, 1]} : vector<4x32xf32> to vector<1x32xf32>
    %272 = vector.broadcast %271 : vector<1x32xf32> to vector<8x32xf32>
    %273 = arith.addf %270, %272 : vector<8x32xf32>
    %274 = arith.mulf %254, %273 : vector<8x32xf32>
    %275 = arith.addf %269, %274 : vector<8x32xf32>
    %276 = math.tanh %275 : vector<8x32xf32>
    %cst_66 = arith.constant 1.000000e+00 : f32
    %277 = vector.broadcast %cst_66 : f32 to vector<8x32xf32>
    %278 = arith.subf %277, %265 : vector<8x32xf32>
    %279 = arith.mulf %278, %276 : vector<8x32xf32>
    %280 = arith.mulf %265, %238 : vector<8x32xf32>
    %281 = arith.addf %279, %280 : vector<8x32xf32>
    %282 = vector.broadcast %c4_i32 : i32 to vector<8x1xi32>
    %283 = arith.cmpi sgt, %0, %282 : vector<8x1xi32>
    %cst_67 = arith.constant 0.000000e+00 : f32
    %284 = vector.shape_cast %283 : vector<8x1xi1> to vector<8x1xi1>
    %285 = vector.broadcast %284 : vector<8x1xi1> to vector<8x32xi1>
    %286 = vector.broadcast %cst_67 : f32 to vector<8x32xf32>
    %287 = arith.select %285, %281, %286 : vector<8x32xi1>, vector<8x32xf32>
    %288 = arith.index_cast %c4_i32 : i32 to index
    %c0_68 = arith.constant 0 : index
    %c0_69 = arith.constant 0 : index
    %289 = vector.load %arg6[%288, %c0_68, %c0_69] : memref<8x8x32xf32, #tpu.memory_space<vmem>>, vector<1x8x32xf32>
    %290 = vector.shape_cast %289 : vector<1x8x32xf32> to vector<8x32xf32>
    %291 = vector.shape_cast %287 : vector<8x32xf32> to vector<1x8x32xf32>
    tpu.vector_store %arg6[%288, %c0_68, %c0_69], %291 {strides = array<i32>} : memref<8x8x32xf32, #tpu.memory_space<vmem>>, vector<1x8x32xf32>,
    %292 = vector.shape_cast %283 : vector<8x1xi1> to vector<8x1xi1>
    %293 = vector.broadcast %292 : vector<8x1xi1> to vector<8x32xi1>
    %294 = arith.select %293, %281, %238 : vector<8x32xi1>, vector<8x32xf32>
    %c5_i32 = arith.constant 5 : i32
    %295 = arith.index_cast %c5_i32 : i32 to index
    %c0_70 = arith.constant 0 : index
    %c0_71 = arith.constant 0 : index
    %296 = vector.load %arg0[%295, %c0_70, %c0_71] : memref<8x8x32xf32, #tpu.memory_space<vmem>>, vector<1x8x32xf32>
    %297 = vector.shape_cast %296 : vector<1x8x32xf32> to vector<8x32xf32>
    %cst_72 = arith.constant dense<0.000000e+00> : vector<8x96xf32>
    %298 = tpu.matmul %297, %2, %cst_72 {dimension_numbers = #tpu.dot_dimension_numbers<[1], [0], [0], [1], [0, 0, 1, 1], [], []>} : vector<8x32xf32>, vector<32x96xf32>, vector<8x96xf32> -> vector<8x96xf32>
    %cst_73 = arith.constant dense<0.000000e+00> : vector<8x96xf32>
    %299 = tpu.matmul %294, %4, %cst_73 {dimension_numbers = #tpu.dot_dimension_numbers<[1], [0], [0], [1], [0, 0, 1, 1], [], []>} : vector<8x32xf32>, vector<32x96xf32>, vector<8x96xf32> -> vector<8x96xf32>
    %300 = vector.extract_strided_slice %298 {offsets = [0, 0], sizes = [8, 32], strides = [1, 1]} : vector<8x96xf32> to vector<8x32xf32>
    %301 = vector.extract_strided_slice %299 {offsets = [0, 0], sizes = [8, 32], strides = [1, 1]} : vector<8x96xf32> to vector<8x32xf32>
    %302 = arith.addf %300, %301 : vector<8x32xf32>
    %303 = vector.extract_strided_slice %10 {offsets = [0, 0], sizes = [1, 32], strides = [1, 1]} : vector<4x32xf32> to vector<1x32xf32>
    %304 = vector.broadcast %303 : vector<1x32xf32> to vector<8x32xf32>
    %305 = arith.addf %302, %304 : vector<8x32xf32>
    %306 = arith.negf %305 : vector<8x32xf32>
    %307 = math.exp %306 : vector<8x32xf32>
    %cst_74 = arith.constant 1.000000e+00 : f32
    %308 = vector.broadcast %cst_74 : f32 to vector<8x32xf32>
    %309 = arith.addf %308, %307 : vector<8x32xf32>
    %310 = arith.divf %308, %309 : vector<8x32xf32>
    %311 = vector.extract_strided_slice %298 {offsets = [0, 32], sizes = [8, 32], strides = [1, 1]} : vector<8x96xf32> to vector<8x32xf32>
    %312 = vector.extract_strided_slice %299 {offsets = [0, 32], sizes = [8, 32], strides = [1, 1]} : vector<8x96xf32> to vector<8x32xf32>
    %313 = arith.addf %311, %312 : vector<8x32xf32>
    %314 = vector.extract_strided_slice %10 {offsets = [1, 0], sizes = [1, 32], strides = [1, 1]} : vector<4x32xf32> to vector<1x32xf32>
    %315 = vector.broadcast %314 : vector<1x32xf32> to vector<8x32xf32>
    %316 = arith.addf %313, %315 : vector<8x32xf32>
    %317 = arith.negf %316 : vector<8x32xf32>
    %318 = math.exp %317 : vector<8x32xf32>
    %cst_75 = arith.constant 1.000000e+00 : f32
    %319 = vector.broadcast %cst_75 : f32 to vector<8x32xf32>
    %320 = arith.addf %319, %318 : vector<8x32xf32>
    %321 = arith.divf %319, %320 : vector<8x32xf32>
    %322 = vector.extract_strided_slice %298 {offsets = [0, 64], sizes = [8, 32], strides = [1, 1]} : vector<8x96xf32> to vector<8x32xf32>
    %323 = vector.extract_strided_slice %10 {offsets = [2, 0], sizes = [1, 32], strides = [1, 1]} : vector<4x32xf32> to vector<1x32xf32>
    %324 = vector.broadcast %323 : vector<1x32xf32> to vector<8x32xf32>
    %325 = arith.addf %322, %324 : vector<8x32xf32>
    %326 = vector.extract_strided_slice %299 {offsets = [0, 64], sizes = [8, 32], strides = [1, 1]} : vector<8x96xf32> to vector<8x32xf32>
    %327 = vector.extract_strided_slice %10 {offsets = [3, 0], sizes = [1, 32], strides = [1, 1]} : vector<4x32xf32> to vector<1x32xf32>
    %328 = vector.broadcast %327 : vector<1x32xf32> to vector<8x32xf32>
    %329 = arith.addf %326, %328 : vector<8x32xf32>
    %330 = arith.mulf %310, %329 : vector<8x32xf32>
    %331 = arith.addf %325, %330 : vector<8x32xf32>
    %332 = math.tanh %331 : vector<8x32xf32>
    %cst_76 = arith.constant 1.000000e+00 : f32
    %333 = vector.broadcast %cst_76 : f32 to vector<8x32xf32>
    %334 = arith.subf %333, %321 : vector<8x32xf32>
    %335 = arith.mulf %334, %332 : vector<8x32xf32>
    %336 = arith.mulf %321, %294 : vector<8x32xf32>
    %337 = arith.addf %335, %336 : vector<8x32xf32>
    %338 = vector.broadcast %c5_i32 : i32 to vector<8x1xi32>
    %339 = arith.cmpi sgt, %0, %338 : vector<8x1xi32>
    %cst_77 = arith.constant 0.000000e+00 : f32
    %340 = vector.shape_cast %339 : vector<8x1xi1> to vector<8x1xi1>
    %341 = vector.broadcast %340 : vector<8x1xi1> to vector<8x32xi1>
    %342 = vector.broadcast %cst_77 : f32 to vector<8x32xf32>
    %343 = arith.select %341, %337, %342 : vector<8x32xi1>, vector<8x32xf32>
    %344 = arith.index_cast %c5_i32 : i32 to index
    %c0_78 = arith.constant 0 : index
    %c0_79 = arith.constant 0 : index
    %345 = vector.load %arg6[%344, %c0_78, %c0_79] : memref<8x8x32xf32, #tpu.memory_space<vmem>>, vector<1x8x32xf32>
    %346 = vector.shape_cast %345 : vector<1x8x32xf32> to vector<8x32xf32>
    %347 = vector.shape_cast %343 : vector<8x32xf32> to vector<1x8x32xf32>
    tpu.vector_store %arg6[%344, %c0_78, %c0_79], %347 {strides = array<i32>} : memref<8x8x32xf32, #tpu.memory_space<vmem>>, vector<1x8x32xf32>,
    %348 = vector.shape_cast %339 : vector<8x1xi1> to vector<8x1xi1>
    %349 = vector.broadcast %348 : vector<8x1xi1> to vector<8x32xi1>
    %350 = arith.select %349, %337, %294 : vector<8x32xi1>, vector<8x32xf32>
    %c6_i32 = arith.constant 6 : i32
    %351 = arith.index_cast %c6_i32 : i32 to index
    %c0_80 = arith.constant 0 : index
    %c0_81 = arith.constant 0 : index
    %352 = vector.load %arg0[%351, %c0_80, %c0_81] : memref<8x8x32xf32, #tpu.memory_space<vmem>>, vector<1x8x32xf32>
    %353 = vector.shape_cast %352 : vector<1x8x32xf32> to vector<8x32xf32>
    %cst_82 = arith.constant dense<0.000000e+00> : vector<8x96xf32>
    %354 = tpu.matmul %353, %2, %cst_82 {dimension_numbers = #tpu.dot_dimension_numbers<[1], [0], [0], [1], [0, 0, 1, 1], [], []>} : vector<8x32xf32>, vector<32x96xf32>, vector<8x96xf32> -> vector<8x96xf32>
    %cst_83 = arith.constant dense<0.000000e+00> : vector<8x96xf32>
    %355 = tpu.matmul %350, %4, %cst_83 {dimension_numbers = #tpu.dot_dimension_numbers<[1], [0], [0], [1], [0, 0, 1, 1], [], []>} : vector<8x32xf32>, vector<32x96xf32>, vector<8x96xf32> -> vector<8x96xf32>
    %356 = vector.extract_strided_slice %354 {offsets = [0, 0], sizes = [8, 32], strides = [1, 1]} : vector<8x96xf32> to vector<8x32xf32>
    %357 = vector.extract_strided_slice %355 {offsets = [0, 0], sizes = [8, 32], strides = [1, 1]} : vector<8x96xf32> to vector<8x32xf32>
    %358 = arith.addf %356, %357 : vector<8x32xf32>
    %359 = vector.extract_strided_slice %10 {offsets = [0, 0], sizes = [1, 32], strides = [1, 1]} : vector<4x32xf32> to vector<1x32xf32>
    %360 = vector.broadcast %359 : vector<1x32xf32> to vector<8x32xf32>
    %361 = arith.addf %358, %360 : vector<8x32xf32>
    %362 = arith.negf %361 : vector<8x32xf32>
    %363 = math.exp %362 : vector<8x32xf32>
    %cst_84 = arith.constant 1.000000e+00 : f32
    %364 = vector.broadcast %cst_84 : f32 to vector<8x32xf32>
    %365 = arith.addf %364, %363 : vector<8x32xf32>
    %366 = arith.divf %364, %365 : vector<8x32xf32>
    %367 = vector.extract_strided_slice %354 {offsets = [0, 32], sizes = [8, 32], strides = [1, 1]} : vector<8x96xf32> to vector<8x32xf32>
    %368 = vector.extract_strided_slice %355 {offsets = [0, 32], sizes = [8, 32], strides = [1, 1]} : vector<8x96xf32> to vector<8x32xf32>
    %369 = arith.addf %367, %368 : vector<8x32xf32>
    %370 = vector.extract_strided_slice %10 {offsets = [1, 0], sizes = [1, 32], strides = [1, 1]} : vector<4x32xf32> to vector<1x32xf32>
    %371 = vector.broadcast %370 : vector<1x32xf32> to vector<8x32xf32>
    %372 = arith.addf %369, %371 : vector<8x32xf32>
    %373 = arith.negf %372 : vector<8x32xf32>
    %374 = math.exp %373 : vector<8x32xf32>
    %cst_85 = arith.constant 1.000000e+00 : f32
    %375 = vector.broadcast %cst_85 : f32 to vector<8x32xf32>
    %376 = arith.addf %375, %374 : vector<8x32xf32>
    %377 = arith.divf %375, %376 : vector<8x32xf32>
    %378 = vector.extract_strided_slice %354 {offsets = [0, 64], sizes = [8, 32], strides = [1, 1]} : vector<8x96xf32> to vector<8x32xf32>
    %379 = vector.extract_strided_slice %10 {offsets = [2, 0], sizes = [1, 32], strides = [1, 1]} : vector<4x32xf32> to vector<1x32xf32>
    %380 = vector.broadcast %379 : vector<1x32xf32> to vector<8x32xf32>
    %381 = arith.addf %378, %380 : vector<8x32xf32>
    %382 = vector.extract_strided_slice %355 {offsets = [0, 64], sizes = [8, 32], strides = [1, 1]} : vector<8x96xf32> to vector<8x32xf32>
    %383 = vector.extract_strided_slice %10 {offsets = [3, 0], sizes = [1, 32], strides = [1, 1]} : vector<4x32xf32> to vector<1x32xf32>
    %384 = vector.broadcast %383 : vector<1x32xf32> to vector<8x32xf32>
    %385 = arith.addf %382, %384 : vector<8x32xf32>
    %386 = arith.mulf %366, %385 : vector<8x32xf32>
    %387 = arith.addf %381, %386 : vector<8x32xf32>
    %388 = math.tanh %387 : vector<8x32xf32>
    %cst_86 = arith.constant 1.000000e+00 : f32
    %389 = vector.broadcast %cst_86 : f32 to vector<8x32xf32>
    %390 = arith.subf %389, %377 : vector<8x32xf32>
    %391 = arith.mulf %390, %388 : vector<8x32xf32>
    %392 = arith.mulf %377, %350 : vector<8x32xf32>
    %393 = arith.addf %391, %392 : vector<8x32xf32>
    %394 = vector.broadcast %c6_i32 : i32 to vector<8x1xi32>
    %395 = arith.cmpi sgt, %0, %394 : vector<8x1xi32>
    %cst_87 = arith.constant 0.000000e+00 : f32
    %396 = vector.shape_cast %395 : vector<8x1xi1> to vector<8x1xi1>
    %397 = vector.broadcast %396 : vector<8x1xi1> to vector<8x32xi1>
    %398 = vector.broadcast %cst_87 : f32 to vector<8x32xf32>
    %399 = arith.select %397, %393, %398 : vector<8x32xi1>, vector<8x32xf32>
    %400 = arith.index_cast %c6_i32 : i32 to index
    %c0_88 = arith.constant 0 : index
    %c0_89 = arith.constant 0 : index
    %401 = vector.load %arg6[%400, %c0_88, %c0_89] : memref<8x8x32xf32, #tpu.memory_space<vmem>>, vector<1x8x32xf32>
    %402 = vector.shape_cast %401 : vector<1x8x32xf32> to vector<8x32xf32>
    %403 = vector.shape_cast %399 : vector<8x32xf32> to vector<1x8x32xf32>
    tpu.vector_store %arg6[%400, %c0_88, %c0_89], %403 {strides = array<i32>} : memref<8x8x32xf32, #tpu.memory_space<vmem>>, vector<1x8x32xf32>,
    %404 = vector.shape_cast %395 : vector<8x1xi1> to vector<8x1xi1>
    %405 = vector.broadcast %404 : vector<8x1xi1> to vector<8x32xi1>
    %406 = arith.select %405, %393, %350 : vector<8x32xi1>, vector<8x32xf32>
    %c7_i32 = arith.constant 7 : i32
    %407 = arith.index_cast %c7_i32 : i32 to index
    %c0_90 = arith.constant 0 : index
    %c0_91 = arith.constant 0 : index
    %408 = vector.load %arg0[%407, %c0_90, %c0_91] : memref<8x8x32xf32, #tpu.memory_space<vmem>>, vector<1x8x32xf32>
    %409 = vector.shape_cast %408 : vector<1x8x32xf32> to vector<8x32xf32>
    %cst_92 = arith.constant dense<0.000000e+00> : vector<8x96xf32>
    %410 = tpu.matmul %409, %2, %cst_92 {dimension_numbers = #tpu.dot_dimension_numbers<[1], [0], [0], [1], [0, 0, 1, 1], [], []>} : vector<8x32xf32>, vector<32x96xf32>, vector<8x96xf32> -> vector<8x96xf32>
    %cst_93 = arith.constant dense<0.000000e+00> : vector<8x96xf32>
    %411 = tpu.matmul %406, %4, %cst_93 {dimension_numbers = #tpu.dot_dimension_numbers<[1], [0], [0], [1], [0, 0, 1, 1], [], []>} : vector<8x32xf32>, vector<32x96xf32>, vector<8x96xf32> -> vector<8x96xf32>
    %412 = vector.extract_strided_slice %410 {offsets = [0, 0], sizes = [8, 32], strides = [1, 1]} : vector<8x96xf32> to vector<8x32xf32>
    %413 = vector.extract_strided_slice %411 {offsets = [0, 0], sizes = [8, 32], strides = [1, 1]} : vector<8x96xf32> to vector<8x32xf32>
    %414 = arith.addf %412, %413 : vector<8x32xf32>
    %415 = vector.extract_strided_slice %10 {offsets = [0, 0], sizes = [1, 32], strides = [1, 1]} : vector<4x32xf32> to vector<1x32xf32>
    %416 = vector.broadcast %415 : vector<1x32xf32> to vector<8x32xf32>
    %417 = arith.addf %414, %416 : vector<8x32xf32>
    %418 = arith.negf %417 : vector<8x32xf32>
    %419 = math.exp %418 : vector<8x32xf32>
    %cst_94 = arith.constant 1.000000e+00 : f32
    %420 = vector.broadcast %cst_94 : f32 to vector<8x32xf32>
    %421 = arith.addf %420, %419 : vector<8x32xf32>
    %422 = arith.divf %420, %421 : vector<8x32xf32>
    %423 = vector.extract_strided_slice %410 {offsets = [0, 32], sizes = [8, 32], strides = [1, 1]} : vector<8x96xf32> to vector<8x32xf32>
    %424 = vector.extract_strided_slice %411 {offsets = [0, 32], sizes = [8, 32], strides = [1, 1]} : vector<8x96xf32> to vector<8x32xf32>
    %425 = arith.addf %423, %424 : vector<8x32xf32>
    %426 = vector.extract_strided_slice %10 {offsets = [1, 0], sizes = [1, 32], strides = [1, 1]} : vector<4x32xf32> to vector<1x32xf32>
    %427 = vector.broadcast %426 : vector<1x32xf32> to vector<8x32xf32>
    %428 = arith.addf %425, %427 : vector<8x32xf32>
    %429 = arith.negf %428 : vector<8x32xf32>
    %430 = math.exp %429 : vector<8x32xf32>
    %cst_95 = arith.constant 1.000000e+00 : f32
    %431 = vector.broadcast %cst_95 : f32 to vector<8x32xf32>
    %432 = arith.addf %431, %430 : vector<8x32xf32>
    %433 = arith.divf %431, %432 : vector<8x32xf32>
    %434 = vector.extract_strided_slice %410 {offsets = [0, 64], sizes = [8, 32], strides = [1, 1]} : vector<8x96xf32> to vector<8x32xf32>
    %435 = vector.extract_strided_slice %10 {offsets = [2, 0], sizes = [1, 32], strides = [1, 1]} : vector<4x32xf32> to vector<1x32xf32>
    %436 = vector.broadcast %435 : vector<1x32xf32> to vector<8x32xf32>
    %437 = arith.addf %434, %436 : vector<8x32xf32>
    %438 = vector.extract_strided_slice %411 {offsets = [0, 64], sizes = [8, 32], strides = [1, 1]} : vector<8x96xf32> to vector<8x32xf32>
    %439 = vector.extract_strided_slice %10 {offsets = [3, 0], sizes = [1, 32], strides = [1, 1]} : vector<4x32xf32> to vector<1x32xf32>
    %440 = vector.broadcast %439 : vector<1x32xf32> to vector<8x32xf32>
    %441 = arith.addf %438, %440 : vector<8x32xf32>
    %442 = arith.mulf %422, %441 : vector<8x32xf32>
    %443 = arith.addf %437, %442 : vector<8x32xf32>
    %444 = math.tanh %443 : vector<8x32xf32>
    %cst_96 = arith.constant 1.000000e+00 : f32
    %445 = vector.broadcast %cst_96 : f32 to vector<8x32xf32>
    %446 = arith.subf %445, %433 : vector<8x32xf32>
    %447 = arith.mulf %446, %444 : vector<8x32xf32>
    %448 = arith.mulf %433, %406 : vector<8x32xf32>
    %449 = arith.addf %447, %448 : vector<8x32xf32>
    %450 = vector.broadcast %c7_i32 : i32 to vector<8x1xi32>
    %451 = arith.cmpi sgt, %0, %450 : vector<8x1xi32>
    %cst_97 = arith.constant 0.000000e+00 : f32
    %452 = vector.shape_cast %451 : vector<8x1xi1> to vector<8x1xi1>
    %453 = vector.broadcast %452 : vector<8x1xi1> to vector<8x32xi1>
    %454 = vector.broadcast %cst_97 : f32 to vector<8x32xf32>
    %455 = arith.select %453, %449, %454 : vector<8x32xi1>, vector<8x32xf32>
    %456 = arith.index_cast %c7_i32 : i32 to index
    %c0_98 = arith.constant 0 : index
    %c0_99 = arith.constant 0 : index
    %457 = vector.load %arg6[%456, %c0_98, %c0_99] : memref<8x8x32xf32, #tpu.memory_space<vmem>>, vector<1x8x32xf32>
    %458 = vector.shape_cast %457 : vector<1x8x32xf32> to vector<8x32xf32>
    %459 = vector.shape_cast %455 : vector<8x32xf32> to vector<1x8x32xf32>
    tpu.vector_store %arg6[%456, %c0_98, %c0_99], %459 {strides = array<i32>} : memref<8x8x32xf32, #tpu.memory_space<vmem>>, vector<1x8x32xf32>,
    %460 = vector.shape_cast %451 : vector<8x1xi1> to vector<8x1xi1>
    %461 = vector.broadcast %460 : vector<8x1xi1> to vector<8x32xi1>
    %462 = arith.select %461, %449, %406 : vector<8x32xi1>, vector<8x32xf32>
    %c8_i32 = arith.constant 8 : i32
    %c1_100 = arith.constant 1 : index
    %c0_101 = arith.constant 0 : index
    %c0_102 = arith.constant 0 : index
    %463 = vector.load %arg2[%c1_100, %c0_101, %c0_102] : memref<2x8x32xf32, #tpu.memory_space<vmem>>, vector<1x8x32xf32>
    %464 = vector.shape_cast %463 : vector<1x8x32xf32> to vector<8x32xf32>
    %c0_i32_103 = arith.constant 0 : i32
    %c7_i32_104 = arith.constant 7 : i32
    %465 = arith.subi %c7_i32_104, %c0_i32_103 : i32
    %466 = arith.index_cast %465 : i32 to index
    %c0_105 = arith.constant 0 : index
    %c0_106 = arith.constant 0 : index
    %467 = vector.load %arg0[%466, %c0_105, %c0_106] : memref<8x8x32xf32, #tpu.memory_space<vmem>>, vector<1x8x32xf32>
    %468 = vector.shape_cast %467 : vector<1x8x32xf32> to vector<8x32xf32>
    %cst_107 = arith.constant dense<0.000000e+00> : vector<8x96xf32>
    %469 = tpu.matmul %468, %6, %cst_107 {dimension_numbers = #tpu.dot_dimension_numbers<[1], [0], [0], [1], [0, 0, 1, 1], [], []>} : vector<8x32xf32>, vector<32x96xf32>, vector<8x96xf32> -> vector<8x96xf32>
    %cst_108 = arith.constant dense<0.000000e+00> : vector<8x96xf32>
    %470 = tpu.matmul %464, %8, %cst_108 {dimension_numbers = #tpu.dot_dimension_numbers<[1], [0], [0], [1], [0, 0, 1, 1], [], []>} : vector<8x32xf32>, vector<32x96xf32>, vector<8x96xf32> -> vector<8x96xf32>
    %471 = vector.extract_strided_slice %469 {offsets = [0, 0], sizes = [8, 32], strides = [1, 1]} : vector<8x96xf32> to vector<8x32xf32>
    %472 = vector.extract_strided_slice %470 {offsets = [0, 0], sizes = [8, 32], strides = [1, 1]} : vector<8x96xf32> to vector<8x32xf32>
    %473 = arith.addf %471, %472 : vector<8x32xf32>
    %474 = vector.extract_strided_slice %12 {offsets = [0, 0], sizes = [1, 32], strides = [1, 1]} : vector<4x32xf32> to vector<1x32xf32>
    %475 = vector.broadcast %474 : vector<1x32xf32> to vector<8x32xf32>
    %476 = arith.addf %473, %475 : vector<8x32xf32>
    %477 = arith.negf %476 : vector<8x32xf32>
    %478 = math.exp %477 : vector<8x32xf32>
    %cst_109 = arith.constant 1.000000e+00 : f32
    %479 = vector.broadcast %cst_109 : f32 to vector<8x32xf32>
    %480 = arith.addf %479, %478 : vector<8x32xf32>
    %481 = arith.divf %479, %480 : vector<8x32xf32>
    %482 = vector.extract_strided_slice %469 {offsets = [0, 32], sizes = [8, 32], strides = [1, 1]} : vector<8x96xf32> to vector<8x32xf32>
    %483 = vector.extract_strided_slice %470 {offsets = [0, 32], sizes = [8, 32], strides = [1, 1]} : vector<8x96xf32> to vector<8x32xf32>
    %484 = arith.addf %482, %483 : vector<8x32xf32>
    %485 = vector.extract_strided_slice %12 {offsets = [1, 0], sizes = [1, 32], strides = [1, 1]} : vector<4x32xf32> to vector<1x32xf32>
    %486 = vector.broadcast %485 : vector<1x32xf32> to vector<8x32xf32>
    %487 = arith.addf %484, %486 : vector<8x32xf32>
    %488 = arith.negf %487 : vector<8x32xf32>
    %489 = math.exp %488 : vector<8x32xf32>
    %cst_110 = arith.constant 1.000000e+00 : f32
    %490 = vector.broadcast %cst_110 : f32 to vector<8x32xf32>
    %491 = arith.addf %490, %489 : vector<8x32xf32>
    %492 = arith.divf %490, %491 : vector<8x32xf32>
    %493 = vector.extract_strided_slice %469 {offsets = [0, 64], sizes = [8, 32], strides = [1, 1]} : vector<8x96xf32> to vector<8x32xf32>
    %494 = vector.extract_strided_slice %12 {offsets = [2, 0], sizes = [1, 32], strides = [1, 1]} : vector<4x32xf32> to vector<1x32xf32>
    %495 = vector.broadcast %494 : vector<1x32xf32> to vector<8x32xf32>
    %496 = arith.addf %493, %495 : vector<8x32xf32>
    %497 = vector.extract_strided_slice %470 {offsets = [0, 64], sizes = [8, 32], strides = [1, 1]} : vector<8x96xf32> to vector<8x32xf32>
    %498 = vector.extract_strided_slice %12 {offsets = [3, 0], sizes = [1, 32], strides = [1, 1]} : vector<4x32xf32> to vector<1x32xf32>
    %499 = vector.broadcast %498 : vector<1x32xf32> to vector<8x32xf32>
    %500 = arith.addf %497, %499 : vector<8x32xf32>
    %501 = arith.mulf %481, %500 : vector<8x32xf32>
    %502 = arith.addf %496, %501 : vector<8x32xf32>
    %503 = math.tanh %502 : vector<8x32xf32>
    %cst_111 = arith.constant 1.000000e+00 : f32
    %504 = vector.broadcast %cst_111 : f32 to vector<8x32xf32>
    %505 = arith.subf %504, %492 : vector<8x32xf32>
    %506 = arith.mulf %505, %503 : vector<8x32xf32>
    %507 = arith.mulf %492, %464 : vector<8x32xf32>
    %508 = arith.addf %506, %507 : vector<8x32xf32>
    %509 = vector.broadcast %465 : i32 to vector<8x1xi32>
    %510 = arith.cmpi sgt, %0, %509 : vector<8x1xi32>
    %511 = arith.index_cast %465 : i32 to index
    %c0_112 = arith.constant 0 : index
    %c0_113 = arith.constant 0 : index
    %512 = vector.load %arg6[%511, %c0_112, %c0_113] : memref<8x8x32xf32, #tpu.memory_space<vmem>>, vector<1x8x32xf32>
    %513 = vector.shape_cast %512 : vector<1x8x32xf32> to vector<8x32xf32>
    %cst_114 = arith.constant 0.000000e+00 : f32
    %514 = vector.shape_cast %510 : vector<8x1xi1> to vector<8x1xi1>
    %515 = vector.broadcast %514 : vector<8x1xi1> to vector<8x32xi1>
    %516 = vector.broadcast %cst_114 : f32 to vector<8x32xf32>
    %517 = arith.select %515, %508, %516 : vector<8x32xi1>, vector<8x32xf32>
    %518 = arith.addf %513, %517 : vector<8x32xf32>
    %519 = arith.index_cast %465 : i32 to index
    %c0_115 = arith.constant 0 : index
    %c0_116 = arith.constant 0 : index
    %520 = vector.load %arg6[%519, %c0_115, %c0_116] : memref<8x8x32xf32, #tpu.memory_space<vmem>>, vector<1x8x32xf32>
    %521 = vector.shape_cast %520 : vector<1x8x32xf32> to vector<8x32xf32>
    %522 = vector.shape_cast %518 : vector<8x32xf32> to vector<1x8x32xf32>
    tpu.vector_store %arg6[%519, %c0_115, %c0_116], %522 {strides = array<i32>} : memref<8x8x32xf32, #tpu.memory_space<vmem>>, vector<1x8x32xf32>,
    %523 = vector.shape_cast %510 : vector<8x1xi1> to vector<8x1xi1>
    %524 = vector.broadcast %523 : vector<8x1xi1> to vector<8x32xi1>
    %525 = arith.select %524, %508, %464 : vector<8x32xi1>, vector<8x32xf32>
    %c1_i32_117 = arith.constant 1 : i32
    %c7_i32_118 = arith.constant 7 : i32
    %526 = arith.subi %c7_i32_118, %c1_i32_117 : i32
    %527 = arith.index_cast %526 : i32 to index
    %c0_119 = arith.constant 0 : index
    %c0_120 = arith.constant 0 : index
    %528 = vector.load %arg0[%527, %c0_119, %c0_120] : memref<8x8x32xf32, #tpu.memory_space<vmem>>, vector<1x8x32xf32>
    %529 = vector.shape_cast %528 : vector<1x8x32xf32> to vector<8x32xf32>
    %cst_121 = arith.constant dense<0.000000e+00> : vector<8x96xf32>
    %530 = tpu.matmul %529, %6, %cst_121 {dimension_numbers = #tpu.dot_dimension_numbers<[1], [0], [0], [1], [0, 0, 1, 1], [], []>} : vector<8x32xf32>, vector<32x96xf32>, vector<8x96xf32> -> vector<8x96xf32>
    %cst_122 = arith.constant dense<0.000000e+00> : vector<8x96xf32>
    %531 = tpu.matmul %525, %8, %cst_122 {dimension_numbers = #tpu.dot_dimension_numbers<[1], [0], [0], [1], [0, 0, 1, 1], [], []>} : vector<8x32xf32>, vector<32x96xf32>, vector<8x96xf32> -> vector<8x96xf32>
    %532 = vector.extract_strided_slice %530 {offsets = [0, 0], sizes = [8, 32], strides = [1, 1]} : vector<8x96xf32> to vector<8x32xf32>
    %533 = vector.extract_strided_slice %531 {offsets = [0, 0], sizes = [8, 32], strides = [1, 1]} : vector<8x96xf32> to vector<8x32xf32>
    %534 = arith.addf %532, %533 : vector<8x32xf32>
    %535 = vector.extract_strided_slice %12 {offsets = [0, 0], sizes = [1, 32], strides = [1, 1]} : vector<4x32xf32> to vector<1x32xf32>
    %536 = vector.broadcast %535 : vector<1x32xf32> to vector<8x32xf32>
    %537 = arith.addf %534, %536 : vector<8x32xf32>
    %538 = arith.negf %537 : vector<8x32xf32>
    %539 = math.exp %538 : vector<8x32xf32>
    %cst_123 = arith.constant 1.000000e+00 : f32
    %540 = vector.broadcast %cst_123 : f32 to vector<8x32xf32>
    %541 = arith.addf %540, %539 : vector<8x32xf32>
    %542 = arith.divf %540, %541 : vector<8x32xf32>
    %543 = vector.extract_strided_slice %530 {offsets = [0, 32], sizes = [8, 32], strides = [1, 1]} : vector<8x96xf32> to vector<8x32xf32>
    %544 = vector.extract_strided_slice %531 {offsets = [0, 32], sizes = [8, 32], strides = [1, 1]} : vector<8x96xf32> to vector<8x32xf32>
    %545 = arith.addf %543, %544 : vector<8x32xf32>
    %546 = vector.extract_strided_slice %12 {offsets = [1, 0], sizes = [1, 32], strides = [1, 1]} : vector<4x32xf32> to vector<1x32xf32>
    %547 = vector.broadcast %546 : vector<1x32xf32> to vector<8x32xf32>
    %548 = arith.addf %545, %547 : vector<8x32xf32>
    %549 = arith.negf %548 : vector<8x32xf32>
    %550 = math.exp %549 : vector<8x32xf32>
    %cst_124 = arith.constant 1.000000e+00 : f32
    %551 = vector.broadcast %cst_124 : f32 to vector<8x32xf32>
    %552 = arith.addf %551, %550 : vector<8x32xf32>
    %553 = arith.divf %551, %552 : vector<8x32xf32>
    %554 = vector.extract_strided_slice %530 {offsets = [0, 64], sizes = [8, 32], strides = [1, 1]} : vector<8x96xf32> to vector<8x32xf32>
    %555 = vector.extract_strided_slice %12 {offsets = [2, 0], sizes = [1, 32], strides = [1, 1]} : vector<4x32xf32> to vector<1x32xf32>
    %556 = vector.broadcast %555 : vector<1x32xf32> to vector<8x32xf32>
    %557 = arith.addf %554, %556 : vector<8x32xf32>
    %558 = vector.extract_strided_slice %531 {offsets = [0, 64], sizes = [8, 32], strides = [1, 1]} : vector<8x96xf32> to vector<8x32xf32>
    %559 = vector.extract_strided_slice %12 {offsets = [3, 0], sizes = [1, 32], strides = [1, 1]} : vector<4x32xf32> to vector<1x32xf32>
    %560 = vector.broadcast %559 : vector<1x32xf32> to vector<8x32xf32>
    %561 = arith.addf %558, %560 : vector<8x32xf32>
    %562 = arith.mulf %542, %561 : vector<8x32xf32>
    %563 = arith.addf %557, %562 : vector<8x32xf32>
    %564 = math.tanh %563 : vector<8x32xf32>
    %cst_125 = arith.constant 1.000000e+00 : f32
    %565 = vector.broadcast %cst_125 : f32 to vector<8x32xf32>
    %566 = arith.subf %565, %553 : vector<8x32xf32>
    %567 = arith.mulf %566, %564 : vector<8x32xf32>
    %568 = arith.mulf %553, %525 : vector<8x32xf32>
    %569 = arith.addf %567, %568 : vector<8x32xf32>
    %570 = vector.broadcast %526 : i32 to vector<8x1xi32>
    %571 = arith.cmpi sgt, %0, %570 : vector<8x1xi32>
    %572 = arith.index_cast %526 : i32 to index
    %c0_126 = arith.constant 0 : index
    %c0_127 = arith.constant 0 : index
    %573 = vector.load %arg6[%572, %c0_126, %c0_127] : memref<8x8x32xf32, #tpu.memory_space<vmem>>, vector<1x8x32xf32>
    %574 = vector.shape_cast %573 : vector<1x8x32xf32> to vector<8x32xf32>
    %cst_128 = arith.constant 0.000000e+00 : f32
    %575 = vector.shape_cast %571 : vector<8x1xi1> to vector<8x1xi1>
    %576 = vector.broadcast %575 : vector<8x1xi1> to vector<8x32xi1>
    %577 = vector.broadcast %cst_128 : f32 to vector<8x32xf32>
    %578 = arith.select %576, %569, %577 : vector<8x32xi1>, vector<8x32xf32>
    %579 = arith.addf %574, %578 : vector<8x32xf32>
    %580 = arith.index_cast %526 : i32 to index
    %c0_129 = arith.constant 0 : index
    %c0_130 = arith.constant 0 : index
    %581 = vector.load %arg6[%580, %c0_129, %c0_130] : memref<8x8x32xf32, #tpu.memory_space<vmem>>, vector<1x8x32xf32>
    %582 = vector.shape_cast %581 : vector<1x8x32xf32> to vector<8x32xf32>
    %583 = vector.shape_cast %579 : vector<8x32xf32> to vector<1x8x32xf32>
    tpu.vector_store %arg6[%580, %c0_129, %c0_130], %583 {strides = array<i32>} : memref<8x8x32xf32, #tpu.memory_space<vmem>>, vector<1x8x32xf32>,
    %584 = vector.shape_cast %571 : vector<8x1xi1> to vector<8x1xi1>
    %585 = vector.broadcast %584 : vector<8x1xi1> to vector<8x32xi1>
    %586 = arith.select %585, %569, %525 : vector<8x32xi1>, vector<8x32xf32>
    %c2_i32_131 = arith.constant 2 : i32
    %c7_i32_132 = arith.constant 7 : i32
    %587 = arith.subi %c7_i32_132, %c2_i32_131 : i32
    %588 = arith.index_cast %587 : i32 to index
    %c0_133 = arith.constant 0 : index
    %c0_134 = arith.constant 0 : index
    %589 = vector.load %arg0[%588, %c0_133, %c0_134] : memref<8x8x32xf32, #tpu.memory_space<vmem>>, vector<1x8x32xf32>
    %590 = vector.shape_cast %589 : vector<1x8x32xf32> to vector<8x32xf32>
    %cst_135 = arith.constant dense<0.000000e+00> : vector<8x96xf32>
    %591 = tpu.matmul %590, %6, %cst_135 {dimension_numbers = #tpu.dot_dimension_numbers<[1], [0], [0], [1], [0, 0, 1, 1], [], []>} : vector<8x32xf32>, vector<32x96xf32>, vector<8x96xf32> -> vector<8x96xf32>
    %cst_136 = arith.constant dense<0.000000e+00> : vector<8x96xf32>
    %592 = tpu.matmul %586, %8, %cst_136 {dimension_numbers = #tpu.dot_dimension_numbers<[1], [0], [0], [1], [0, 0, 1, 1], [], []>} : vector<8x32xf32>, vector<32x96xf32>, vector<8x96xf32> -> vector<8x96xf32>
    %593 = vector.extract_strided_slice %591 {offsets = [0, 0], sizes = [8, 32], strides = [1, 1]} : vector<8x96xf32> to vector<8x32xf32>
    %594 = vector.extract_strided_slice %592 {offsets = [0, 0], sizes = [8, 32], strides = [1, 1]} : vector<8x96xf32> to vector<8x32xf32>
    %595 = arith.addf %593, %594 : vector<8x32xf32>
    %596 = vector.extract_strided_slice %12 {offsets = [0, 0], sizes = [1, 32], strides = [1, 1]} : vector<4x32xf32> to vector<1x32xf32>
    %597 = vector.broadcast %596 : vector<1x32xf32> to vector<8x32xf32>
    %598 = arith.addf %595, %597 : vector<8x32xf32>
    %599 = arith.negf %598 : vector<8x32xf32>
    %600 = math.exp %599 : vector<8x32xf32>
    %cst_137 = arith.constant 1.000000e+00 : f32
    %601 = vector.broadcast %cst_137 : f32 to vector<8x32xf32>
    %602 = arith.addf %601, %600 : vector<8x32xf32>
    %603 = arith.divf %601, %602 : vector<8x32xf32>
    %604 = vector.extract_strided_slice %591 {offsets = [0, 32], sizes = [8, 32], strides = [1, 1]} : vector<8x96xf32> to vector<8x32xf32>
    %605 = vector.extract_strided_slice %592 {offsets = [0, 32], sizes = [8, 32], strides = [1, 1]} : vector<8x96xf32> to vector<8x32xf32>
    %606 = arith.addf %604, %605 : vector<8x32xf32>
    %607 = vector.extract_strided_slice %12 {offsets = [1, 0], sizes = [1, 32], strides = [1, 1]} : vector<4x32xf32> to vector<1x32xf32>
    %608 = vector.broadcast %607 : vector<1x32xf32> to vector<8x32xf32>
    %609 = arith.addf %606, %608 : vector<8x32xf32>
    %610 = arith.negf %609 : vector<8x32xf32>
    %611 = math.exp %610 : vector<8x32xf32>
    %cst_138 = arith.constant 1.000000e+00 : f32
    %612 = vector.broadcast %cst_138 : f32 to vector<8x32xf32>
    %613 = arith.addf %612, %611 : vector<8x32xf32>
    %614 = arith.divf %612, %613 : vector<8x32xf32>
    %615 = vector.extract_strided_slice %591 {offsets = [0, 64], sizes = [8, 32], strides = [1, 1]} : vector<8x96xf32> to vector<8x32xf32>
    %616 = vector.extract_strided_slice %12 {offsets = [2, 0], sizes = [1, 32], strides = [1, 1]} : vector<4x32xf32> to vector<1x32xf32>
    %617 = vector.broadcast %616 : vector<1x32xf32> to vector<8x32xf32>
    %618 = arith.addf %615, %617 : vector<8x32xf32>
    %619 = vector.extract_strided_slice %592 {offsets = [0, 64], sizes = [8, 32], strides = [1, 1]} : vector<8x96xf32> to vector<8x32xf32>
    %620 = vector.extract_strided_slice %12 {offsets = [3, 0], sizes = [1, 32], strides = [1, 1]} : vector<4x32xf32> to vector<1x32xf32>
    %621 = vector.broadcast %620 : vector<1x32xf32> to vector<8x32xf32>
    %622 = arith.addf %619, %621 : vector<8x32xf32>
    %623 = arith.mulf %603, %622 : vector<8x32xf32>
    %624 = arith.addf %618, %623 : vector<8x32xf32>
    %625 = math.tanh %624 : vector<8x32xf32>
    %cst_139 = arith.constant 1.000000e+00 : f32
    %626 = vector.broadcast %cst_139 : f32 to vector<8x32xf32>
    %627 = arith.subf %626, %614 : vector<8x32xf32>
    %628 = arith.mulf %627, %625 : vector<8x32xf32>
    %629 = arith.mulf %614, %586 : vector<8x32xf32>
    %630 = arith.addf %628, %629 : vector<8x32xf32>
    %631 = vector.broadcast %587 : i32 to vector<8x1xi32>
    %632 = arith.cmpi sgt, %0, %631 : vector<8x1xi32>
    %633 = arith.index_cast %587 : i32 to index
    %c0_140 = arith.constant 0 : index
    %c0_141 = arith.constant 0 : index
    %634 = vector.load %arg6[%633, %c0_140, %c0_141] : memref<8x8x32xf32, #tpu.memory_space<vmem>>, vector<1x8x32xf32>
    %635 = vector.shape_cast %634 : vector<1x8x32xf32> to vector<8x32xf32>
    %cst_142 = arith.constant 0.000000e+00 : f32
    %636 = vector.shape_cast %632 : vector<8x1xi1> to vector<8x1xi1>
    %637 = vector.broadcast %636 : vector<8x1xi1> to vector<8x32xi1>
    %638 = vector.broadcast %cst_142 : f32 to vector<8x32xf32>
    %639 = arith.select %637, %630, %638 : vector<8x32xi1>, vector<8x32xf32>
    %640 = arith.addf %635, %639 : vector<8x32xf32>
    %641 = arith.index_cast %587 : i32 to index
    %c0_143 = arith.constant 0 : index
    %c0_144 = arith.constant 0 : index
    %642 = vector.load %arg6[%641, %c0_143, %c0_144] : memref<8x8x32xf32, #tpu.memory_space<vmem>>, vector<1x8x32xf32>
    %643 = vector.shape_cast %642 : vector<1x8x32xf32> to vector<8x32xf32>
    %644 = vector.shape_cast %640 : vector<8x32xf32> to vector<1x8x32xf32>
    tpu.vector_store %arg6[%641, %c0_143, %c0_144], %644 {strides = array<i32>} : memref<8x8x32xf32, #tpu.memory_space<vmem>>, vector<1x8x32xf32>,
    %645 = vector.shape_cast %632 : vector<8x1xi1> to vector<8x1xi1>
    %646 = vector.broadcast %645 : vector<8x1xi1> to vector<8x32xi1>
    %647 = arith.select %646, %630, %586 : vector<8x32xi1>, vector<8x32xf32>
    %c3_i32_145 = arith.constant 3 : i32
    %c7_i32_146 = arith.constant 7 : i32
    %648 = arith.subi %c7_i32_146, %c3_i32_145 : i32
    %649 = arith.index_cast %648 : i32 to index
    %c0_147 = arith.constant 0 : index
    %c0_148 = arith.constant 0 : index
    %650 = vector.load %arg0[%649, %c0_147, %c0_148] : memref<8x8x32xf32, #tpu.memory_space<vmem>>, vector<1x8x32xf32>
    %651 = vector.shape_cast %650 : vector<1x8x32xf32> to vector<8x32xf32>
    %cst_149 = arith.constant dense<0.000000e+00> : vector<8x96xf32>
    %652 = tpu.matmul %651, %6, %cst_149 {dimension_numbers = #tpu.dot_dimension_numbers<[1], [0], [0], [1], [0, 0, 1, 1], [], []>} : vector<8x32xf32>, vector<32x96xf32>, vector<8x96xf32> -> vector<8x96xf32>
    %cst_150 = arith.constant dense<0.000000e+00> : vector<8x96xf32>
    %653 = tpu.matmul %647, %8, %cst_150 {dimension_numbers = #tpu.dot_dimension_numbers<[1], [0], [0], [1], [0, 0, 1, 1], [], []>} : vector<8x32xf32>, vector<32x96xf32>, vector<8x96xf32> -> vector<8x96xf32>
    %654 = vector.extract_strided_slice %652 {offsets = [0, 0], sizes = [8, 32], strides = [1, 1]} : vector<8x96xf32> to vector<8x32xf32>
    %655 = vector.extract_strided_slice %653 {offsets = [0, 0], sizes = [8, 32], strides = [1, 1]} : vector<8x96xf32> to vector<8x32xf32>
    %656 = arith.addf %654, %655 : vector<8x32xf32>
    %657 = vector.extract_strided_slice %12 {offsets = [0, 0], sizes = [1, 32], strides = [1, 1]} : vector<4x32xf32> to vector<1x32xf32>
    %658 = vector.broadcast %657 : vector<1x32xf32> to vector<8x32xf32>
    %659 = arith.addf %656, %658 : vector<8x32xf32>
    %660 = arith.negf %659 : vector<8x32xf32>
    %661 = math.exp %660 : vector<8x32xf32>
    %cst_151 = arith.constant 1.000000e+00 : f32
    %662 = vector.broadcast %cst_151 : f32 to vector<8x32xf32>
    %663 = arith.addf %662, %661 : vector<8x32xf32>
    %664 = arith.divf %662, %663 : vector<8x32xf32>
    %665 = vector.extract_strided_slice %652 {offsets = [0, 32], sizes = [8, 32], strides = [1, 1]} : vector<8x96xf32> to vector<8x32xf32>
    %666 = vector.extract_strided_slice %653 {offsets = [0, 32], sizes = [8, 32], strides = [1, 1]} : vector<8x96xf32> to vector<8x32xf32>
    %667 = arith.addf %665, %666 : vector<8x32xf32>
    %668 = vector.extract_strided_slice %12 {offsets = [1, 0], sizes = [1, 32], strides = [1, 1]} : vector<4x32xf32> to vector<1x32xf32>
    %669 = vector.broadcast %668 : vector<1x32xf32> to vector<8x32xf32>
    %670 = arith.addf %667, %669 : vector<8x32xf32>
    %671 = arith.negf %670 : vector<8x32xf32>
    %672 = math.exp %671 : vector<8x32xf32>
    %cst_152 = arith.constant 1.000000e+00 : f32
    %673 = vector.broadcast %cst_152 : f32 to vector<8x32xf32>
    %674 = arith.addf %673, %672 : vector<8x32xf32>
    %675 = arith.divf %673, %674 : vector<8x32xf32>
    %676 = vector.extract_strided_slice %652 {offsets = [0, 64], sizes = [8, 32], strides = [1, 1]} : vector<8x96xf32> to vector<8x32xf32>
    %677 = vector.extract_strided_slice %12 {offsets = [2, 0], sizes = [1, 32], strides = [1, 1]} : vector<4x32xf32> to vector<1x32xf32>
    %678 = vector.broadcast %677 : vector<1x32xf32> to vector<8x32xf32>
    %679 = arith.addf %676, %678 : vector<8x32xf32>
    %680 = vector.extract_strided_slice %653 {offsets = [0, 64], sizes = [8, 32], strides = [1, 1]} : vector<8x96xf32> to vector<8x32xf32>
    %681 = vector.extract_strided_slice %12 {offsets = [3, 0], sizes = [1, 32], strides = [1, 1]} : vector<4x32xf32> to vector<1x32xf32>
    %682 = vector.broadcast %681 : vector<1x32xf32> to vector<8x32xf32>
    %683 = arith.addf %680, %682 : vector<8x32xf32>
    %684 = arith.mulf %664, %683 : vector<8x32xf32>
    %685 = arith.addf %679, %684 : vector<8x32xf32>
    %686 = math.tanh %685 : vector<8x32xf32>
    %cst_153 = arith.constant 1.000000e+00 : f32
    %687 = vector.broadcast %cst_153 : f32 to vector<8x32xf32>
    %688 = arith.subf %687, %675 : vector<8x32xf32>
    %689 = arith.mulf %688, %686 : vector<8x32xf32>
    %690 = arith.mulf %675, %647 : vector<8x32xf32>
    %691 = arith.addf %689, %690 : vector<8x32xf32>
    %692 = vector.broadcast %648 : i32 to vector<8x1xi32>
    %693 = arith.cmpi sgt, %0, %692 : vector<8x1xi32>
    %694 = arith.index_cast %648 : i32 to index
    %c0_154 = arith.constant 0 : index
    %c0_155 = arith.constant 0 : index
    %695 = vector.load %arg6[%694, %c0_154, %c0_155] : memref<8x8x32xf32, #tpu.memory_space<vmem>>, vector<1x8x32xf32>
    %696 = vector.shape_cast %695 : vector<1x8x32xf32> to vector<8x32xf32>
    %cst_156 = arith.constant 0.000000e+00 : f32
    %697 = vector.shape_cast %693 : vector<8x1xi1> to vector<8x1xi1>
    %698 = vector.broadcast %697 : vector<8x1xi1> to vector<8x32xi1>
    %699 = vector.broadcast %cst_156 : f32 to vector<8x32xf32>
    %700 = arith.select %698, %691, %699 : vector<8x32xi1>, vector<8x32xf32>
    %701 = arith.addf %696, %700 : vector<8x32xf32>
    %702 = arith.index_cast %648 : i32 to index
    %c0_157 = arith.constant 0 : index
    %c0_158 = arith.constant 0 : index
    %703 = vector.load %arg6[%702, %c0_157, %c0_158] : memref<8x8x32xf32, #tpu.memory_space<vmem>>, vector<1x8x32xf32>
    %704 = vector.shape_cast %703 : vector<1x8x32xf32> to vector<8x32xf32>
    %705 = vector.shape_cast %701 : vector<8x32xf32> to vector<1x8x32xf32>
    tpu.vector_store %arg6[%702, %c0_157, %c0_158], %705 {strides = array<i32>} : memref<8x8x32xf32, #tpu.memory_space<vmem>>, vector<1x8x32xf32>,
    %706 = vector.shape_cast %693 : vector<8x1xi1> to vector<8x1xi1>
    %707 = vector.broadcast %706 : vector<8x1xi1> to vector<8x32xi1>
    %708 = arith.select %707, %691, %647 : vector<8x32xi1>, vector<8x32xf32>
    %c4_i32_159 = arith.constant 4 : i32
    %c7_i32_160 = arith.constant 7 : i32
    %709 = arith.subi %c7_i32_160, %c4_i32_159 : i32
    %710 = arith.index_cast %709 : i32 to index
    %c0_161 = arith.constant 0 : index
    %c0_162 = arith.constant 0 : index
    %711 = vector.load %arg0[%710, %c0_161, %c0_162] : memref<8x8x32xf32, #tpu.memory_space<vmem>>, vector<1x8x32xf32>
    %712 = vector.shape_cast %711 : vector<1x8x32xf32> to vector<8x32xf32>
    %cst_163 = arith.constant dense<0.000000e+00> : vector<8x96xf32>
    %713 = tpu.matmul %712, %6, %cst_163 {dimension_numbers = #tpu.dot_dimension_numbers<[1], [0], [0], [1], [0, 0, 1, 1], [], []>} : vector<8x32xf32>, vector<32x96xf32>, vector<8x96xf32> -> vector<8x96xf32>
    %cst_164 = arith.constant dense<0.000000e+00> : vector<8x96xf32>
    %714 = tpu.matmul %708, %8, %cst_164 {dimension_numbers = #tpu.dot_dimension_numbers<[1], [0], [0], [1], [0, 0, 1, 1], [], []>} : vector<8x32xf32>, vector<32x96xf32>, vector<8x96xf32> -> vector<8x96xf32>
    %715 = vector.extract_strided_slice %713 {offsets = [0, 0], sizes = [8, 32], strides = [1, 1]} : vector<8x96xf32> to vector<8x32xf32>
    %716 = vector.extract_strided_slice %714 {offsets = [0, 0], sizes = [8, 32], strides = [1, 1]} : vector<8x96xf32> to vector<8x32xf32>
    %717 = arith.addf %715, %716 : vector<8x32xf32>
    %718 = vector.extract_strided_slice %12 {offsets = [0, 0], sizes = [1, 32], strides = [1, 1]} : vector<4x32xf32> to vector<1x32xf32>
    %719 = vector.broadcast %718 : vector<1x32xf32> to vector<8x32xf32>
    %720 = arith.addf %717, %719 : vector<8x32xf32>
    %721 = arith.negf %720 : vector<8x32xf32>
    %722 = math.exp %721 : vector<8x32xf32>
    %cst_165 = arith.constant 1.000000e+00 : f32
    %723 = vector.broadcast %cst_165 : f32 to vector<8x32xf32>
    %724 = arith.addf %723, %722 : vector<8x32xf32>
    %725 = arith.divf %723, %724 : vector<8x32xf32>
    %726 = vector.extract_strided_slice %713 {offsets = [0, 32], sizes = [8, 32], strides = [1, 1]} : vector<8x96xf32> to vector<8x32xf32>
    %727 = vector.extract_strided_slice %714 {offsets = [0, 32], sizes = [8, 32], strides = [1, 1]} : vector<8x96xf32> to vector<8x32xf32>
    %728 = arith.addf %726, %727 : vector<8x32xf32>
    %729 = vector.extract_strided_slice %12 {offsets = [1, 0], sizes = [1, 32], strides = [1, 1]} : vector<4x32xf32> to vector<1x32xf32>
    %730 = vector.broadcast %729 : vector<1x32xf32> to vector<8x32xf32>
    %731 = arith.addf %728, %730 : vector<8x32xf32>
    %732 = arith.negf %731 : vector<8x32xf32>
    %733 = math.exp %732 : vector<8x32xf32>
    %cst_166 = arith.constant 1.000000e+00 : f32
    %734 = vector.broadcast %cst_166 : f32 to vector<8x32xf32>
    %735 = arith.addf %734, %733 : vector<8x32xf32>
    %736 = arith.divf %734, %735 : vector<8x32xf32>
    %737 = vector.extract_strided_slice %713 {offsets = [0, 64], sizes = [8, 32], strides = [1, 1]} : vector<8x96xf32> to vector<8x32xf32>
    %738 = vector.extract_strided_slice %12 {offsets = [2, 0], sizes = [1, 32], strides = [1, 1]} : vector<4x32xf32> to vector<1x32xf32>
    %739 = vector.broadcast %738 : vector<1x32xf32> to vector<8x32xf32>
    %740 = arith.addf %737, %739 : vector<8x32xf32>
    %741 = vector.extract_strided_slice %714 {offsets = [0, 64], sizes = [8, 32], strides = [1, 1]} : vector<8x96xf32> to vector<8x32xf32>
    %742 = vector.extract_strided_slice %12 {offsets = [3, 0], sizes = [1, 32], strides = [1, 1]} : vector<4x32xf32> to vector<1x32xf32>
    %743 = vector.broadcast %742 : vector<1x32xf32> to vector<8x32xf32>
    %744 = arith.addf %741, %743 : vector<8x32xf32>
    %745 = arith.mulf %725, %744 : vector<8x32xf32>
    %746 = arith.addf %740, %745 : vector<8x32xf32>
    %747 = math.tanh %746 : vector<8x32xf32>
    %cst_167 = arith.constant 1.000000e+00 : f32
    %748 = vector.broadcast %cst_167 : f32 to vector<8x32xf32>
    %749 = arith.subf %748, %736 : vector<8x32xf32>
    %750 = arith.mulf %749, %747 : vector<8x32xf32>
    %751 = arith.mulf %736, %708 : vector<8x32xf32>
    %752 = arith.addf %750, %751 : vector<8x32xf32>
    %753 = vector.broadcast %709 : i32 to vector<8x1xi32>
    %754 = arith.cmpi sgt, %0, %753 : vector<8x1xi32>
    %755 = arith.index_cast %709 : i32 to index
    %c0_168 = arith.constant 0 : index
    %c0_169 = arith.constant 0 : index
    %756 = vector.load %arg6[%755, %c0_168, %c0_169] : memref<8x8x32xf32, #tpu.memory_space<vmem>>, vector<1x8x32xf32>
    %757 = vector.shape_cast %756 : vector<1x8x32xf32> to vector<8x32xf32>
    %cst_170 = arith.constant 0.000000e+00 : f32
    %758 = vector.shape_cast %754 : vector<8x1xi1> to vector<8x1xi1>
    %759 = vector.broadcast %758 : vector<8x1xi1> to vector<8x32xi1>
    %760 = vector.broadcast %cst_170 : f32 to vector<8x32xf32>
    %761 = arith.select %759, %752, %760 : vector<8x32xi1>, vector<8x32xf32>
    %762 = arith.addf %757, %761 : vector<8x32xf32>
    %763 = arith.index_cast %709 : i32 to index
    %c0_171 = arith.constant 0 : index
    %c0_172 = arith.constant 0 : index
    %764 = vector.load %arg6[%763, %c0_171, %c0_172] : memref<8x8x32xf32, #tpu.memory_space<vmem>>, vector<1x8x32xf32>
    %765 = vector.shape_cast %764 : vector<1x8x32xf32> to vector<8x32xf32>
    %766 = vector.shape_cast %762 : vector<8x32xf32> to vector<1x8x32xf32>
    tpu.vector_store %arg6[%763, %c0_171, %c0_172], %766 {strides = array<i32>} : memref<8x8x32xf32, #tpu.memory_space<vmem>>, vector<1x8x32xf32>,
    %767 = vector.shape_cast %754 : vector<8x1xi1> to vector<8x1xi1>
    %768 = vector.broadcast %767 : vector<8x1xi1> to vector<8x32xi1>
    %769 = arith.select %768, %752, %708 : vector<8x32xi1>, vector<8x32xf32>
    %c5_i32_173 = arith.constant 5 : i32
    %c7_i32_174 = arith.constant 7 : i32
    %770 = arith.subi %c7_i32_174, %c5_i32_173 : i32
    %771 = arith.index_cast %770 : i32 to index
    %c0_175 = arith.constant 0 : index
    %c0_176 = arith.constant 0 : index
    %772 = vector.load %arg0[%771, %c0_175, %c0_176] : memref<8x8x32xf32, #tpu.memory_space<vmem>>, vector<1x8x32xf32>
    %773 = vector.shape_cast %772 : vector<1x8x32xf32> to vector<8x32xf32>
    %cst_177 = arith.constant dense<0.000000e+00> : vector<8x96xf32>
    %774 = tpu.matmul %773, %6, %cst_177 {dimension_numbers = #tpu.dot_dimension_numbers<[1], [0], [0], [1], [0, 0, 1, 1], [], []>} : vector<8x32xf32>, vector<32x96xf32>, vector<8x96xf32> -> vector<8x96xf32>
    %cst_178 = arith.constant dense<0.000000e+00> : vector<8x96xf32>
    %775 = tpu.matmul %769, %8, %cst_178 {dimension_numbers = #tpu.dot_dimension_numbers<[1], [0], [0], [1], [0, 0, 1, 1], [], []>} : vector<8x32xf32>, vector<32x96xf32>, vector<8x96xf32> -> vector<8x96xf32>
    %776 = vector.extract_strided_slice %774 {offsets = [0, 0], sizes = [8, 32], strides = [1, 1]} : vector<8x96xf32> to vector<8x32xf32>
    %777 = vector.extract_strided_slice %775 {offsets = [0, 0], sizes = [8, 32], strides = [1, 1]} : vector<8x96xf32> to vector<8x32xf32>
    %778 = arith.addf %776, %777 : vector<8x32xf32>
    %779 = vector.extract_strided_slice %12 {offsets = [0, 0], sizes = [1, 32], strides = [1, 1]} : vector<4x32xf32> to vector<1x32xf32>
    %780 = vector.broadcast %779 : vector<1x32xf32> to vector<8x32xf32>
    %781 = arith.addf %778, %780 : vector<8x32xf32>
    %782 = arith.negf %781 : vector<8x32xf32>
    %783 = math.exp %782 : vector<8x32xf32>
    %cst_179 = arith.constant 1.000000e+00 : f32
    %784 = vector.broadcast %cst_179 : f32 to vector<8x32xf32>
    %785 = arith.addf %784, %783 : vector<8x32xf32>
    %786 = arith.divf %784, %785 : vector<8x32xf32>
    %787 = vector.extract_strided_slice %774 {offsets = [0, 32], sizes = [8, 32], strides = [1, 1]} : vector<8x96xf32> to vector<8x32xf32>
    %788 = vector.extract_strided_slice %775 {offsets = [0, 32], sizes = [8, 32], strides = [1, 1]} : vector<8x96xf32> to vector<8x32xf32>
    %789 = arith.addf %787, %788 : vector<8x32xf32>
    %790 = vector.extract_strided_slice %12 {offsets = [1, 0], sizes = [1, 32], strides = [1, 1]} : vector<4x32xf32> to vector<1x32xf32>
    %791 = vector.broadcast %790 : vector<1x32xf32> to vector<8x32xf32>
    %792 = arith.addf %789, %791 : vector<8x32xf32>
    %793 = arith.negf %792 : vector<8x32xf32>
    %794 = math.exp %793 : vector<8x32xf32>
    %cst_180 = arith.constant 1.000000e+00 : f32
    %795 = vector.broadcast %cst_180 : f32 to vector<8x32xf32>
    %796 = arith.addf %795, %794 : vector<8x32xf32>
    %797 = arith.divf %795, %796 : vector<8x32xf32>
    %798 = vector.extract_strided_slice %774 {offsets = [0, 64], sizes = [8, 32], strides = [1, 1]} : vector<8x96xf32> to vector<8x32xf32>
    %799 = vector.extract_strided_slice %12 {offsets = [2, 0], sizes = [1, 32], strides = [1, 1]} : vector<4x32xf32> to vector<1x32xf32>
    %800 = vector.broadcast %799 : vector<1x32xf32> to vector<8x32xf32>
    %801 = arith.addf %798, %800 : vector<8x32xf32>
    %802 = vector.extract_strided_slice %775 {offsets = [0, 64], sizes = [8, 32], strides = [1, 1]} : vector<8x96xf32> to vector<8x32xf32>
    %803 = vector.extract_strided_slice %12 {offsets = [3, 0], sizes = [1, 32], strides = [1, 1]} : vector<4x32xf32> to vector<1x32xf32>
    %804 = vector.broadcast %803 : vector<1x32xf32> to vector<8x32xf32>
    %805 = arith.addf %802, %804 : vector<8x32xf32>
    %806 = arith.mulf %786, %805 : vector<8x32xf32>
    %807 = arith.addf %801, %806 : vector<8x32xf32>
    %808 = math.tanh %807 : vector<8x32xf32>
    %cst_181 = arith.constant 1.000000e+00 : f32
    %809 = vector.broadcast %cst_181 : f32 to vector<8x32xf32>
    %810 = arith.subf %809, %797 : vector<8x32xf32>
    %811 = arith.mulf %810, %808 : vector<8x32xf32>
    %812 = arith.mulf %797, %769 : vector<8x32xf32>
    %813 = arith.addf %811, %812 : vector<8x32xf32>
    %814 = vector.broadcast %770 : i32 to vector<8x1xi32>
    %815 = arith.cmpi sgt, %0, %814 : vector<8x1xi32>
    %816 = arith.index_cast %770 : i32 to index
    %c0_182 = arith.constant 0 : index
    %c0_183 = arith.constant 0 : index
    %817 = vector.load %arg6[%816, %c0_182, %c0_183] : memref<8x8x32xf32, #tpu.memory_space<vmem>>, vector<1x8x32xf32>
    %818 = vector.shape_cast %817 : vector<1x8x32xf32> to vector<8x32xf32>
    %cst_184 = arith.constant 0.000000e+00 : f32
    %819 = vector.shape_cast %815 : vector<8x1xi1> to vector<8x1xi1>
    %820 = vector.broadcast %819 : vector<8x1xi1> to vector<8x32xi1>
    %821 = vector.broadcast %cst_184 : f32 to vector<8x32xf32>
    %822 = arith.select %820, %813, %821 : vector<8x32xi1>, vector<8x32xf32>
    %823 = arith.addf %818, %822 : vector<8x32xf32>
    %824 = arith.index_cast %770 : i32 to index
    %c0_185 = arith.constant 0 : index
    %c0_186 = arith.constant 0 : index
    %825 = vector.load %arg6[%824, %c0_185, %c0_186] : memref<8x8x32xf32, #tpu.memory_space<vmem>>, vector<1x8x32xf32>
    %826 = vector.shape_cast %825 : vector<1x8x32xf32> to vector<8x32xf32>
    %827 = vector.shape_cast %823 : vector<8x32xf32> to vector<1x8x32xf32>
    tpu.vector_store %arg6[%824, %c0_185, %c0_186], %827 {strides = array<i32>} : memref<8x8x32xf32, #tpu.memory_space<vmem>>, vector<1x8x32xf32>,
    %828 = vector.shape_cast %815 : vector<8x1xi1> to vector<8x1xi1>
    %829 = vector.broadcast %828 : vector<8x1xi1> to vector<8x32xi1>
    %830 = arith.select %829, %813, %769 : vector<8x32xi1>, vector<8x32xf32>
    %c6_i32_187 = arith.constant 6 : i32
    %c7_i32_188 = arith.constant 7 : i32
    %831 = arith.subi %c7_i32_188, %c6_i32_187 : i32
    %832 = arith.index_cast %831 : i32 to index
    %c0_189 = arith.constant 0 : index
    %c0_190 = arith.constant 0 : index
    %833 = vector.load %arg0[%832, %c0_189, %c0_190] : memref<8x8x32xf32, #tpu.memory_space<vmem>>, vector<1x8x32xf32>
    %834 = vector.shape_cast %833 : vector<1x8x32xf32> to vector<8x32xf32>
    %cst_191 = arith.constant dense<0.000000e+00> : vector<8x96xf32>
    %835 = tpu.matmul %834, %6, %cst_191 {dimension_numbers = #tpu.dot_dimension_numbers<[1], [0], [0], [1], [0, 0, 1, 1], [], []>} : vector<8x32xf32>, vector<32x96xf32>, vector<8x96xf32> -> vector<8x96xf32>
    %cst_192 = arith.constant dense<0.000000e+00> : vector<8x96xf32>
    %836 = tpu.matmul %830, %8, %cst_192 {dimension_numbers = #tpu.dot_dimension_numbers<[1], [0], [0], [1], [0, 0, 1, 1], [], []>} : vector<8x32xf32>, vector<32x96xf32>, vector<8x96xf32> -> vector<8x96xf32>
    %837 = vector.extract_strided_slice %835 {offsets = [0, 0], sizes = [8, 32], strides = [1, 1]} : vector<8x96xf32> to vector<8x32xf32>
    %838 = vector.extract_strided_slice %836 {offsets = [0, 0], sizes = [8, 32], strides = [1, 1]} : vector<8x96xf32> to vector<8x32xf32>
    %839 = arith.addf %837, %838 : vector<8x32xf32>
    %840 = vector.extract_strided_slice %12 {offsets = [0, 0], sizes = [1, 32], strides = [1, 1]} : vector<4x32xf32> to vector<1x32xf32>
    %841 = vector.broadcast %840 : vector<1x32xf32> to vector<8x32xf32>
    %842 = arith.addf %839, %841 : vector<8x32xf32>
    %843 = arith.negf %842 : vector<8x32xf32>
    %844 = math.exp %843 : vector<8x32xf32>
    %cst_193 = arith.constant 1.000000e+00 : f32
    %845 = vector.broadcast %cst_193 : f32 to vector<8x32xf32>
    %846 = arith.addf %845, %844 : vector<8x32xf32>
    %847 = arith.divf %845, %846 : vector<8x32xf32>
    %848 = vector.extract_strided_slice %835 {offsets = [0, 32], sizes = [8, 32], strides = [1, 1]} : vector<8x96xf32> to vector<8x32xf32>
    %849 = vector.extract_strided_slice %836 {offsets = [0, 32], sizes = [8, 32], strides = [1, 1]} : vector<8x96xf32> to vector<8x32xf32>
    %850 = arith.addf %848, %849 : vector<8x32xf32>
    %851 = vector.extract_strided_slice %12 {offsets = [1, 0], sizes = [1, 32], strides = [1, 1]} : vector<4x32xf32> to vector<1x32xf32>
    %852 = vector.broadcast %851 : vector<1x32xf32> to vector<8x32xf32>
    %853 = arith.addf %850, %852 : vector<8x32xf32>
    %854 = arith.negf %853 : vector<8x32xf32>
    %855 = math.exp %854 : vector<8x32xf32>
    %cst_194 = arith.constant 1.000000e+00 : f32
    %856 = vector.broadcast %cst_194 : f32 to vector<8x32xf32>
    %857 = arith.addf %856, %855 : vector<8x32xf32>
    %858 = arith.divf %856, %857 : vector<8x32xf32>
    %859 = vector.extract_strided_slice %835 {offsets = [0, 64], sizes = [8, 32], strides = [1, 1]} : vector<8x96xf32> to vector<8x32xf32>
    %860 = vector.extract_strided_slice %12 {offsets = [2, 0], sizes = [1, 32], strides = [1, 1]} : vector<4x32xf32> to vector<1x32xf32>
    %861 = vector.broadcast %860 : vector<1x32xf32> to vector<8x32xf32>
    %862 = arith.addf %859, %861 : vector<8x32xf32>
    %863 = vector.extract_strided_slice %836 {offsets = [0, 64], sizes = [8, 32], strides = [1, 1]} : vector<8x96xf32> to vector<8x32xf32>
    %864 = vector.extract_strided_slice %12 {offsets = [3, 0], sizes = [1, 32], strides = [1, 1]} : vector<4x32xf32> to vector<1x32xf32>
    %865 = vector.broadcast %864 : vector<1x32xf32> to vector<8x32xf32>
    %866 = arith.addf %863, %865 : vector<8x32xf32>
    %867 = arith.mulf %847, %866 : vector<8x32xf32>
    %868 = arith.addf %862, %867 : vector<8x32xf32>
    %869 = math.tanh %868 : vector<8x32xf32>
    %cst_195 = arith.constant 1.000000e+00 : f32
    %870 = vector.broadcast %cst_195 : f32 to vector<8x32xf32>
    %871 = arith.subf %870, %858 : vector<8x32xf32>
    %872 = arith.mulf %871, %869 : vector<8x32xf32>
    %873 = arith.mulf %858, %830 : vector<8x32xf32>
    %874 = arith.addf %872, %873 : vector<8x32xf32>
    %875 = vector.broadcast %831 : i32 to vector<8x1xi32>
    %876 = arith.cmpi sgt, %0, %875 : vector<8x1xi32>
    %877 = arith.index_cast %831 : i32 to index
    %c0_196 = arith.constant 0 : index
    %c0_197 = arith.constant 0 : index
    %878 = vector.load %arg6[%877, %c0_196, %c0_197] : memref<8x8x32xf32, #tpu.memory_space<vmem>>, vector<1x8x32xf32>
    %879 = vector.shape_cast %878 : vector<1x8x32xf32> to vector<8x32xf32>
    %cst_198 = arith.constant 0.000000e+00 : f32
    %880 = vector.shape_cast %876 : vector<8x1xi1> to vector<8x1xi1>
    %881 = vector.broadcast %880 : vector<8x1xi1> to vector<8x32xi1>
    %882 = vector.broadcast %cst_198 : f32 to vector<8x32xf32>
    %883 = arith.select %881, %874, %882 : vector<8x32xi1>, vector<8x32xf32>
    %884 = arith.addf %879, %883 : vector<8x32xf32>
    %885 = arith.index_cast %831 : i32 to index
    %c0_199 = arith.constant 0 : index
    %c0_200 = arith.constant 0 : index
    %886 = vector.load %arg6[%885, %c0_199, %c0_200] : memref<8x8x32xf32, #tpu.memory_space<vmem>>, vector<1x8x32xf32>
    %887 = vector.shape_cast %886 : vector<1x8x32xf32> to vector<8x32xf32>
    %888 = vector.shape_cast %884 : vector<8x32xf32> to vector<1x8x32xf32>
    tpu.vector_store %arg6[%885, %c0_199, %c0_200], %888 {strides = array<i32>} : memref<8x8x32xf32, #tpu.memory_space<vmem>>, vector<1x8x32xf32>,
    %889 = vector.shape_cast %876 : vector<8x1xi1> to vector<8x1xi1>
    %890 = vector.broadcast %889 : vector<8x1xi1> to vector<8x32xi1>
    %891 = arith.select %890, %874, %830 : vector<8x32xi1>, vector<8x32xf32>
    %c7_i32_201 = arith.constant 7 : i32
    %c7_i32_202 = arith.constant 7 : i32
    %892 = arith.subi %c7_i32_202, %c7_i32_201 : i32
    %893 = arith.index_cast %892 : i32 to index
    %c0_203 = arith.constant 0 : index
    %c0_204 = arith.constant 0 : index
    %894 = vector.load %arg0[%893, %c0_203, %c0_204] : memref<8x8x32xf32, #tpu.memory_space<vmem>>, vector<1x8x32xf32>
    %895 = vector.shape_cast %894 : vector<1x8x32xf32> to vector<8x32xf32>
    %cst_205 = arith.constant dense<0.000000e+00> : vector<8x96xf32>
    %896 = tpu.matmul %895, %6, %cst_205 {dimension_numbers = #tpu.dot_dimension_numbers<[1], [0], [0], [1], [0, 0, 1, 1], [], []>} : vector<8x32xf32>, vector<32x96xf32>, vector<8x96xf32> -> vector<8x96xf32>
    %cst_206 = arith.constant dense<0.000000e+00> : vector<8x96xf32>
    %897 = tpu.matmul %891, %8, %cst_206 {dimension_numbers = #tpu.dot_dimension_numbers<[1], [0], [0], [1], [0, 0, 1, 1], [], []>} : vector<8x32xf32>, vector<32x96xf32>, vector<8x96xf32> -> vector<8x96xf32>
    %898 = vector.extract_strided_slice %896 {offsets = [0, 0], sizes = [8, 32], strides = [1, 1]} : vector<8x96xf32> to vector<8x32xf32>
    %899 = vector.extract_strided_slice %897 {offsets = [0, 0], sizes = [8, 32], strides = [1, 1]} : vector<8x96xf32> to vector<8x32xf32>
    %900 = arith.addf %898, %899 : vector<8x32xf32>
    %901 = vector.extract_strided_slice %12 {offsets = [0, 0], sizes = [1, 32], strides = [1, 1]} : vector<4x32xf32> to vector<1x32xf32>
    %902 = vector.broadcast %901 : vector<1x32xf32> to vector<8x32xf32>
    %903 = arith.addf %900, %902 : vector<8x32xf32>
    %904 = arith.negf %903 : vector<8x32xf32>
    %905 = math.exp %904 : vector<8x32xf32>
    %cst_207 = arith.constant 1.000000e+00 : f32
    %906 = vector.broadcast %cst_207 : f32 to vector<8x32xf32>
    %907 = arith.addf %906, %905 : vector<8x32xf32>
    %908 = arith.divf %906, %907 : vector<8x32xf32>
    %909 = vector.extract_strided_slice %896 {offsets = [0, 32], sizes = [8, 32], strides = [1, 1]} : vector<8x96xf32> to vector<8x32xf32>
    %910 = vector.extract_strided_slice %897 {offsets = [0, 32], sizes = [8, 32], strides = [1, 1]} : vector<8x96xf32> to vector<8x32xf32>
    %911 = arith.addf %909, %910 : vector<8x32xf32>
    %912 = vector.extract_strided_slice %12 {offsets = [1, 0], sizes = [1, 32], strides = [1, 1]} : vector<4x32xf32> to vector<1x32xf32>
    %913 = vector.broadcast %912 : vector<1x32xf32> to vector<8x32xf32>
    %914 = arith.addf %911, %913 : vector<8x32xf32>
    %915 = arith.negf %914 : vector<8x32xf32>
    %916 = math.exp %915 : vector<8x32xf32>
    %cst_208 = arith.constant 1.000000e+00 : f32
    %917 = vector.broadcast %cst_208 : f32 to vector<8x32xf32>
    %918 = arith.addf %917, %916 : vector<8x32xf32>
    %919 = arith.divf %917, %918 : vector<8x32xf32>
    %920 = vector.extract_strided_slice %896 {offsets = [0, 64], sizes = [8, 32], strides = [1, 1]} : vector<8x96xf32> to vector<8x32xf32>
    %921 = vector.extract_strided_slice %12 {offsets = [2, 0], sizes = [1, 32], strides = [1, 1]} : vector<4x32xf32> to vector<1x32xf32>
    %922 = vector.broadcast %921 : vector<1x32xf32> to vector<8x32xf32>
    %923 = arith.addf %920, %922 : vector<8x32xf32>
    %924 = vector.extract_strided_slice %897 {offsets = [0, 64], sizes = [8, 32], strides = [1, 1]} : vector<8x96xf32> to vector<8x32xf32>
    %925 = vector.extract_strided_slice %12 {offsets = [3, 0], sizes = [1, 32], strides = [1, 1]} : vector<4x32xf32> to vector<1x32xf32>
    %926 = vector.broadcast %925 : vector<1x32xf32> to vector<8x32xf32>
    %927 = arith.addf %924, %926 : vector<8x32xf32>
    %928 = arith.mulf %908, %927 : vector<8x32xf32>
    %929 = arith.addf %923, %928 : vector<8x32xf32>
    %930 = math.tanh %929 : vector<8x32xf32>
    %cst_209 = arith.constant 1.000000e+00 : f32
    %931 = vector.broadcast %cst_209 : f32 to vector<8x32xf32>
    %932 = arith.subf %931, %919 : vector<8x32xf32>
    %933 = arith.mulf %932, %930 : vector<8x32xf32>
    %934 = arith.mulf %919, %891 : vector<8x32xf32>
    %935 = arith.addf %933, %934 : vector<8x32xf32>
    %936 = vector.broadcast %892 : i32 to vector<8x1xi32>
    %937 = arith.cmpi sgt, %0, %936 : vector<8x1xi32>
    %938 = arith.index_cast %892 : i32 to index
    %c0_210 = arith.constant 0 : index
    %c0_211 = arith.constant 0 : index
    %939 = vector.load %arg6[%938, %c0_210, %c0_211] : memref<8x8x32xf32, #tpu.memory_space<vmem>>, vector<1x8x32xf32>
    %940 = vector.shape_cast %939 : vector<1x8x32xf32> to vector<8x32xf32>
    %cst_212 = arith.constant 0.000000e+00 : f32
    %941 = vector.shape_cast %937 : vector<8x1xi1> to vector<8x1xi1>
    %942 = vector.broadcast %941 : vector<8x1xi1> to vector<8x32xi1>
    %943 = vector.broadcast %cst_212 : f32 to vector<8x32xf32>
    %944 = arith.select %942, %935, %943 : vector<8x32xi1>, vector<8x32xf32>
    %945 = arith.addf %940, %944 : vector<8x32xf32>
    %946 = arith.index_cast %892 : i32 to index
    %c0_213 = arith.constant 0 : index
    %c0_214 = arith.constant 0 : index
    %947 = vector.load %arg6[%946, %c0_213, %c0_214] : memref<8x8x32xf32, #tpu.memory_space<vmem>>, vector<1x8x32xf32>
    %948 = vector.shape_cast %947 : vector<1x8x32xf32> to vector<8x32xf32>
    %949 = vector.shape_cast %945 : vector<8x32xf32> to vector<1x8x32xf32>
    tpu.vector_store %arg6[%946, %c0_213, %c0_214], %949 {strides = array<i32>} : memref<8x8x32xf32, #tpu.memory_space<vmem>>, vector<1x8x32xf32>,
    %950 = vector.shape_cast %937 : vector<8x1xi1> to vector<8x1xi1>
    %951 = vector.broadcast %950 : vector<8x1xi1> to vector<8x32xi1>
    %952 = arith.select %951, %935, %891 : vector<8x32xi1>, vector<8x32xf32>
    %c8_i32_215 = arith.constant 8 : i32
    %c0_216 = arith.constant 0 : index
    %c0_217 = arith.constant 0 : index
    %c0_218 = arith.constant 0 : index
    %953 = vector.load %arg7[%c0_216, %c0_217, %c0_218] : memref<2x8x32xf32, #tpu.memory_space<vmem>>, vector<1x8x32xf32>
    %954 = vector.shape_cast %953 : vector<1x8x32xf32> to vector<8x32xf32>
    %955 = vector.shape_cast %462 : vector<8x32xf32> to vector<1x8x32xf32>
    tpu.vector_store %arg7[%c0_216, %c0_217, %c0_218], %955 {strides = array<i32>} : memref<2x8x32xf32, #tpu.memory_space<vmem>>, vector<1x8x32xf32>,
    %c1_219 = arith.constant 1 : index
    %c0_220 = arith.constant 0 : index
    %c0_221 = arith.constant 0 : index
    %956 = vector.load %arg7[%c1_219, %c0_220, %c0_221] : memref<2x8x32xf32, #tpu.memory_space<vmem>>, vector<1x8x32xf32>
    %957 = vector.shape_cast %956 : vector<1x8x32xf32> to vector<8x32xf32>
    %958 = vector.shape_cast %952 : vector<8x32xf32> to vector<1x8x32xf32>
    tpu.vector_store %arg7[%c1_219, %c0_220, %c0_221], %958 {strides = array<i32>} : memref<2x8x32xf32, #tpu.memory_space<vmem>>, vector<1x8x32xf32>,
    return
  }
}

</mosaic_0001>

<bundles_post_ra>
// kernel: tpu_custom_call.1
= control target key start
LH: loop header
LB: loop body
LE: loop exit
PB: predicated region body
PF: predicated region fallthrough
CT: control target
= control target key end

     0   :  { %13 = vsyncpa [#allocation3], 0  ;;  %s5221_s0 = inlined_call_operand.hbm [shape: f32[8,8,32], index: 0, kind: input, shape index: {}]   ;;  %s5222_s1 = inlined_call_operand.vmem [shape: s32[8,1], index: 1, kind: input, shape index: {}]   ;;  %s5223_s2 = inlined_call_operand.hbm [shape: f32[2,8,32], index: 2, kind: input, shape index: {}]   ;;  %s5224_s3 = inlined_call_operand.hbm [shape: f32[2,32,96], index: 3, kind: input, shape index: {}]   ;;  %s5225_s4 = inlined_call_operand.hbm [shape: f32[2,32,96], index: 4, kind: input, shape index: {}]   ;;  %s5226_s5 = inlined_call_operand.vmem [shape: f32[2,4,32], index: 5, kind: input, shape index: {}]   ;;  %s5227_s6 = inlined_call_operand.hbm [shape: f32[8,8,32], index: 6, kind: output, shape index: {0}]   ;;  %s5228_s7 = inlined_call_operand.hbm [shape: f32[2,8,32], index: 7, kind: output, shape index: {1}]  }
   0x1   :  { %14 = vsyncpa [#allocation6], 0 }
   0x2   :  { %15 = vsyncpa [#allocation9], 0 }
   0x3   :  { %16 = vsyncpa [#allocation4], 0 }
   0x4   :  { %17 = vsyncpa [#allocation12], 0  ;;  %s4245_s24 = smov [#allocation5]   ;;  %s4246_s26 = smov [#allocation2]  }
   0x5   :  { %s37_s25 = sshll.u32 %s4245_s24, 4  ;;  %s23_s27 = sshll.u32 %s4246_s26, 4  ;;  %s38_s25 = int_to_ptr.vmem [resolvable:$true] %s37_s25  ;;  %s24_s27 = int_to_ptr.vmem [resolvable:$true] %s23_s27 }
   0x6   :  { %s4123_s28 = scalar_lea.vmem %s38_s25, 256  ;;  %p4128_p1 = scmp.lt.s32.totalorder %s38_s25, %s38_s25 }
   0x7   :  { %p4124_p0 = scmp.ne.s32.totalorder %s38_s25, %s4123_s28  ;;  %p4129_p2 = scmp.lt.s32.totalorder %s4123_s28, %s4123_s28 }
   0x9   :  { %p4130_p3 = por %p4129_p2, %p4128_p1 }
   0xb   :  { %p4131_p4 = pnand %p4130_p3, %p4124_p0 }
   0xd   :  { %4134 = shalt.err (!%p4131_p4)
}
   0xe   :  { %s4247_s29 = smov 128   ;;  %s4248_s30 = smov 8  }
   0xf   :  { %43 = dma.hbm_to_vmem [thread:$0]  %s5223_s2, 256, %s38_s25, [#allocation6], %s4247_s29, %s4247_s29, %s4248_s30  }
  0x10   :  { %s4143_s10 = scalar_lea.vmem %s24_s27, 1024  ;;  %p4148_p6 = scmp.lt.s32.totalorder %s24_s27, %s24_s27 }
  0x11   :  { %p4144_p5 = scmp.ne.s32.totalorder %s24_s27, %s4143_s10  ;;  %p4149_p7 = scmp.lt.s32.totalorder %s4143_s10, %s4143_s10 }
  0x13   :  { %p4150_p8 = por %p4149_p7, %p4148_p6 }
  0x15   :  { %p4151_p9 = pnand %p4150_p8, %p4144_p5 }
  0x17   :  { %4154 = shalt.err (!%p4151_p9)
}
  0x18   :  { %29 = dma.hbm_to_vmem [thread:$0]  %s5221_s0, 1024, %s24_s27, [#allocation3], %s4247_s29, %s4247_s29, %s4248_s30  }
  0x19   :  { %s4249_s13 = smov [#allocation7]   ;;  %s4250_s15 = smov [#allocation8]  }
  0x1a   :  { %s49_s14 = sshll.u32 %s4249_s13, 4  ;;  %s61_s16 = sshll.u32 %s4250_s15, 4  ;;  %s50_s14 = int_to_ptr.vmem [resolvable:$true] %s49_s14  ;;  %s62_s16 = int_to_ptr.vmem [resolvable:$true] %s61_s16 }
  0x1b   :  { %s4163_s2 = scalar_lea.vmem %s50_s14, 1024  ;;  %p4168_p11 = scmp.lt.s32.totalorder %s50_s14, %s50_s14 }
  0x1c   :  { %p4164_p10 = scmp.ne.s32.totalorder %s50_s14, %s4163_s2  ;;  %p4169_p12 = scmp.lt.s32.totalorder %s4163_s2, %s4163_s2 }
  0x1e   :  { %p4170_p13 = por %p4169_p12, %p4168_p11 }
  0x20   :  { %p4171_p0 = pnand %p4170_p13, %p4164_p10 }
  0x22   :  { %4174 = shalt.err (!%p4171_p0)
}
  0x23   :  { %55 = dma.hbm_to_vmem [thread:$0]  %s5224_s3, 1024, %s50_s14, [#allocation6], %s4247_s29, %s4247_s29, %s4248_s30  }
  0x24   :  { %s4183_s0 = scalar_lea.vmem %s62_s16, 1024  ;;  %p4188_p2 = scmp.lt.s32.totalorder %s62_s16, %s62_s16 }
  0x25   :  { %p4184_p1 = scmp.ne.s32.totalorder %s62_s16, %s4183_s0  ;;  %p4189_p3 = scmp.lt.s32.totalorder %s4183_s0, %s4183_s0 }
  0x27   :  { %p4190_p4 = por %p4189_p3, %p4188_p2 }
  0x29   :  { %p4191_p5 = pnand %p4190_p4, %p4184_p1 }
  0x2b   :  { %4194 = shalt.err (!%p4191_p5)
}
  0x2c   :  { %67 = dma.hbm_to_vmem [thread:$0]  %s5225_s4, 1024, %s62_s16, [#allocation9], %s4247_s29, %s4247_s29, %s4248_s30  }
  0x2d   :  { %4235 = dma.done.wait [#allocation3], 1024  }
  0x2e   :  { %4236 = vsyncadd [#allocation3], 4294966272 }
  0x2f   :  { %4237 = dma.done.wait [#allocation6], 1280  }
  0x30   :  { %4238 = vsyncadd [#allocation6], 4294966016 }
  0x31   :  { %4239 = dma.done.wait [#allocation9], 1024  }
  0x32   :  { %4240 = vsyncadd [#allocation9], 4294966272  ;;  %v254_v0 = vlaneseq  ;;  %v4251_v1 = vmov 0.0   ;;  %vm4252_vm0 = vmmov 0   ;;  %v4331_v3 = vld [vmem:[#allocation7 + $0x18] sm:$0xff]  ;;  %v4335_v5 = vld [vmem:[#allocation7 + $0x10] sm:$0xff] }
  0x33   :  { %3587 = vmatprep.subr.mxu0 %v4251_v1  ;;  %3598 = vmatprep.subr.mxu1 %v4251_v1  ;;  %v4333_v4 = vld [vmem:[#allocation8 + $0x18] sm:$0xff]  ;;  %v4339_v6 = vld [vmem:[#allocation8 + $0x10] sm:$0xff]  ;;  %v4345_v9 = vld [vmem:[#allocation7 + $0x8] sm:$0xff]  ;;  %vm106_vm1 = vcmask 261120   ;;  %s4253_s21 = smov 64   ;;  %v4254_v25 = vmov 0  }
  0x34   :  { %3595 = vmatprep.mubr.msk.f32.mxu0 %vm4252_vm0, %v4251_v1  ;;  %3606 = vmatprep.mubr.msk.f32.mxu1 %vm4252_vm0, %v4251_v1  ;;  %v4329_v2 = vshrl.u32 %v254_v0, 7  ;;  %v4347_v10 = vld [vmem:[#allocation8 + $0x8] sm:$0xff]  ;;  %v4354_v11 = vld [vmem:[%s5226_s5] sm:$0xf]  ;;  %v4358_v12 = vld [vmem:[#allocation7] sm:$0xff]  ;;  %s4255_s22 = smov 32  }
  0x35   :  { %3588 = vmatpush3.msra.mxu0 %v4331_v3  ;;  %3599 = vmatpush3.msra.mxu1 %v4333_v4  ;;  %v4360_v13 = vld [vmem:[#allocation8] sm:$0xff]  ;;  %v105_v14 = vld [vmem:[#allocation2] sm:$0xff]  ;;  %v334_v18 = vld [vmem:[#allocation2 + $0x8] sm:$0xff]  ;;  %s4258_s28 = smov [#allocation11]  }
  0x36   :  { %v291_v7 = vsub.s32 3, %v4329_v2  ;;  %v282_v8 = vsub.s32 2, %v4329_v2  ;;  %3589 = vmatprep.subr.mxu0 %v4251_v1  ;;  %3600 = vmatprep.subr.mxu1 %v4251_v1  ;;  %v4364_v15 = vld [vmem:[#allocation5] sm:$0xff]  ;;  %v534_v19 = vld [vmem:[#allocation2 + $0x10] sm:$0xff]  ;;  %v4425_v20 = vld [vmem:[#allocation2 + $0x18] sm:$0xff]  ;;  %v267_v27 = vsub.s32 1, %v4329_v2 }
  0x37   :  { %3590 = vmatpush3.msra.mxu0 %v4335_v5  ;;  %3601 = vmatpush3.msra.mxu1 %v4339_v6  ;;  %v4438_v21 = vld [vmem:[#allocation2 + $0x20] sm:$0xff]  ;;  %v4452_v22 = vld [vmem:[#allocation2 + $0x28] sm:$0xff]  ;;  %v4464_v23 = vld [vmem:[#allocation2 + $0x30] sm:$0xff]  ;;  %v256_v39 = vsub.s32 0, %v4329_v2  ;;  %s3344_s8 = sshll.u32 %s4258_s28, 4  ;;  %s3345_s8 = int_to_ptr.vmem [resolvable:$true] %s3344_s8 }
  0x38   :  { %3591 = vmatprep.subr.mxu0 %v4251_v1  ;;  %3602 = vmatprep.subr.mxu1 %v4251_v1  ;;  %v292_v16 = vrot.slane %v4354_v11, %v291_v7  ;;  %v283_v17 = vrot.slane %v4354_v11, %v282_v8  ;;  %v4478_v24 = vld [vmem:[#allocation2 + $0x38] sm:$0xff]  ;;  %v268_v34 = vrot.slane %v4354_v11, %v267_v27  ;;  %v4522_v55 = vld [vmem:[%s5222_s1] sm:$0xff]  ;;  %s4256_s1 = smov 96  }
  0x39   :  { %3592 = vmatpush3.msra.mxu0 %v4345_v9  ;;  %3603 = vmatpush3.msra.mxu1 %v4347_v10  ;;  %v4508_v41 = vrot.slane %v4354_v11, %v256_v39  ;;  %vm320_vm2 = vcmp.gt.s32.totalorder %v4522_v55, 0  ;;  %vm519_vm4 = vcmp.gt.s32.totalorder %v4522_v55, 1  ;;  %vm719_vm6 = vcmp.gt.s32.totalorder %v4522_v55, 2 }
  0x3a   :  { %3593 = vmatprep.subr.mxu0 %v4251_v1  ;;  %3604 = vmatprep.subr.mxu1 %v4251_v1  ;;  %v321_v59 = vsel %vm320_vm2, 1, %v4254_v25  ;;  %vm919_vm8 = vcmp.gt.s32.totalorder %v4522_v55, 3  ;;  %vm1119_vm10 = vcmp.gt.s32.totalorder %v4522_v55, 4  ;;  %vm1319_vm12 = vcmp.gt.s32.totalorder %v4522_v55, 5 }
  0x3b   :  { %3594 = vmatpush3.msra.mxu0 %v4358_v12  ;;  %3605 = vmatpush3.msra.mxu1 %v4360_v13  ;;  %vm1519_vm14 = vcmp.gt.s32.totalorder %v4522_v55, 6  ;;  %vm1719_vm2 = vcmp.gt.s32.totalorder %v4522_v55, 7 }
  0x3c   :  { %3596 = vmatmul.mubr.msk.f32.vlgmr.msra.gmra.mxu0 %vm106_vm1, %v105_v14  ;;  %3607 = vmatmul.mubr.msk.f32.vlgmr.msra.gmra.mxu1 %vm106_vm1, %v4364_v15 }
  0x3d   :  { %294 = vrot.lane.b32.xlu0 %v292_v16, %s4253_s21  ;;  %285 = vrot.lane.b32.xlu1 %v283_v17, %s4253_s21 }
  0x3e   :  { %3609 = vmatprep.subr.mxu0 %v4251_v1  ;;  %3617 = vmatprep.mubr.msk.f32.mxu0 %vm4252_vm0, %v4251_v1 }
  0x3f   :  { %3610 = vmatpush3.msra.mxu0 %v4331_v3  ;;  %3620 = vmatprep.subr.mxu1 %v4251_v1 }
  0x40   :  { %3611 = vmatprep.subr.mxu0 %v4251_v1  ;;  %3621 = vmatpush3.msra.mxu1 %v4333_v4 }
  0x41   :  { %3612 = vmatpush3.msra.mxu0 %v4335_v5  ;;  %3622 = vmatprep.subr.mxu1 %v4251_v1 }
  0x42   :  { %3613 = vmatprep.subr.mxu0 %v4251_v1  ;;  %3623 = vmatpush3.msra.mxu1 %v4339_v6 }
  0x43   :  { %3614 = vmatpush3.msra.mxu0 %v4345_v9  ;;  %3624 = vmatprep.subr.mxu1 %v4251_v1 }
  0x44   :  { %3615 = vmatprep.subr.mxu0 %v4251_v1  ;;  %3625 = vmatpush3.msra.mxu1 %v4347_v10 }
  0x45   :  { %3616 = vmatpush3.msra.mxu0 %v4358_v12  ;;  %3626 = vmatprep.subr.mxu1 %v4251_v1 }
  0x46   :  { %3631 = vmatprep.subr.mxu0 %v4251_v1  ;;  %3618 = vmatmul.mubr.msk.f32.vlgmr.msra.gmra.mxu0 %vm106_vm1, %v334_v18 }
  0x47   :  { %3632 = vmatpush3.msra.mxu0 %v4331_v3  ;;  %3639 = vmatprep.mubr.msk.f32.mxu0 %vm4252_vm0, %v4251_v1 }
  0x48   :  { %3633 = vmatprep.subr.mxu0 %v4251_v1  ;;  %3627 = vmatpush3.msra.mxu1 %v4360_v13 }
  0x49   :  { %3634 = vmatpush3.msra.mxu0 %v4335_v5  ;;  %3628 = vmatprep.mubr.msk.f32.mxu1 %vm4252_vm0, %v4251_v1 }
  0x4a   :  { %3635 = vmatprep.subr.mxu0 %v4251_v1  ;;  %3642 = vmatprep.subr.mxu1 %v4251_v1 }
  0x4b   :  { %3636 = vmatpush3.msra.mxu0 %v4345_v9  ;;  %3953 = vset.pattern.permute.xlu1 %v4254_v25 }
  0x4c   :  { %3637 = vmatprep.subr.mxu0 %v4251_v1  ;;  %3954 = vset.pattern.permute.xlu0 %v4254_v25 }
  0x4d   :  { %3638 = vmatpush3.msra.mxu0 %v4358_v12 }
  0x4e   :  { %3653 = vmatprep.subr.mxu0 %v4251_v1  ;;  %3640 = vmatmul.mubr.msk.f32.vlgmr.msra.gmra.mxu0 %vm106_vm1, %v534_v19 }
  0x4f   :  { %3654 = vmatpush3.msra.mxu0 %v4331_v3  ;;  %3661 = vmatprep.mubr.msk.f32.mxu0 %vm4252_vm0, %v4251_v1 }
  0x50   :  { %3655 = vmatprep.subr.mxu0 %v4251_v1 }
  0x51   :  { %3656 = vmatpush3.msra.mxu0 %v4335_v5 }
  0x52   :  { %3657 = vmatprep.subr.mxu0 %v4251_v1 }
  0x53   :  { %3658 = vmatpush3.msra.mxu0 %v4345_v9 }
  0x54   :  { %3659 = vmatprep.subr.mxu0 %v4251_v1 }
  0x55   :  { %3660 = vmatpush3.msra.mxu0 %v4358_v12 }
  0x56   :  { %3675 = vmatprep.subr.mxu0 %v4251_v1  ;;  %3662 = vmatmul.mubr.msk.f32.vlgmr.msra.gmra.mxu0 %vm106_vm1, %v4425_v20 }
  0x57   :  { %3676 = vmatpush3.msra.mxu0 %v4331_v3  ;;  %3683 = vmatprep.mubr.msk.f32.mxu0 %vm4252_vm0, %v4251_v1 }
  0x58   :  { %3677 = vmatprep.subr.mxu0 %v4251_v1 }
  0x59   :  { %3678 = vmatpush3.msra.mxu0 %v4335_v5 }
  0x5a   :  { %3679 = vmatprep.subr.mxu0 %v4251_v1 }
  0x5b   :  { %3680 = vmatpush3.msra.mxu0 %v4345_v9 }
  0x5c   :  { %3681 = vmatprep.subr.mxu0 %v4251_v1 }
  0x5d   :  { %3682 = vmatpush3.msra.mxu0 %v4358_v12 }
  0x5e   :  { %3697 = vmatprep.subr.mxu0 %v4251_v1  ;;  %3684 = vmatmul.mubr.msk.f32.vlgmr.msra.gmra.mxu0 %vm106_vm1, %v4438_v21 }
  0x5f   :  { %3698 = vmatpush3.msra.mxu0 %v4331_v3  ;;  %3705 = vmatprep.mubr.msk.f32.mxu0 %vm4252_vm0, %v4251_v1 }
  0x60   :  { %3699 = vmatprep.subr.mxu0 %v4251_v1 }
  0x61   :  { %3700 = vmatpush3.msra.mxu0 %v4335_v5 }
  0x62   :  { %3701 = vmatprep.subr.mxu0 %v4251_v1 }
  0x63   :  { %3702 = vmatpush3.msra.mxu0 %v4345_v9 }
  0x64   :  { %3703 = vmatprep.subr.mxu0 %v4251_v1 }
  0x65   :  { %3704 = vmatpush3.msra.mxu0 %v4358_v12 }
  0x66   :  { %3719 = vmatprep.subr.mxu0 %v4251_v1  ;;  %3706 = vmatmul.mubr.msk.f32.vlgmr.msra.gmra.mxu0 %vm106_vm1, %v4452_v22 }
  0x67   :  { %3720 = vmatpush3.msra.mxu0 %v4331_v3  ;;  %3727 = vmatprep.mubr.msk.f32.mxu0 %vm4252_vm0, %v4251_v1 }
  0x68   :  { %3721 = vmatprep.subr.mxu0 %v4251_v1 }
  0x69   :  { %3722 = vmatpush3.msra.mxu0 %v4335_v5 }
  0x6a   :  { %3723 = vmatprep.subr.mxu0 %v4251_v1 }
  0x6b   :  { %3724 = vmatpush3.msra.mxu0 %v4345_v9 }
  0x6c   :  { %3725 = vmatprep.subr.mxu0 %v4251_v1 }
  0x6d   :  { %3726 = vmatpush3.msra.mxu0 %v4358_v12 }
  0x6e   :  { %3741 = vmatprep.subr.mxu0 %v4251_v1  ;;  %3728 = vmatmul.mubr.msk.f32.vlgmr.msra.gmra.mxu0 %vm106_vm1, %v4464_v23 }
  0x6f   :  { %3742 = vmatpush3.msra.mxu0 %v4331_v3  ;;  %3749 = vmatprep.mubr.msk.f32.mxu0 %vm4252_vm0, %v4251_v1 }
  0x70   :  { %3743 = vmatprep.subr.mxu0 %v4251_v1 }
  0x71   :  { %3744 = vmatpush3.msra.mxu0 %v4335_v5 }
  0x72   :  { %3745 = vmatprep.subr.mxu0 %v4251_v1 }
  0x73   :  { %3746 = vmatpush3.msra.mxu0 %v4345_v9 }
  0x74   :  { %3747 = vmatprep.subr.mxu0 %v4251_v1 }
  0x75   :  { %3748 = vmatpush3.msra.mxu0 %v4358_v12 }
  0x76   :  { %3750 = vmatmul.mubr.msk.f32.vlgmr.msra.gmra.mxu0 %vm106_vm1, %v4478_v24  ;;  %3763 = vmatprep.subr.mxu0 %v4251_v1 }
  0x77   :  { %3771 = vmatprep.mubr.msk.f32.mxu0 %vm4252_vm0, %v4251_v1 }
  0xaf   :  { %v4489_v26 = vpop.permute.xlu0 %294  ;;  %v4529_v60 = vpop.permute.xlu1 %285 }
  0xfc   :  { %v176_v28 = vpop.f32.mrf.mxu0  ;;  %v249_v29 = vpop.f32.mrf.mxu1 }
  0xfd   :  { %v253_v30 = vadd.f32 %v249_v29, %v176_v28  ;;  %v297_v31 = vadd.f32 %v4489_v26, %v249_v29  ;;  %v288_v61 = vadd.f32 %v4529_v60, %v176_v28 }
  0xfe   :  { %v3608_v32 = vpop.f32.mrf.mxu1  ;;  %v3597_v33 = vpop.f32.mrf.mxu0 }
  0xff   :  { %299 = vrot.lane.b32.xlu0 %v297_v31, %s4253_s21  ;;  %v258_v43 = vadd.f32 %v4508_v41, %v253_v30 }
 0x101   :  { %v3365_v45 = vmul.f32 -1.442695, %v258_v43 }
 0x103   :  { %270 = vrot.lane.b32.xlu0 %v268_v34, %s4255_s22  ;;  %3955 = vpow2.f32 %v3365_v45 }
 0x106   :  { %v4498_v35 = vpop.f32.mrf.mxu0 }
 0x108   :  { %v3619_v36 = vpop.f32.mrf.mxu0 }
 0x109   :  { %v520_v36 = vsel %vm519_vm4, 1, %v4254_v25 }
 0x10e   :  { %v4500_v37 = vpop.f32.mrf.mxu0 }
 0x110   :  { %v3641_v38 = vpop.f32.mrf.mxu0  ;;  %v3956_v50 = vpop.eup %3955 }
 0x111   :  { %v262_v52 = vadd.f32 1.0, %v3956_v50 }
 0x113   :  { %3957 = vrcp.f32 %v262_v52  ;;  %v498_v52 = vadd.f32 %v4498_v35, %v4529_v60 }
 0x116   :  { %v4503_v40 = vpop.f32.mrf.mxu0 }
 0x118   :  { %v3663_v42 = vpop.f32.mrf.mxu0 }
 0x11e   :  { %v4511_v44 = vpop.f32.mrf.mxu0 }
 0x120   :  { %v3685_v46 = vpop.f32.mrf.mxu0  ;;  %v3958_v56 = vpop.eup %3957 }
 0x126   :  { %v4513_v47 = vpop.f32.mrf.mxu0 }
 0x128   :  { %v3707_v48 = vpop.f32.mrf.mxu0 }
 0x12e   :  { %v4515_v49 = vpop.f32.mrf.mxu0 }
 0x130   :  { %v3729_v51 = vpop.f32.mrf.mxu0 }
 0x136   :  { %v4517_v53 = vpop.f32.mrf.mxu0 }
 0x138   :  { %v3751_v54 = vpop.f32.mrf.mxu0 }
 0x171   :  { %v300_v57 = vpop.permute.xlu0 %299 }
 0x172   :  { %v302_v58 = vmul.f32 %v3958_v56, %v300_v57 }
 0x174   :  { %304 = vrot.lane.b32.xlu1 %v302_v58, %s4253_s21 }
 0x175   :  { %v4533_v3 = vpop.permute.xlu0 %270 }
 0x176   :  { %v273_v5 = vadd.f32 %v4533_v3, %v253_v30 }
 0x178   :  { %323 = vperm.xlu1 %3953, %v321_v59   ;;  %v3366_v9 = vmul.f32 -1.442695, %v273_v5 }
 0x17c   :  { %315 = vrot.lane.b32.xlu1 %v4364_v15, %s4255_s22 }
 0x1e6   :  { %v305_v62 = vpop.permute.xlu1 %304 }
 0x1e7   :  { %v307_v63 = vadd.f32 %v305_v62, %v288_v61 }
 0x1e9   :  { %3959 = vtanh.f32 %v307_v63 }
 0x1ea   :  { %3961 = vpow2.f32 %v3366_v9 }
 0x1f3   :  { %v4536_v14 = vpop.permute.xlu1 %323 }
 0x1f4   :  { %vm325_vm3 = vcmp.eq.s32.totalorder %v4536_v14, 1 }
 0x1f6   :  { %v3960_v0 = vpop.eup %3959 }
 0x1f7   :  { %311 = vrot.lane.b32.xlu0 %v3960_v0, %s4256_s1  ;;  %v3962_v11 = vpop.eup %3961  ;;  %v316_v16 = vpop.permute.xlu1 %315 }
 0x1f8   :  { %v277_v12 = vadd.f32 1.0, %v3962_v11 }
 0x1fa   :  { %3963 = vrcp.f32 %v277_v12 }
 0x207   :  { %v3964_v15 = vpop.eup %3963 }
 0x208   :  { %v309_v17 = vsub.f32 1.0, %v3964_v15  ;;  %v318_v19 = vmul.f32 %v3964_v15, %v316_v16 }
 0x269   :  { %v312_v18 = vpop.permute.xlu0 %311 }
 0x26a   :  { %v314_v28 = vmul.f32 %v312_v18, %v309_v17 }
 0x26c   :  { %v4538_v29 = vadd.f32 %v318_v19, %v314_v28 }
 0x26e   :  { %v332_v30 = vsel %vm325_vm3, %v4538_v29, %v316_v16 }
 0x26f   :  { %409 = vrot.lane.b32.xlu0 %v332_v30, %s4256_s1 }
 0x2e1   :  { %v410_v31 = vpop.permute.xlu0 %409 }
 0x2e2   :  { %3629 = vmatmul.mubr.msk.f32.vlgmr.msra.gmra.mxu1 %vm106_vm1, %v410_v31 }
 0x2e3   :  { %3643 = vmatpush3.msra.mxu1 %v4333_v4  ;;  %3650 = vmatprep.mubr.msk.f32.mxu1 %vm4252_vm0, %v4251_v1 }
 0x2e4   :  { %3644 = vmatprep.subr.mxu1 %v4251_v1 }
 0x2e5   :  { %3645 = vmatpush3.msra.mxu1 %v4339_v6 }
 0x2e6   :  { %3646 = vmatprep.subr.mxu1 %v4251_v1 }
 0x2e7   :  { %3647 = vmatpush3.msra.mxu1 %v4347_v10 }
 0x2e8   :  { %3648 = vmatprep.subr.mxu1 %v4251_v1 }
 0x2e9   :  { %3649 = vmatpush3.msra.mxu1 %v4360_v13 }
 0x2ea   :  { %3664 = vmatprep.subr.mxu1 %v4251_v1 }
 0x3a2   :  { %v479_v32 = vpop.f32.mrf.mxu1 }
 0x3a3   :  { %v499_v33 = vadd.f32 %v479_v32, %v4489_v26  ;;  %v483_v38 = vadd.f32 %v479_v32, %v4498_v35 }
 0x3a4   :  { %v3630_v34 = vpop.f32.mrf.mxu1 }
 0x3a5   :  { %501 = vrot.lane.b32.xlu1 %v499_v33, %s4253_s21  ;;  %v484_v42 = vadd.f32 %v483_v38, %v4508_v41  ;;  %v491_v58 = vadd.f32 %v483_v38, %v4533_v3  ;;  %v720_v34 = vsel %vm719_vm6, 1, %v4254_v25 }
 0x3a7   :  { %v3369_v43 = vmul.f32 -1.442695, %v484_v42  ;;  %v3370_v59 = vmul.f32 -1.442695, %v491_v58 }
 0x3a9   :  { %522 = vperm.xlu1 %3953, %v520_v36   ;;  %3965 = vpow2.f32 %v3369_v43  ;;  %v698_v43 = vadd.f32 %v4500_v37, %v4529_v60 }
 0x3b6   :  { %v3966_v45 = vpop.eup %3965 }
 0x3b7   :  { %v488_v46 = vadd.f32 1.0, %v3966_v45 }
 0x3b9   :  { %3967 = vrcp.f32 %v488_v46 }
 0x3c6   :  { %v3968_v48 = vpop.eup %3967 }
 0x417   :  { %v502_v50 = vpop.permute.xlu1 %501 }
 0x418   :  { %v504_v51 = vmul.f32 %v3968_v48, %v502_v50 }
 0x41a   :  { %506 = vrot.lane.b32.xlu0 %v504_v51, %s4253_s21 }
 0x424   :  { %v4567_v9 = vpop.permute.xlu1 %522 }
 0x425   :  { %vm524_vm5 = vcmp.eq.s32.totalorder %v4567_v9, 1 }
 0x48c   :  { %v507_v54 = vpop.permute.xlu0 %506 }
 0x48d   :  { %v509_v56 = vadd.f32 %v507_v54, %v498_v52 }
 0x48f   :  { %3969 = vtanh.f32 %v509_v56 }
 0x490   :  { %3971 = vpow2.f32 %v3370_v59 }
 0x49c   :  { %v3970_v57 = vpop.eup %3969 }
 0x49d   :  { %513 = vrot.lane.b32.xlu0 %v3970_v57, %s4256_s1  ;;  %v3972_v61 = vpop.eup %3971 }
 0x49e   :  { %v495_v62 = vadd.f32 1.0, %v3972_v61 }
 0x4a0   :  { %3973 = vrcp.f32 %v495_v62 }
 0x4ad   :  { %v3974_v63 = vpop.eup %3973 }
 0x4ae   :  { %v511_v0 = vsub.f32 1.0, %v3974_v63  ;;  %v517_v11 = vmul.f32 %v3974_v63, %v332_v30 }
 0x50f   :  { %v514_v5 = vpop.permute.xlu0 %513 }
 0x510   :  { %v516_v35 = vmul.f32 %v514_v5, %v511_v0 }
 0x512   :  { %v4569_v12 = vadd.f32 %v517_v11, %v516_v35 }
 0x514   :  { %v532_v15 = vsel %vm524_vm5, %v4569_v12, %v332_v30 }
 0x515   :  { %609 = vrot.lane.b32.xlu1 %v532_v15, %s4256_s1 }
 0x587   :  { %v610_v16 = vpop.permute.xlu1 %609 }
 0x588   :  { %3651 = vmatmul.mubr.msk.f32.vlgmr.msra.gmra.mxu1 %vm106_vm1, %v610_v16 }
 0x589   :  { %3665 = vmatpush3.msra.mxu1 %v4333_v4  ;;  %3672 = vmatprep.mubr.msk.f32.mxu1 %vm4252_vm0, %v4251_v1 }
 0x58a   :  { %3666 = vmatprep.subr.mxu1 %v4251_v1 }
 0x58b   :  { %3667 = vmatpush3.msra.mxu1 %v4339_v6 }
 0x58c   :  { %3668 = vmatprep.subr.mxu1 %v4251_v1 }
 0x58d   :  { %3669 = vmatpush3.msra.mxu1 %v4347_v10 }
 0x58e   :  { %3670 = vmatprep.subr.mxu1 %v4251_v1 }
 0x58f   :  { %3671 = vmatpush3.msra.mxu1 %v4360_v13 }
 0x590   :  { %3686 = vmatprep.subr.mxu1 %v4251_v1 }
 0x648   :  { %v679_v17 = vpop.f32.mrf.mxu1 }
 0x649   :  { %v699_v18 = vadd.f32 %v679_v17, %v4489_v26  ;;  %v683_v28 = vadd.f32 %v679_v17, %v4500_v37 }
 0x64a   :  { %v3652_v19 = vpop.f32.mrf.mxu1 }
 0x64b   :  { %701 = vrot.lane.b32.xlu0 %v699_v18, %s4253_s21  ;;  %v684_v30 = vadd.f32 %v683_v28, %v4508_v41  ;;  %v691_v50 = vadd.f32 %v683_v28, %v4533_v3 }
 0x64d   :  { %v3373_v31 = vmul.f32 -1.442695, %v684_v30  ;;  %v3374_v51 = vmul.f32 -1.442695, %v691_v50 }
 0x64f   :  { %3975 = vpow2.f32 %v3373_v31  ;;  %722 = vperm.xlu0 %3954, %v720_v34  }
 0x65c   :  { %v3976_v32 = vpop.eup %3975 }
 0x65d   :  { %v688_v33 = vadd.f32 1.0, %v3976_v32 }
 0x65f   :  { %3977 = vrcp.f32 %v688_v33  ;;  %v898_v33 = vadd.f32 %v4503_v40, %v4529_v60 }
 0x66c   :  { %v3978_v36 = vpop.eup %3977 }
 0x6bd   :  { %v702_v38 = vpop.permute.xlu0 %701 }
 0x6be   :  { %v704_v42 = vmul.f32 %v3978_v36, %v702_v38 }
 0x6c0   :  { %706 = vrot.lane.b32.xlu1 %v704_v42, %s4253_s21 }
 0x6ca   :  { %v4598_v58 = vpop.permute.xlu0 %722 }
 0x6cb   :  { %vm724_vm7 = vcmp.eq.s32.totalorder %v4598_v58, 1 }
 0x732   :  { %v707_v45 = vpop.permute.xlu1 %706 }
 0x733   :  { %v709_v46 = vadd.f32 %v707_v45, %v698_v43 }
 0x735   :  { %3979 = vtanh.f32 %v709_v46 }
 0x736   :  { %3981 = vpow2.f32 %v3374_v51 }
 0x742   :  { %v3980_v48 = vpop.eup %3979 }
 0x743   :  { %713 = vrot.lane.b32.xlu1 %v3980_v48, %s4256_s1  ;;  %v3982_v52 = vpop.eup %3981 }
 0x744   :  { %v695_v54 = vadd.f32 1.0, %v3982_v52 }
 0x746   :  { %3983 = vrcp.f32 %v695_v54 }
 0x753   :  { %v3984_v56 = vpop.eup %3983 }
 0x754   :  { %v711_v57 = vsub.f32 1.0, %v3984_v56  ;;  %v717_v61 = vmul.f32 %v3984_v56, %v532_v15 }
 0x7b5   :  { %v714_v59 = vpop.permute.xlu1 %713 }
 0x7b6   :  { %v716_v37 = vmul.f32 %v714_v59, %v711_v57 }
 0x7b8   :  { %v4601_v62 = vadd.f32 %v717_v61, %v716_v37 }
 0x7ba   :  { %v732_v63 = vsel %vm724_vm7, %v4601_v62, %v532_v15  ;;  %v920_v15 = vsel %vm919_vm8, 1, %v4254_v25 }
 0x7bb   :  { %809 = vrot.lane.b32.xlu1 %v732_v63, %s4256_s1 }
 0x82d   :  { %v810_v0 = vpop.permute.xlu1 %809 }
 0x82e   :  { %3673 = vmatmul.mubr.msk.f32.vlgmr.msra.gmra.mxu1 %vm106_vm1, %v810_v0  ;;  %v1120_v0 = vsel %vm1119_vm10, 1, %v4254_v25 }
 0x82f   :  { %3687 = vmatpush3.msra.mxu1 %v4333_v4  ;;  %3694 = vmatprep.mubr.msk.f32.mxu1 %vm4252_vm0, %v4251_v1 }
 0x830   :  { %3688 = vmatprep.subr.mxu1 %v4251_v1 }
 0x831   :  { %3689 = vmatpush3.msra.mxu1 %v4339_v6 }
 0x832   :  { %3690 = vmatprep.subr.mxu1 %v4251_v1 }
 0x833   :  { %3691 = vmatpush3.msra.mxu1 %v4347_v10 }
 0x834   :  { %3692 = vmatprep.subr.mxu1 %v4251_v1 }
 0x835   :  { %3693 = vmatpush3.msra.mxu1 %v4360_v13 }
 0x836   :  { %3708 = vmatprep.subr.mxu1 %v4251_v1 }
 0x8ee   :  { %v879_v5 = vpop.f32.mrf.mxu1 }
 0x8ef   :  { %v899_v11 = vadd.f32 %v879_v5, %v4489_v26  ;;  %v883_v16 = vadd.f32 %v879_v5, %v4503_v40 }
 0x8f0   :  { %v3674_v35 = vpop.f32.mrf.mxu1 }
 0x8f1   :  { %901 = vrot.lane.b32.xlu0 %v899_v11, %s4253_s21  ;;  %v884_v17 = vadd.f32 %v883_v16, %v4508_v41  ;;  %v891_v42 = vadd.f32 %v883_v16, %v4533_v3 }
 0x8f3   :  { %v3377_v18 = vmul.f32 -1.442695, %v884_v17  ;;  %v3378_v43 = vmul.f32 -1.442695, %v891_v42 }
 0x8f5   :  { %922 = vperm.xlu0 %3954, %v920_v15   ;;  %3985 = vpow2.f32 %v3377_v18 }
 0x902   :  { %v3986_v19 = vpop.eup %3985 }
 0x903   :  { %v888_v28 = vadd.f32 1.0, %v3986_v19 }
 0x905   :  { %3987 = vrcp.f32 %v888_v28  ;;  %v1098_v28 = vadd.f32 %v4511_v44, %v4529_v60 }
 0x912   :  { %v3988_v30 = vpop.eup %3987 }
 0x963   :  { %v902_v31 = vpop.permute.xlu0 %901 }
 0x964   :  { %v904_v32 = vmul.f32 %v3988_v30, %v902_v31 }
 0x966   :  { %906 = vrot.lane.b32.xlu1 %v904_v32, %s4253_s21 }
 0x970   :  { %v4629_v52 = vpop.permute.xlu0 %922 }
 0x971   :  { %vm924_vm9 = vcmp.eq.s32.totalorder %v4629_v52, 1 }
 0x9d8   :  { %v907_v34 = vpop.permute.xlu1 %906 }
 0x9d9   :  { %v909_v36 = vadd.f32 %v907_v34, %v898_v33 }
 0x9db   :  { %3989 = vtanh.f32 %v909_v36 }
 0x9dc   :  { %3991 = vpow2.f32 %v3378_v43 }
 0x9e8   :  { %v3990_v38 = vpop.eup %3989 }
 0x9e9   :  { %913 = vrot.lane.b32.xlu1 %v3990_v38, %s4256_s1  ;;  %v3992_v45 = vpop.eup %3991 }
 0x9ea   :  { %v895_v46 = vadd.f32 1.0, %v3992_v45 }
 0x9ec   :  { %3993 = vrcp.f32 %v895_v46 }
 0x9f9   :  { %v3994_v48 = vpop.eup %3993 }
 0x9fa   :  { %v911_v50 = vsub.f32 1.0, %v3994_v48  ;;  %v917_v54 = vmul.f32 %v3994_v48, %v732_v63 }
 0xa5b   :  { %v914_v51 = vpop.permute.xlu1 %913 }
 0xa5c   :  { %v916_v40 = vmul.f32 %v914_v51, %v911_v50 }
 0xa5e   :  { %v4631_v56 = vadd.f32 %v917_v54, %v916_v40 }
 0xa60   :  { %v932_v57 = vsel %vm924_vm9, %v4631_v56, %v732_v63 }
 0xa61   :  { %1009 = vrot.lane.b32.xlu0 %v932_v57, %s4256_s1 }
 0xad3   :  { %v1010_v59 = vpop.permute.xlu0 %1009 }
 0xad4   :  { %3695 = vmatmul.mubr.msk.f32.vlgmr.msra.gmra.mxu1 %vm106_vm1, %v1010_v59 }
 0xad5   :  { %3709 = vmatpush3.msra.mxu1 %v4333_v4  ;;  %3716 = vmatprep.mubr.msk.f32.mxu1 %vm4252_vm0, %v4251_v1 }
 0xad6   :  { %3710 = vmatprep.subr.mxu1 %v4251_v1 }
 0xad7   :  { %3711 = vmatpush3.msra.mxu1 %v4339_v6 }
 0xad8   :  { %3712 = vmatprep.subr.mxu1 %v4251_v1 }
 0xad9   :  { %3713 = vmatpush3.msra.mxu1 %v4347_v10 }
 0xada   :  { %3714 = vmatprep.subr.mxu1 %v4251_v1 }
 0xadb   :  { %3715 = vmatpush3.msra.mxu1 %v4360_v13 }
 0xadc   :  { %3730 = vmatprep.subr.mxu1 %v4251_v1 }
 0xb94   :  { %v1079_v61 = vpop.f32.mrf.mxu1 }
 0xb95   :  { %v1099_v37 = vadd.f32 %v1079_v61, %v4489_v26  ;;  %v1083_v5 = vadd.f32 %v1079_v61, %v4511_v44  ;;  %v1320_v61 = vsel %vm1319_vm12, 1, %v4254_v25 }
 0xb96   :  { %v3696_v63 = vpop.f32.mrf.mxu1 }
 0xb97   :  { %1101 = vrot.lane.b32.xlu1 %v1099_v37, %s4253_s21  ;;  %v1084_v11 = vadd.f32 %v1083_v5, %v4508_v41  ;;  %v1091_v33 = vadd.f32 %v1083_v5, %v4533_v3 }
 0xb99   :  { %v3381_v35 = vmul.f32 -1.442695, %v1084_v11  ;;  %v3382_v34 = vmul.f32 -1.442695, %v1091_v33 }
 0xb9b   :  { %1122 = vperm.xlu1 %3953, %v1120_v0   ;;  %3995 = vpow2.f32 %v3381_v35 }
 0xba8   :  { %v3996_v15 = vpop.eup %3995 }
 0xba9   :  { %v1088_v16 = vadd.f32 1.0, %v3996_v15 }
 0xbab   :  { %3997 = vrcp.f32 %v1088_v16 }
 0xbb8   :  { %v3998_v17 = vpop.eup %3997 }
 0xc09   :  { %v1102_v18 = vpop.permute.xlu1 %1101 }
 0xc0a   :  { %v1104_v19 = vmul.f32 %v3998_v17, %v1102_v18  ;;  %v1298_v17 = vadd.f32 %v4513_v47, %v4529_v60 }
 0xc0c   :  { %1106 = vrot.lane.b32.xlu0 %v1104_v19, %s4253_s21 }
 0xc16   :  { %v4660_v46 = vpop.permute.xlu1 %1122 }
 0xc17   :  { %vm1124_vm11 = vcmp.eq.s32.totalorder %v4660_v46, 1 }
 0xc7e   :  { %v1107_v30 = vpop.permute.xlu0 %1106 }
 0xc7f   :  { %v1109_v31 = vadd.f32 %v1107_v30, %v1098_v28 }
 0xc81   :  { %3999 = vtanh.f32 %v1109_v31 }
 0xc82   :  { %4001 = vpow2.f32 %v3382_v34 }
 0xc8e   :  { %v4000_v32 = vpop.eup %3999 }
 0xc8f   :  { %1113 = vrot.lane.b32.xlu0 %v4000_v32, %s4256_s1  ;;  %v4002_v36 = vpop.eup %4001 }
 0xc90   :  { %v1095_v38 = vadd.f32 1.0, %v4002_v36 }
 0xc92   :  { %4003 = vrcp.f32 %v1095_v38 }
 0xc9f   :  { %v4004_v42 = vpop.eup %4003 }
 0xca0   :  { %v1111_v43 = vsub.f32 1.0, %v4004_v42  ;;  %v1117_v48 = vmul.f32 %v4004_v42, %v932_v57 }
 0xd01   :  { %v1114_v45 = vpop.permute.xlu0 %1113 }
 0xd02   :  { %v1116_v44 = vmul.f32 %v1114_v45, %v1111_v43 }
 0xd04   :  { %v4662_v50 = vadd.f32 %v1117_v48, %v1116_v44 }
 0xd06   :  { %v1132_v51 = vsel %vm1124_vm11, %v4662_v50, %v932_v57 }
 0xd07   :  { %1209 = vrot.lane.b32.xlu1 %v1132_v51, %s4256_s1 }
 0xd79   :  { %v1210_v54 = vpop.permute.xlu1 %1209 }
 0xd7a   :  { %3717 = vmatmul.mubr.msk.f32.vlgmr.msra.gmra.mxu1 %vm106_vm1, %v1210_v54 }
 0xd7b   :  { %3731 = vmatpush3.msra.mxu1 %v4333_v4  ;;  %3738 = vmatprep.mubr.msk.f32.mxu1 %vm4252_vm0, %v4251_v1 }
 0xd7c   :  { %3732 = vmatprep.subr.mxu1 %v4251_v1 }
 0xd7d   :  { %3733 = vmatpush3.msra.mxu1 %v4339_v6 }
 0xd7e   :  { %3734 = vmatprep.subr.mxu1 %v4251_v1 }
 0xd7f   :  { %3735 = vmatpush3.msra.mxu1 %v4347_v10 }
 0xd80   :  { %3736 = vmatprep.subr.mxu1 %v4251_v1 }
 0xd81   :  { %3737 = vmatpush3.msra.mxu1 %v4360_v13 }
 0xd82   :  { %3752 = vmatprep.subr.mxu1 %v4251_v1 }
 0xe3a   :  { %v1279_v40 = vpop.f32.mrf.mxu1 }
 0xe3b   :  { %v1299_v57 = vadd.f32 %v1279_v40, %v4489_v26  ;;  %v1283_v37 = vadd.f32 %v1279_v40, %v4513_v47 }
 0xe3c   :  { %v3718_v59 = vpop.f32.mrf.mxu1 }
 0xe3d   :  { %1301 = vrot.lane.b32.xlu0 %v1299_v57, %s4253_s21  ;;  %v1284_v63 = vadd.f32 %v1283_v37, %v4508_v41  ;;  %v1291_v30 = vadd.f32 %v1283_v37, %v4533_v3 }
 0xe3f   :  { %v3385_v0 = vmul.f32 -1.442695, %v1284_v63  ;;  %v3386_v31 = vmul.f32 -1.442695, %v1291_v30  ;;  %v4733_v30 = vld [vmem:[#allocation7 + $0x28] sm:$0xff] }
 0xe41   :  { %1322 = vperm.xlu0 %3954, %v1320_v61   ;;  %4005 = vpow2.f32 %v3385_v0  ;;  %v1498_v0 = vadd.f32 %v4515_v49, %v4529_v60 }
 0xe4e   :  { %v4006_v5 = vpop.eup %4005 }
 0xe4f   :  { %v1288_v11 = vadd.f32 1.0, %v4006_v5 }
 0xe51   :  { %4007 = vrcp.f32 %v1288_v11 }
 0xe5e   :  { %v4008_v35 = vpop.eup %4007 }
 0xeaf   :  { %v1302_v15 = vpop.permute.xlu0 %1301 }
 0xeb0   :  { %v1304_v16 = vmul.f32 %v4008_v35, %v1302_v15 }
 0xeb2   :  { %1306 = vrot.lane.b32.xlu1 %v1304_v16, %s4253_s21 }
 0xebc   :  { %v4691_v42 = vpop.permute.xlu0 %1322 }
 0xebd   :  { %vm1324_vm13 = vcmp.eq.s32.totalorder %v4691_v42, 1 }
 0xf24   :  { %v1307_v18 = vpop.permute.xlu1 %1306 }
 0xf25   :  { %v1309_v19 = vadd.f32 %v1307_v18, %v1298_v17 }
 0xf27   :  { %4009 = vtanh.f32 %v1309_v19  ;;  %v4725_v19 = vld [vmem:[#allocation7 + $0x38] sm:$0xff] }
 0xf28   :  { %4011 = vpow2.f32 %v3386_v31  ;;  %3764 = vmatpush3.msra.mxu0 %v4725_v19 }
 0xf29   :  { %3765 = vmatprep.subr.mxu0 %v4251_v1 }
 0xf34   :  { %v4010_v28 = vpop.eup %4009 }
 0xf35   :  { %1313 = vrot.lane.b32.xlu1 %v4010_v28, %s4256_s1  ;;  %v4012_v32 = vpop.eup %4011 }
 0xf36   :  { %v1295_v33 = vadd.f32 1.0, %v4012_v32  ;;  %v4737_v32 = vld [vmem:[#allocation7 + $0x20] sm:$0xff] }
 0xf38   :  { %4013 = vrcp.f32 %v1295_v33 }
 0xf45   :  { %v4014_v34 = vpop.eup %4013 }
 0xf46   :  { %v1311_v36 = vsub.f32 1.0, %v4014_v34  ;;  %v1317_v43 = vmul.f32 %v4014_v34, %v1132_v51 }
 0xfa7   :  { %v1314_v38 = vpop.permute.xlu1 %1313 }
 0xfa8   :  { %v1316_v47 = vmul.f32 %v1314_v38, %v1311_v36 }
 0xfaa   :  { %v4693_v45 = vadd.f32 %v1317_v43, %v1316_v47  ;;  %v4748_v43 = vld [vmem:[%s5226_s5 + $0x4] sm:$0xf]  ;;  %s4257_s5 = smov [#allocation10]  }
 0xfab   :  { %v1921_v47 = vrot.slane %v4748_v43, %v291_v7  ;;  %s3332_s27 = sshll.u32 %s4257_s5, 4  ;;  %s3333_s27 = int_to_ptr.vmem [resolvable:$true] %s3332_s27 }
 0xfac   :  { %v4699_v48 = vsel %vm1324_vm13, %v4693_v45, %v1132_v51  ;;  %s4195_s9 = scalar_lea.vmem %s3333_s27, 1024  ;;  %p4200_p7 = scmp.lt.s32.totalorder %s3333_s27, %s3333_s27 }
 0xfad   :  { %1409 = vrot.lane.b32.xlu0 %v4699_v48, %s4256_s1  ;;  %p4196_p6 = scmp.ne.s32.totalorder %s3333_s27, %s4195_s9  ;;  %p4201_p8 = scmp.lt.s32.totalorder %s4195_s9, %s4195_s9 }
 0xfaf   :  { %p4202_p9 = por %p4201_p8, %p4200_p7 }
 0xfb1   :  { %p4203_p10 = pnand %p4202_p9, %p4196_p6 }
0x101f   :  { %v1410_v44 = vpop.permute.xlu0 %1409 }
0x1020   :  { %3739 = vmatmul.mubr.msk.f32.vlgmr.msra.gmra.mxu1 %vm106_vm1, %v1410_v44 }
0x1021   :  { %3753 = vmatpush3.msra.mxu1 %v4333_v4  ;;  %3760 = vmatprep.mubr.msk.f32.mxu1 %vm4252_vm0, %v4251_v1 }
0x1022   :  { %3754 = vmatprep.subr.mxu1 %v4251_v1 }
0x1023   :  { %3755 = vmatpush3.msra.mxu1 %v4339_v6  ;;  %v1520_v6 = vsel %vm1519_vm14, 1, %v4254_v25 }
0x1024   :  { %3756 = vmatprep.subr.mxu1 %v4251_v1 }
0x1025   :  { %3757 = vmatpush3.msra.mxu1 %v4347_v10 }
0x1026   :  { %3758 = vmatprep.subr.mxu1 %v4251_v1 }
0x1027   :  { %3759 = vmatpush3.msra.mxu1 %v4360_v13 }
0x1028   :  { %3774 = vmatprep.subr.mxu1 %v4251_v1 }
0x10e0   :  { %v1479_v51 = vpop.f32.mrf.mxu1 }
0x10e1   :  { %v1499_v4 = vadd.f32 %v1479_v51, %v4489_v26  ;;  %v1483_v40 = vadd.f32 %v1479_v51, %v4515_v49  ;;  %v4729_v49 = vld [vmem:[#allocation7 + $0x30] sm:$0xff] }
0x10e2   :  { %v3740_v54 = vpop.f32.mrf.mxu1  ;;  %3766 = vmatpush3.msra.mxu0 %v4729_v49 }
0x10e3   :  { %1501 = vrot.lane.b32.xlu1 %v1499_v4, %s4253_s21  ;;  %v1484_v10 = vadd.f32 %v1483_v40, %v4508_v41  ;;  %v1491_v15 = vadd.f32 %v1483_v40, %v4533_v3  ;;  %3767 = vmatprep.subr.mxu0 %v4251_v1  ;;  %v2734_v54 = vld [vmem:[#allocation2 + $0x10] sm:$0xff]  ;;  %v3122_v40 = vld [vmem:[#allocation2] sm:$0xff] }
0x10e4   :  { %3768 = vmatpush3.msra.mxu0 %v4733_v30 }
0x10e5   :  { %v3389_v57 = vmul.f32 -1.442695, %v1484_v10  ;;  %v3390_v16 = vmul.f32 -1.442695, %v1491_v15  ;;  %3769 = vmatprep.subr.mxu0 %v4251_v1 }
0x10e6   :  { %3770 = vmatpush3.msra.mxu0 %v4737_v32 }
0x10e7   :  { %1522 = vperm.xlu1 %3953, %v1520_v6   ;;  %4015 = vpow2.f32 %v3389_v57  ;;  %3772 = vmatmul.mubr.msk.f32.vlgmr.msra.gmra.mxu0 %vm106_vm1, %v4478_v24  ;;  %v1912_v24 = vrot.slane %v4748_v43, %v282_v8  ;;  %v1897_v8 = vrot.slane %v4748_v43, %v267_v27  ;;  %v4845_v27 = vld [vmem:[#allocation8 + $0x20] sm:$0xff]  ;;  %v2928_v6 = vld [vmem:[#allocation2 + $0x8] sm:$0xff] }
0x10e8   :  { %3785 = vmatprep.subr.mxu0 %v4251_v1  ;;  %3793 = vmatprep.mubr.msk.f32.mxu0 %vm4252_vm0, %v4251_v1 }
0x10e9   :  { %3786 = vmatpush3.msra.mxu0 %v4725_v19 }
0x10ea   :  { %3787 = vmatprep.subr.mxu0 %v4251_v1 }
0x10eb   :  { %3788 = vmatpush3.msra.mxu0 %v4729_v49 }
0x10ec   :  { %3789 = vmatprep.subr.mxu0 %v4251_v1 }
0x10ed   :  { %3790 = vmatpush3.msra.mxu0 %v4733_v30 }
0x10ee   :  { %3791 = vmatprep.subr.mxu0 %v4251_v1 }
0x10ef   :  { %3792 = vmatpush3.msra.mxu0 %v4737_v32 }
0x10f0   :  { %3807 = vmatprep.subr.mxu0 %v4251_v1  ;;  %3794 = vmatmul.mubr.msk.f32.vlgmr.msra.gmra.mxu0 %vm106_vm1, %v4464_v23  ;;  %v4841_v23 = vld [vmem:[#allocation8 + $0x28] sm:$0xff] }
0x10f1   :  { %3808 = vmatpush3.msra.mxu0 %v4725_v19  ;;  %3815 = vmatprep.mubr.msk.f32.mxu0 %vm4252_vm0, %v4251_v1 }
0x10f2   :  { %3809 = vmatprep.subr.mxu0 %v4251_v1 }
0x10f3   :  { %3810 = vmatpush3.msra.mxu0 %v4729_v49 }
0x10f4   :  { %v4016_v13 = vpop.eup %4015  ;;  %3811 = vmatprep.subr.mxu0 %v4251_v1 }
0x10f5   :  { %v1488_v59 = vadd.f32 1.0, %v4016_v13  ;;  %3812 = vmatpush3.msra.mxu0 %v4733_v30 }
0x10f6   :  { %3813 = vmatprep.subr.mxu0 %v4251_v1 }
0x10f7   :  { %4017 = vrcp.f32 %v1488_v59  ;;  %3814 = vmatpush3.msra.mxu0 %v4737_v32 }
0x10f8   :  { %3829 = vmatprep.subr.mxu0 %v4251_v1  ;;  %3816 = vmatmul.mubr.msk.f32.vlgmr.msra.gmra.mxu0 %vm106_vm1, %v4452_v22  ;;  %v4835_v22 = vld [vmem:[#allocation8 + $0x30] sm:$0xff] }
0x10f9   :  { %3830 = vmatpush3.msra.mxu0 %v4725_v19  ;;  %3837 = vmatprep.mubr.msk.f32.mxu0 %vm4252_vm0, %v4251_v1 }
0x10fa   :  { %3831 = vmatprep.subr.mxu0 %v4251_v1 }
0x10fb   :  { %3832 = vmatpush3.msra.mxu0 %v4729_v49 }
0x10fc   :  { %3833 = vmatprep.subr.mxu0 %v4251_v1 }
0x10fd   :  { %3834 = vmatpush3.msra.mxu0 %v4733_v30 }
0x10fe   :  { %3835 = vmatprep.subr.mxu0 %v4251_v1 }
0x10ff   :  { %3836 = vmatpush3.msra.mxu0 %v4737_v32 }
0x1100   :  { %3851 = vmatprep.subr.mxu0 %v4251_v1  ;;  %3838 = vmatmul.mubr.msk.f32.vlgmr.msra.gmra.mxu0 %vm106_vm1, %v4438_v21 }
0x1101   :  { %3852 = vmatpush3.msra.mxu0 %v4725_v19  ;;  %3859 = vmatprep.mubr.msk.f32.mxu0 %vm4252_vm0, %v4251_v1 }
0x1102   :  { %3853 = vmatprep.subr.mxu0 %v4251_v1 }
0x1103   :  { %3854 = vmatpush3.msra.mxu0 %v4729_v49 }
0x1104   :  { %v4018_v61 = vpop.eup %4017  ;;  %3855 = vmatprep.subr.mxu0 %v4251_v1 }
0x1105   :  { %3856 = vmatpush3.msra.mxu0 %v4733_v30 }
0x1106   :  { %3857 = vmatprep.subr.mxu0 %v4251_v1 }
0x1107   :  { %3858 = vmatpush3.msra.mxu0 %v4737_v32 }
0x1108   :  { %3873 = vmatprep.subr.mxu0 %v4251_v1  ;;  %3860 = vmatmul.mubr.msk.f32.vlgmr.msra.gmra.mxu0 %vm106_vm1, %v4425_v20  ;;  %v4832_v20 = vld [vmem:[#allocation8 + $0x38] sm:$0xff] }
0x1109   :  { %3874 = vmatpush3.msra.mxu0 %v4725_v19  ;;  %3881 = vmatprep.mubr.msk.f32.mxu0 %vm4252_vm0, %v4251_v1 }
0x110a   :  { %3875 = vmatprep.subr.mxu0 %v4251_v1 }
0x110b   :  { %3876 = vmatpush3.msra.mxu0 %v4729_v49 }
0x110c   :  { %3877 = vmatprep.subr.mxu0 %v4251_v1 }
0x110d   :  { %3878 = vmatpush3.msra.mxu0 %v4733_v30 }
0x110e   :  { %3879 = vmatprep.subr.mxu0 %v4251_v1 }
0x110f   :  { %3880 = vmatpush3.msra.mxu0 %v4737_v32 }
0x1110   :  { %3895 = vmatprep.subr.mxu0 %v4251_v1  ;;  %3882 = vmatmul.mubr.msk.f32.vlgmr.msra.gmra.mxu0 %vm106_vm1, %v2734_v54 }
0x1111   :  { %3896 = vmatpush3.msra.mxu0 %v4725_v19  ;;  %3903 = vmatprep.mubr.msk.f32.mxu0 %vm4252_vm0, %v4251_v1 }
0x1112   :  { %3897 = vmatprep.subr.mxu0 %v4251_v1 }
0x1113   :  { %3898 = vmatpush3.msra.mxu0 %v4729_v49 }
0x1114   :  { %3899 = vmatprep.subr.mxu0 %v4251_v1 }
0x1115   :  { %3900 = vmatpush3.msra.mxu0 %v4733_v30 }
0x1116   :  { %3901 = vmatprep.subr.mxu0 %v4251_v1 }
0x1117   :  { %3902 = vmatpush3.msra.mxu0 %v4737_v32 }
0x1118   :  { %3917 = vmatprep.subr.mxu0 %v4251_v1  ;;  %3904 = vmatmul.mubr.msk.f32.vlgmr.msra.gmra.mxu0 %vm106_vm1, %v2928_v6 }
0x1119   :  { %3918 = vmatpush3.msra.mxu0 %v4725_v19  ;;  %3925 = vmatprep.mubr.msk.f32.mxu0 %vm4252_vm0, %v4251_v1 }
0x111a   :  { %3919 = vmatprep.subr.mxu0 %v4251_v1 }
0x111b   :  { %3920 = vmatpush3.msra.mxu0 %v4729_v49 }
0x111c   :  { %3921 = vmatprep.subr.mxu0 %v4251_v1 }
0x111d   :  { %3922 = vmatpush3.msra.mxu0 %v4733_v30 }
0x111e   :  { %3923 = vmatprep.subr.mxu0 %v4251_v1 }
0x111f   :  { %3924 = vmatpush3.msra.mxu0 %v4737_v32 }
0x1120   :  { %3926 = vmatmul.mubr.msk.f32.vlgmr.msra.gmra.mxu0 %vm106_vm1, %v3122_v40 }
0x1155   :  { %v1502_v37 = vpop.permute.xlu1 %1501 }
0x1156   :  { %v1504_v63 = vmul.f32 %v4018_v61, %v1502_v37 }
0x1158   :  { %1506 = vrot.lane.b32.xlu0 %v1504_v63, %s4253_s21 }
0x1162   :  { %v4740_v34 = vpop.permute.xlu1 %1522 }
0x1163   :  { %vm1524_vm15 = vcmp.eq.s32.totalorder %v4740_v34, 1 }
0x11a7   :  { %v4865_v51 = vpop.f32.mrf.mxu0 }
0x11a9   :  { %v3773_v4 = vpop.f32.mrf.mxu0 }
0x11b0   :  { %v4893_v61 = vpop.f32.mrf.mxu0 }
0x11ca   :  { %v1507_v5 = vpop.permute.xlu0 %1506 }
0x11cb   :  { %v1509_v11 = vadd.f32 %v1507_v5, %v1498_v0  ;;  %v3795_v0 = vpop.f32.mrf.mxu0 }
0x11cd   :  { %4019 = vtanh.f32 %v1509_v11  ;;  %v4897_v5 = vpop.f32.mrf.mxu0 }
0x11ce   :  { %4021 = vpow2.f32 %v3390_v16 }
0x11cf   :  { %v3817_v11 = vpop.f32.mrf.mxu0 }
0x11da   :  { %v4020_v35 = vpop.eup %4019 }
0x11db   :  { %1513 = vrot.lane.b32.xlu0 %v4020_v35, %s4256_s1  ;;  %v4022_v17 = vpop.eup %4021  ;;  %v4899_v35 = vpop.f32.mrf.mxu0 }
0x11dc   :  { %v1495_v18 = vadd.f32 1.0, %v4022_v17 }
0x11dd   :  { %v3839_v15 = vpop.f32.mrf.mxu0 }
0x11de   :  { %4023 = vrcp.f32 %v1495_v18  ;;  %v4906_v18 = vrot.slane %v4748_v43, %v256_v39 }
0x11df   :  { %1923 = vrot.lane.b32.xlu0 %v1921_v47, %s4253_s21  ;;  %v4901_v16 = vpop.f32.mrf.mxu0 }
0x11e1   :  { %v3861_v17 = vpop.f32.mrf.mxu0 }
0x11e3   :  { %1914 = vrot.lane.b32.xlu0 %v1912_v24, %s4253_s21  ;;  %v4910_v30 = vpop.f32.mrf.mxu0 }
0x11e7   :  { %1899 = vrot.lane.b32.xlu0 %v1897_v8, %s4255_s22  ;;  %v1720_v8 = vsel %vm1719_vm2, 1, %v4254_v25 }
0x11eb   :  { %v4024_v28 = vpop.eup %4023 }
0x11ec   :  { %v1511_v31 = vsub.f32 1.0, %v4024_v28  ;;  %v1517_v36 = vmul.f32 %v4024_v28, %v4699_v48 }
0x124d   :  { %v1514_v33 = vpop.permute.xlu0 %1513 }
0x124e   :  { %v1516_v38 = vmul.f32 %v1514_v33, %v1511_v31  ;;  %v3883_v31 = vpop.f32.mrf.mxu0 }
0x1250   :  { %v4755_v44 = vadd.f32 %v1517_v36, %v1516_v38  ;;  %v4912_v32 = vpop.f32.mrf.mxu0 }
0x1251   :  { %v4891_v13 = vpop.permute.xlu0 %1923 }
0x1252   :  { %v4770_v7 = vsel %vm1524_vm15, %v4755_v44, %v4699_v48  ;;  %v4848_v48 = vld [vmem:[#allocation5 + $0x8] sm:$0xff]  ;;  %v3905_v36 = vpop.f32.mrf.mxu0 }
0x1253   :  { %1609 = vrot.lane.b32.xlu1 %v4770_v7, %s4256_s1 }
0x1254   :  { %v4914_v47 = vpop.f32.mrf.mxu0 }
0x1256   :  { %v3927_v2 = vpop.f32.mrf.mxu0 }
0x12c5   :  { %v1610_v21 = vpop.permute.xlu1 %1609 }
0x12c6   :  { %3761 = vmatmul.mubr.msk.f32.vlgmr.msra.gmra.mxu1 %vm106_vm1, %v1610_v21  ;;  %v4921_v21 = vpop.permute.xlu0 %1914 }
0x12c7   :  { %3775 = vmatpush3.msra.mxu1 %v4832_v20  ;;  %3782 = vmatprep.mubr.msk.f32.mxu1 %vm4252_vm0, %v4251_v1  ;;  %v1917_v4 = vadd.f32 %v4921_v21, %v4865_v51 }
0x12c8   :  { %3776 = vmatprep.subr.mxu1 %v4251_v1 }
0x12c9   :  { %3777 = vmatpush3.msra.mxu1 %v4835_v22 }
0x12ca   :  { %3778 = vmatprep.subr.mxu1 %v4251_v1  ;;  %v4926_v55 = vpop.permute.xlu0 %1899 }
0x12cb   :  { %3779 = vmatpush3.msra.mxu1 %v4841_v23 }
0x12cc   :  { %3780 = vmatprep.subr.mxu1 %v4251_v1 }
0x12cd   :  { %3781 = vmatpush3.msra.mxu1 %v4845_v27 }
0x12ce   :  { %3783 = vmatmul.mubr.msk.f32.vlgmr.msra.gmra.mxu1 %vm106_vm1, %v4848_v48  ;;  %3796 = vmatprep.subr.mxu1 %v4251_v1 }
0x12cf   :  { %3797 = vmatpush3.msra.mxu1 %v4832_v20  ;;  %3804 = vmatprep.mubr.msk.f32.mxu1 %vm4252_vm0, %v4251_v1 }
0x12d0   :  { %3798 = vmatprep.subr.mxu1 %v4251_v1 }
0x12d1   :  { %3799 = vmatpush3.msra.mxu1 %v4835_v22 }
0x12d2   :  { %3800 = vmatprep.subr.mxu1 %v4251_v1 }
0x12d3   :  { %3801 = vmatpush3.msra.mxu1 %v4841_v23 }
0x12d4   :  { %3802 = vmatprep.subr.mxu1 %v4251_v1 }
0x12d5   :  { %3803 = vmatpush3.msra.mxu1 %v4845_v27 }
0x12d6   :  { %3818 = vmatprep.subr.mxu1 %v4251_v1 }
0x1386   :  { %v4889_v10 = vpop.f32.mrf.mxu1 }
0x1388   :  { %v3762_v57 = vpop.f32.mrf.mxu1 }
0x138e   :  { %v1878_v59 = vpop.f32.mrf.mxu1 }
0x138f   :  { %v1926_v37 = vadd.f32 %v4891_v13, %v1878_v59  ;;  %v1882_v19 = vadd.f32 %v1878_v59, %v4865_v51 }
0x1390   :  { %v3784_v63 = vpop.f32.mrf.mxu1 }
0x1391   :  { %1928 = vrot.lane.b32.xlu1 %v1926_v37, %s4253_s21  ;;  %v1887_v49 = vadd.f32 %v4906_v18, %v1882_v19  ;;  %v1902_v57 = vadd.f32 %v4926_v55, %v1882_v19 }
0x1393   :  { %v3397_v28 = vmul.f32 -1.442695, %v1887_v49  ;;  %v3398_v25 = vmul.f32 -1.442695, %v1902_v57 }
0x1395   :  { %4025 = vpow2.f32 %v3397_v28 }
0x13a2   :  { %v4026_v33 = vpop.eup %4025 }
0x13a3   :  { %v1891_v38 = vadd.f32 1.0, %v4026_v33 }
0x13a5   :  { %4027 = vrcp.f32 %v1891_v38 }
0x13b2   :  { %v4028_v39 = vpop.eup %4027 }
0x1403   :  { %v1929_v43 = vpop.permute.xlu1 %1928 }
0x1404   :  { %v1931_v24 = vmul.f32 %v4028_v39, %v1929_v43 }
0x1406   :  { %1933 = vrot.lane.b32.xlu1 %v1931_v24, %s4253_s21 }
0x140a   :  { %1722 = vperm.xlu1 %3953, %v1720_v8  }
0x140e   :  { %1944 = vrot.lane.b32.xlu1 %v4848_v48, %s4255_s22 }
0x1478   :  { %v1934_v54 = vpop.permute.xlu1 %1933 }
0x1479   :  { %v1936_v6 = vadd.f32 %v1934_v54, %v1917_v4 }
0x147b   :  { %4029 = vtanh.f32 %v1936_v6  ;;  %v2122_v6 = vadd.f32 %v4893_v61, %v4921_v21 }
0x147c   :  { %4031 = vpow2.f32 %v3398_v25 }
0x1485   :  { %v4929_v48 = vpop.permute.xlu1 %1722 }
0x1486   :  { %vm1724_vm4 = vcmp.eq.s32.totalorder %v4929_v48, 1 }
0x1488   :  { %v4030_v40 = vpop.eup %4029 }
0x1489   :  { %1940 = vrot.lane.b32.xlu0 %v4030_v40, %s4256_s1  ;;  %v4032_v59 = vpop.eup %4031  ;;  %v1945_v0 = vpop.permute.xlu1 %1944 }
0x148a   :  { %v1906_v37 = vadd.f32 1.0, %v4032_v59 }
0x148c   :  { %4033 = vrcp.f32 %v1906_v37 }
0x1499   :  { %v4034_v63 = vpop.eup %4033 }
0x149a   :  { %v1938_v51 = vsub.f32 1.0, %v4034_v63  ;;  %v1947_v15 = vmul.f32 %v4034_v63, %v1945_v0 }
0x14fb   :  { %v1941_v11 = vpop.permute.xlu0 %1940 }
0x14fc   :  { %v1943_v17 = vmul.f32 %v1941_v11, %v1938_v51 }
0x14fe   :  { %v4931_v49 = vadd.f32 %v1947_v15, %v1943_v17 }
0x1500   :  { %v1957_v19 = vsel %vm1724_vm4, %v4931_v49, %v1945_v0 }
0x1501   :  { %2033 = vrot.lane.b32.xlu0 %v1957_v19, %s4256_s1 }
0x1573   :  { %v2034_v28 = vpop.permute.xlu0 %2033 }
0x1574   :  { %3805 = vmatmul.mubr.msk.f32.vlgmr.msra.gmra.mxu1 %vm106_vm1, %v2034_v28 }
0x1575   :  { %3819 = vmatpush3.msra.mxu1 %v4832_v20  ;;  %3826 = vmatprep.mubr.msk.f32.mxu1 %vm4252_vm0, %v4251_v1 }
0x1576   :  { %3820 = vmatprep.subr.mxu1 %v4251_v1 }
0x1577   :  { %3821 = vmatpush3.msra.mxu1 %v4835_v22 }
0x1578   :  { %3822 = vmatprep.subr.mxu1 %v4251_v1 }
0x1579   :  { %3823 = vmatpush3.msra.mxu1 %v4841_v23 }
0x157a   :  { %3824 = vmatprep.subr.mxu1 %v4251_v1 }
0x157b   :  { %3825 = vmatpush3.msra.mxu1 %v4845_v27 }
0x157c   :  { %3840 = vmatprep.subr.mxu1 %v4251_v1 }
0x1634   :  { %v2103_v31 = vpop.f32.mrf.mxu1 }
0x1635   :  { %v2123_v33 = vadd.f32 %v2103_v31, %v4891_v13  ;;  %v2107_v38 = vadd.f32 %v2103_v31, %v4893_v61 }
0x1636   :  { %v3806_v36 = vpop.f32.mrf.mxu1 }
0x1637   :  { %2125 = vrot.lane.b32.xlu1 %v2123_v33, %s4253_s21  ;;  %v2108_v2 = vadd.f32 %v2107_v38, %v4906_v18  ;;  %v2115_v59 = vadd.f32 %v2107_v38, %v4926_v55 }
0x1639   :  { %v3401_v39 = vmul.f32 -1.442695, %v2108_v2  ;;  %v3402_v37 = vmul.f32 -1.442695, %v2115_v59 }
0x163b   :  { %4035 = vpow2.f32 %v3401_v39 }
0x1648   :  { %v4036_v43 = vpop.eup %4035 }
0x1649   :  { %v2112_v24 = vadd.f32 1.0, %v4036_v43 }
0x164b   :  { %4037 = vrcp.f32 %v2112_v24 }
0x1658   :  { %v4038_v8 = vpop.eup %4037 }
0x16a9   :  { %v2126_v4 = vpop.permute.xlu1 %2125 }
0x16aa   :  { %v2128_v54 = vmul.f32 %v4038_v8, %v2126_v4 }
0x16ac   :  { %2130 = vrot.lane.b32.xlu0 %v2128_v54, %s4253_s21 }
0x171e   :  { %v2131_v40 = vpop.permute.xlu0 %2130 }
0x171f   :  { %v2133_v57 = vadd.f32 %v2131_v40, %v2122_v6  ;;  %v2316_v40 = vadd.f32 %v4897_v5, %v4921_v21 }
0x1721   :  { %4039 = vtanh.f32 %v2133_v57 }
0x1722   :  { %4041 = vpow2.f32 %v3402_v37 }
0x172e   :  { %v4040_v25 = vpop.eup %4039 }
0x172f   :  { %2137 = vrot.lane.b32.xlu1 %v4040_v25, %s4256_s1  ;;  %v4042_v63 = vpop.eup %4041 }
0x1730   :  { %v2119_v0 = vadd.f32 1.0, %v4042_v63 }
0x1732   :  { %4043 = vrcp.f32 %v2119_v0 }
0x173f   :  { %v4044_v51 = vpop.eup %4043 }
0x1740   :  { %v2135_v11 = vsub.f32 1.0, %v4044_v51  ;;  %v2141_v17 = vmul.f32 %v4044_v51, %v1957_v19 }
0x17a1   :  { %v2138_v15 = vpop.permute.xlu1 %2137 }
0x17a2   :  { %v2140_v28 = vmul.f32 %v2138_v15, %v2135_v11 }
0x17a4   :  { %v4958_v31 = vadd.f32 %v2141_v17, %v2140_v28 }
0x17a6   :  { %v2151_v61 = vsel %vm1524_vm15, %v4958_v31, %v1957_v19  ;;  %v2144_v9 = vsel %vm1524_vm15, %v4958_v31, 0.0 }
0x17a7   :  { %2227 = vrot.lane.b32.xlu0 %v2151_v61, %s4256_s1 }
0x1819   :  { %v2228_v33 = vpop.permute.xlu0 %2227 }
0x181a   :  { %3827 = vmatmul.mubr.msk.f32.vlgmr.msra.gmra.mxu1 %vm106_vm1, %v2228_v33 }
0x181b   :  { %3841 = vmatpush3.msra.mxu1 %v4832_v20  ;;  %3848 = vmatprep.mubr.msk.f32.mxu1 %vm4252_vm0, %v4251_v1 }
0x181c   :  { %3842 = vmatprep.subr.mxu1 %v4251_v1 }
0x181d   :  { %3843 = vmatpush3.msra.mxu1 %v4835_v22 }
0x181e   :  { %3844 = vmatprep.subr.mxu1 %v4251_v1 }
0x181f   :  { %3845 = vmatpush3.msra.mxu1 %v4841_v23 }
0x1820   :  { %3846 = vmatprep.subr.mxu1 %v4251_v1 }
0x1821   :  { %3847 = vmatpush3.msra.mxu1 %v4845_v27 }
0x1822   :  { %3862 = vmatprep.subr.mxu1 %v4251_v1 }
0x18da   :  { %v2297_v19 = vpop.f32.mrf.mxu1 }
0x18db   :  { %v2317_v36 = vadd.f32 %v2297_v19, %v4891_v13  ;;  %v2301_v2 = vadd.f32 %v2297_v19, %v4897_v5 }
0x18dc   :  { %v3828_v38 = vpop.f32.mrf.mxu1 }
0x18dd   :  { %2319 = vrot.lane.b32.xlu1 %v2317_v36, %s4253_s21  ;;  %v2302_v39 = vadd.f32 %v2301_v2, %v4906_v18  ;;  %v2309_v37 = vadd.f32 %v2301_v2, %v4926_v55 }
0x18df   :  { %v3405_v43 = vmul.f32 -1.442695, %v2302_v39  ;;  %v3406_v63 = vmul.f32 -1.442695, %v2309_v37 }
0x18e1   :  { %4045 = vpow2.f32 %v3405_v43 }
0x18ee   :  { %v4046_v24 = vpop.eup %4045 }
0x18ef   :  { %v2306_v8 = vadd.f32 1.0, %v4046_v24 }
0x18f1   :  { %4047 = vrcp.f32 %v2306_v8 }
0x18fe   :  { %v4048_v4 = vpop.eup %4047 }
0x194f   :  { %v2320_v54 = vpop.permute.xlu1 %2319 }
0x1950   :  { %v2322_v6 = vmul.f32 %v4048_v4, %v2320_v54 }
0x1952   :  { %2324 = vrot.lane.b32.xlu0 %v2322_v6, %s4253_s21 }
0x19c4   :  { %v2325_v57 = vpop.permute.xlu0 %2324 }
0x19c5   :  { %v2327_v25 = vadd.f32 %v2325_v57, %v2316_v40  ;;  %v2510_v57 = vadd.f32 %v4899_v35, %v4921_v21 }
0x19c7   :  { %4049 = vtanh.f32 %v2327_v25 }
0x19c8   :  { %4051 = vpow2.f32 %v3406_v63 }
0x19d4   :  { %v4050_v59 = vpop.eup %4049 }
0x19d5   :  { %2331 = vrot.lane.b32.xlu1 %v4050_v59, %s4256_s1  ;;  %v4052_v0 = vpop.eup %4051 }
0x19d6   :  { %v2313_v51 = vadd.f32 1.0, %v4052_v0 }
0x19d8   :  { %4053 = vrcp.f32 %v2313_v51 }
0x19e5   :  { %v4054_v11 = vpop.eup %4053 }
0x19e6   :  { %v2329_v15 = vsub.f32 1.0, %v4054_v11  ;;  %v2335_v28 = vmul.f32 %v4054_v11, %v2151_v61 }
0x1a47   :  { %v2332_v17 = vpop.permute.xlu1 %2331 }
0x1a48   :  { %v2334_v33 = vmul.f32 %v2332_v17, %v2329_v15 }
0x1a4a   :  { %v4984_v19 = vadd.f32 %v2335_v28, %v2334_v33 }
0x1a4c   :  { %v2345_v5 = vsel %vm1324_vm13, %v4984_v19, %v2151_v61 }
0x1a4d   :  { %2421 = vrot.lane.b32.xlu0 %v2345_v5, %s4256_s1 }
0x1abf   :  { %v2422_v36 = vpop.permute.xlu0 %2421 }
0x1ac0   :  { %3849 = vmatmul.mubr.msk.f32.vlgmr.msra.gmra.mxu1 %vm106_vm1, %v2422_v36 }
0x1ac1   :  { %3863 = vmatpush3.msra.mxu1 %v4832_v20  ;;  %3870 = vmatprep.mubr.msk.f32.mxu1 %vm4252_vm0, %v4251_v1 }
0x1ac2   :  { %3864 = vmatprep.subr.mxu1 %v4251_v1 }
0x1ac3   :  { %3865 = vmatpush3.msra.mxu1 %v4835_v22 }
0x1ac4   :  { %3866 = vmatprep.subr.mxu1 %v4251_v1 }
0x1ac5   :  { %3867 = vmatpush3.msra.mxu1 %v4841_v23 }
0x1ac6   :  { %3868 = vmatprep.subr.mxu1 %v4251_v1 }
0x1ac7   :  { %3869 = vmatpush3.msra.mxu1 %v4845_v27 }
0x1ac8   :  { %3884 = vmatprep.subr.mxu1 %v4251_v1 }
0x1b80   :  { %v2491_v61 = vpop.f32.mrf.mxu1 }
0x1b81   :  { %v2511_v38 = vadd.f32 %v2491_v61, %v4891_v13  ;;  %v2495_v39 = vadd.f32 %v2491_v61, %v4899_v35 }
0x1b82   :  { %v3850_v2 = vpop.f32.mrf.mxu1 }
0x1b83   :  { %2513 = vrot.lane.b32.xlu1 %v2511_v38, %s4253_s21  ;;  %v2496_v43 = vadd.f32 %v2495_v39, %v4906_v18  ;;  %v2503_v63 = vadd.f32 %v2495_v39, %v4926_v55 }
0x1b85   :  { %v3409_v24 = vmul.f32 -1.442695, %v2496_v43  ;;  %v3410_v0 = vmul.f32 -1.442695, %v2503_v63 }
0x1b87   :  { %4055 = vpow2.f32 %v3409_v24 }
0x1b94   :  { %v4056_v8 = vpop.eup %4055 }
0x1b95   :  { %v2500_v4 = vadd.f32 1.0, %v4056_v8 }
0x1b97   :  { %4057 = vrcp.f32 %v2500_v4 }
0x1ba4   :  { %v4058_v54 = vpop.eup %4057 }
0x1bf5   :  { %v2514_v6 = vpop.permute.xlu1 %2513 }
0x1bf6   :  { %v2516_v40 = vmul.f32 %v4058_v54, %v2514_v6 }
0x1bf8   :  { %2518 = vrot.lane.b32.xlu0 %v2516_v40, %s4253_s21 }
0x1c6a   :  { %v2519_v25 = vpop.permute.xlu0 %2518 }
0x1c6b   :  { %v2521_v59 = vadd.f32 %v2519_v25, %v2510_v57  ;;  %v2704_v25 = vadd.f32 %v4901_v16, %v4921_v21 }
0x1c6d   :  { %4059 = vtanh.f32 %v2521_v59 }
0x1c6e   :  { %4061 = vpow2.f32 %v3410_v0 }
0x1c7a   :  { %v4060_v37 = vpop.eup %4059 }
0x1c7b   :  { %2525 = vrot.lane.b32.xlu1 %v4060_v37, %s4256_s1  ;;  %v4062_v51 = vpop.eup %4061 }
0x1c7c   :  { %v2507_v11 = vadd.f32 1.0, %v4062_v51 }
0x1c7e   :  { %4063 = vrcp.f32 %v2507_v11 }
0x1c8b   :  { %v4064_v15 = vpop.eup %4063 }
0x1c8c   :  { %v2523_v17 = vsub.f32 1.0, %v4064_v15  ;;  %v2529_v33 = vmul.f32 %v4064_v15, %v2345_v5 }
0x1ced   :  { %v2526_v28 = vpop.permute.xlu1 %2525 }
0x1cee   :  { %v2528_v36 = vmul.f32 %v2526_v28, %v2523_v17 }
0x1cf0   :  { %v5010_v61 = vadd.f32 %v2529_v33, %v2528_v36 }
0x1cf2   :  { %v2539_v35 = vsel %vm1124_vm11, %v5010_v61, %v2345_v5 }
0x1cf3   :  { %2615 = vrot.lane.b32.xlu0 %v2539_v35, %s4256_s1 }
0x1d65   :  { %v2616_v38 = vpop.permute.xlu0 %2615 }
0x1d66   :  { %3871 = vmatmul.mubr.msk.f32.vlgmr.msra.gmra.mxu1 %vm106_vm1, %v2616_v38 }
0x1d67   :  { %3885 = vmatpush3.msra.mxu1 %v4832_v20  ;;  %3892 = vmatprep.mubr.msk.f32.mxu1 %vm4252_vm0, %v4251_v1 }
0x1d68   :  { %3886 = vmatprep.subr.mxu1 %v4251_v1 }
0x1d69   :  { %3887 = vmatpush3.msra.mxu1 %v4835_v22 }
0x1d6a   :  { %3888 = vmatprep.subr.mxu1 %v4251_v1 }
0x1d6b   :  { %3889 = vmatpush3.msra.mxu1 %v4841_v23 }
0x1d6c   :  { %3890 = vmatprep.subr.mxu1 %v4251_v1 }
0x1d6d   :  { %3891 = vmatpush3.msra.mxu1 %v4845_v27 }
0x1d6e   :  { %3906 = vmatprep.subr.mxu1 %v4251_v1 }
0x1e26   :  { %v2685_v5 = vpop.f32.mrf.mxu1 }
0x1e27   :  { %v2705_v2 = vadd.f32 %v2685_v5, %v4891_v13  ;;  %v2689_v43 = vadd.f32 %v2685_v5, %v4901_v16 }
0x1e28   :  { %v3872_v39 = vpop.f32.mrf.mxu1 }
0x1e29   :  { %2707 = vrot.lane.b32.xlu1 %v2705_v2, %s4253_s21  ;;  %v2690_v24 = vadd.f32 %v2689_v43, %v4906_v18  ;;  %v2697_v0 = vadd.f32 %v2689_v43, %v4926_v55 }
0x1e2b   :  { %v3413_v8 = vmul.f32 -1.442695, %v2690_v24  ;;  %v3414_v51 = vmul.f32 -1.442695, %v2697_v0 }
0x1e2d   :  { %4065 = vpow2.f32 %v3413_v8 }
0x1e3a   :  { %v4066_v4 = vpop.eup %4065 }
0x1e3b   :  { %v2694_v54 = vadd.f32 1.0, %v4066_v4 }
0x1e3d   :  { %4067 = vrcp.f32 %v2694_v54 }
0x1e4a   :  { %v4068_v6 = vpop.eup %4067 }
0x1e9b   :  { %v2708_v40 = vpop.permute.xlu1 %2707 }
0x1e9c   :  { %v2710_v57 = vmul.f32 %v4068_v6, %v2708_v40 }
0x1e9e   :  { %2712 = vrot.lane.b32.xlu0 %v2710_v57, %s4253_s21 }
0x1f10   :  { %v2713_v59 = vpop.permute.xlu0 %2712 }
0x1f11   :  { %v2715_v37 = vadd.f32 %v2713_v59, %v2704_v25  ;;  %v2898_v59 = vadd.f32 %v4910_v30, %v4921_v21 }
0x1f13   :  { %4069 = vtanh.f32 %v2715_v37 }
0x1f14   :  { %4071 = vpow2.f32 %v3414_v51 }
0x1f20   :  { %v4070_v63 = vpop.eup %4069 }
0x1f21   :  { %2719 = vrot.lane.b32.xlu1 %v4070_v63, %s4256_s1  ;;  %v4072_v11 = vpop.eup %4071 }
0x1f22   :  { %v2701_v15 = vadd.f32 1.0, %v4072_v11 }
0x1f24   :  { %4073 = vrcp.f32 %v2701_v15 }
0x1f31   :  { %v4074_v17 = vpop.eup %4073 }
0x1f32   :  { %v2717_v28 = vsub.f32 1.0, %v4074_v17  ;;  %v2723_v36 = vmul.f32 %v4074_v17, %v2539_v35 }
0x1f93   :  { %v2720_v33 = vpop.permute.xlu1 %2719 }
0x1f94   :  { %v2722_v38 = vmul.f32 %v2720_v33, %v2717_v28 }
0x1f96   :  { %v5036_v5 = vadd.f32 %v2723_v36, %v2722_v38 }
0x1f98   :  { %v2733_v16 = vsel %vm924_vm9, %v5036_v5, %v2539_v35 }
0x1f99   :  { %2809 = vrot.lane.b32.xlu0 %v2733_v16, %s4256_s1 }
0x200b   :  { %v2810_v2 = vpop.permute.xlu0 %2809 }
0x200c   :  { %3893 = vmatmul.mubr.msk.f32.vlgmr.msra.gmra.mxu1 %vm106_vm1, %v2810_v2 }
0x200d   :  { %3907 = vmatpush3.msra.mxu1 %v4832_v20  ;;  %3914 = vmatprep.mubr.msk.f32.mxu1 %vm4252_vm0, %v4251_v1 }
0x200e   :  { %3908 = vmatprep.subr.mxu1 %v4251_v1 }
0x200f   :  { %3909 = vmatpush3.msra.mxu1 %v4835_v22 }
0x2010   :  { %3910 = vmatprep.subr.mxu1 %v4251_v1 }
0x2011   :  { %3911 = vmatpush3.msra.mxu1 %v4841_v23 }
0x2012   :  { %3912 = vmatprep.subr.mxu1 %v4251_v1 }
0x2013   :  { %3913 = vmatpush3.msra.mxu1 %v4845_v27 }
0x2014   :  { %3928 = vmatprep.subr.mxu1 %v4251_v1 }
0x20cc   :  { %v2879_v35 = vpop.f32.mrf.mxu1 }
0x20cd   :  { %v2899_v39 = vadd.f32 %v2879_v35, %v4891_v13  ;;  %v2883_v24 = vadd.f32 %v2879_v35, %v4910_v30 }
0x20ce   :  { %v3894_v43 = vpop.f32.mrf.mxu1 }
0x20cf   :  { %2901 = vrot.lane.b32.xlu1 %v2899_v39, %s4253_s21  ;;  %v2884_v8 = vadd.f32 %v2883_v24, %v4906_v18  ;;  %v2891_v51 = vadd.f32 %v2883_v24, %v4926_v55 }
0x20d1   :  { %v3417_v4 = vmul.f32 -1.442695, %v2884_v8  ;;  %v3418_v11 = vmul.f32 -1.442695, %v2891_v51 }
0x20d3   :  { %4075 = vpow2.f32 %v3417_v4 }
0x20e0   :  { %v4076_v54 = vpop.eup %4075 }
0x20e1   :  { %v2888_v6 = vadd.f32 1.0, %v4076_v54 }
0x20e3   :  { %4077 = vrcp.f32 %v2888_v6 }
0x20f0   :  { %v4078_v40 = vpop.eup %4077 }
0x2141   :  { %v2902_v57 = vpop.permute.xlu1 %2901 }
0x2142   :  { %v2904_v25 = vmul.f32 %v4078_v40, %v2902_v57 }
0x2144   :  { %2906 = vrot.lane.b32.xlu0 %v2904_v25, %s4253_s21 }
0x21b6   :  { %v2907_v37 = vpop.permute.xlu0 %2906 }
0x21b7   :  { %v2909_v63 = vadd.f32 %v2907_v37, %v2898_v59  ;;  %v1699_v59 = vadd.f32 %v4889_v10, %v4489_v26 }
0x21b9   :  { %4079 = vtanh.f32 %v2909_v63  ;;  %v1683_v63 = vadd.f32 %v4889_v10, %v4517_v53 }
0x21ba   :  { %4081 = vpow2.f32 %v3418_v11 }
0x21bb   :  { %v1684_v51 = vadd.f32 %v1683_v63, %v4508_v41 }
0x21c6   :  { %v4080_v0 = vpop.eup %4079 }
0x21c7   :  { %2913 = vrot.lane.b32.xlu1 %v4080_v0, %s4256_s1  ;;  %v4082_v15 = vpop.eup %4081 }
0x21c8   :  { %v2895_v17 = vadd.f32 1.0, %v4082_v15 }
0x21ca   :  { %4083 = vrcp.f32 %v2895_v17 }
0x21d7   :  { %v4084_v28 = vpop.eup %4083 }
0x21d8   :  { %v2911_v33 = vsub.f32 1.0, %v4084_v28  ;;  %v2917_v38 = vmul.f32 %v4084_v28, %v2733_v16 }
0x2239   :  { %v2914_v36 = vpop.permute.xlu1 %2913 }
0x223a   :  { %v2916_v2 = vmul.f32 %v2914_v36, %v2911_v33 }
0x223c   :  { %v5062_v35 = vadd.f32 %v2917_v38, %v2916_v2 }
0x223e   :  { %v2927_v30 = vsel %vm724_vm7, %v5062_v35, %v2733_v16  ;;  %v2920_v52 = vsel %vm724_vm7, %v5062_v35, 0.0 }
0x223f   :  { %3003 = vrot.lane.b32.xlu0 %v2927_v30, %s4256_s1 }
0x22b1   :  { %v3004_v39 = vpop.permute.xlu0 %3003 }
0x22b2   :  { %3915 = vmatmul.mubr.msk.f32.vlgmr.msra.gmra.mxu1 %vm106_vm1, %v3004_v39 }
0x22b3   :  { %3929 = vmatpush3.msra.mxu1 %v4832_v20  ;;  %3936 = vmatprep.mubr.msk.f32.mxu1 %vm4252_vm0, %v4251_v1 }
0x22b4   :  { %3930 = vmatprep.subr.mxu1 %v4251_v1 }
0x22b5   :  { %3931 = vmatpush3.msra.mxu1 %v4835_v22 }
0x22b6   :  { %3932 = vmatprep.subr.mxu1 %v4251_v1 }
0x22b7   :  { %3933 = vmatpush3.msra.mxu1 %v4841_v23 }
0x22b8   :  { %3934 = vmatprep.subr.mxu1 %v4251_v1 }
0x22b9   :  { %3935 = vmatpush3.msra.mxu1 %v4845_v27  ;;  %v3092_v27 = vadd.f32 %v4912_v32, %v4921_v21 }
0x2372   :  { %v3073_v16 = vpop.f32.mrf.mxu1 }
0x2373   :  { %v3093_v43 = vadd.f32 %v3073_v16, %v4891_v13  ;;  %v3077_v20 = vadd.f32 %v3073_v16, %v4912_v32  ;;  %v3393_v32 = vmul.f32 -1.442695, %v1684_v51 }
0x2374   :  { %v3916_v24 = vpop.f32.mrf.mxu1 }
0x2375   :  { %3095 = vrot.lane.b32.xlu1 %v3093_v43, %s4253_s21  ;;  %v3078_v8 = vadd.f32 %v3077_v20, %v4906_v18  ;;  %v3085_v37 = vadd.f32 %v3077_v20, %v4926_v55  ;;  %v1698_v24 = vadd.f32 %v4517_v53, %v4529_v60  ;;  %v1125_v53 = vsel %vm1124_vm11, %v4662_v50, 0.0 }
0x2376   :  { %v1525_v60 = vsel %vm1524_vm15, %v4755_v44, 0.0  ;;  %v2726_v50 = vsel %vm924_vm9, %v5036_v5, 0.0 }
0x2377   :  { %v3421_v4 = vmul.f32 -1.442695, %v3078_v8  ;;  %v3422_v0 = vmul.f32 -1.442695, %v3085_v37 }
0x2379   :  { %4085 = vpow2.f32 %v3421_v4 }
0x2386   :  { %v4086_v22 = vpop.eup %4085 }
0x2387   :  { %v3082_v54 = vadd.f32 1.0, %v4086_v22 }
0x2389   :  { %4087 = vrcp.f32 %v3082_v54  ;;  %v725_v54 = vsel %vm724_vm7, %v4601_v62, 0.0  ;;  %v2338_v62 = vsel %vm1324_vm13, %v4984_v19, 0.0 }
0x2396   :  { %v4088_v23 = vpop.eup %4087 }
0x23e7   :  { %v3096_v6 = vpop.permute.xlu1 %3095 }
0x23e8   :  { %v3098_v1 = vmul.f32 %v4088_v23, %v3096_v6 }
0x23ea   :  { %3100 = vrot.lane.b32.xlu0 %v3098_v1, %s4253_s21 }
0x245c   :  { %v3101_v40 = vpop.permute.xlu0 %3100 }
0x245d   :  { %v3103_v57 = vadd.f32 %v3101_v40, %v3092_v27 }
0x245f   :  { %4089 = vtanh.f32 %v3103_v57 }
0x2460   :  { %4091 = vpow2.f32 %v3422_v0 }
0x2461   :  { %4093 = vpow2.f32 %v3393_v32 }
0x246c   :  { %v4090_v25 = vpop.eup %4089 }
0x246d   :  { %3107 = vrot.lane.b32.xlu1 %v4090_v25, %s4256_s1  ;;  %v4092_v11 = vpop.eup %4091 }
0x246e   :  { %v3089_v15 = vadd.f32 1.0, %v4092_v11  ;;  %v4094_v17 = vpop.eup %4093 }
0x246f   :  { %v1688_v28 = vadd.f32 1.0, %v4094_v17 }
0x2470   :  { %4095 = vrcp.f32 %v3089_v15 }
0x2471   :  { %1701 = vrot.lane.b32.xlu1 %v1699_v59, %s4253_s21  ;;  %4097 = vrcp.f32 %v1688_v28 }
0x247d   :  { %v4096_v26 = vpop.eup %4095 }
0x247e   :  { %v3105_v33 = vsub.f32 1.0, %v4096_v26  ;;  %v3111_v38 = vmul.f32 %v4096_v26, %v2927_v30  ;;  %v4098_v16 = vpop.eup %4097 }
0x24df   :  { %v3108_v36 = vpop.permute.xlu1 %3107 }
0x24e0   :  { %v3110_v2 = vmul.f32 %v3108_v36, %v3105_v33 }
0x24e2   :  { %v3112_v39 = vadd.f32 %v3111_v38, %v3110_v2 }
0x24e3   :  { %v1702_v10 = vpop.permute.xlu1 %1701 }
0x24e4   :  { %v1704_v43 = vmul.f32 %v4098_v16, %v1702_v10  ;;  %v5095_v41 = vsel %vm524_vm5, %v3112_v39, %v2927_v30  ;;  %v326_v30 = vsel %vm325_vm3, %v4538_v29, 0.0  ;;  %v1950_v29 = vsel %vm1724_vm4, %v4931_v49, 0.0 }
0x24e5   :  { %3197 = vrot.lane.b32.xlu0 %v5095_v41, %s4256_s1  ;;  %v3114_v44 = vsel %vm524_vm5, %v3112_v39, 0.0  ;;  %v1691_v49 = vadd.f32 %v1683_v63, %v4533_v3 }
0x24e6   :  { %1706 = vrot.lane.b32.xlu1 %v1704_v43, %s4253_s21  ;;  %v3286_v43 = vadd.f32 %v4914_v47, %v4921_v21 }
0x24e7   :  { %v3394_v23 = vmul.f32 -1.442695, %v1691_v49 }
0x2557   :  { %v3198_v20 = vpop.permute.xlu0 %3197 }
0x2558   :  { %3937 = vmatmul.mubr.msk.f32.vlgmr.msra.gmra.mxu1 %vm106_vm1, %v3198_v20  ;;  %v1707_v8 = vpop.permute.xlu1 %1706 }
0x2559   :  { %v1709_v4 = vadd.f32 %v1707_v8, %v1698_v24 }
0x255b   :  { %4099 = vtanh.f32 %v1709_v4  ;;  %v925_v4 = vsel %vm924_vm9, %v4631_v56, 0.0 }
0x255c   :  { %4101 = vpow2.f32 %v3394_v23 }
0x2568   :  { %v4100_v22 = vpop.eup %4099 }
0x2569   :  { %1713 = vrot.lane.b32.xlu1 %v4100_v22, %s4256_s1  ;;  %v4102_v6 = vpop.eup %4101 }
0x256a   :  { %v1695_v1 = vadd.f32 1.0, %v4102_v6 }
0x256c   :  { %4103 = vrcp.f32 %v1695_v1 }
0x256d   :  { %328 = vrot.lane.b32.xlu1 %v326_v30, %s4256_s1 }
0x2571   :  { %727 = vrot.lane.b32.xlu1 %v725_v54, %s4256_s1 }
0x2575   :  { %1127 = vrot.lane.b32.xlu1 %v1125_v53, %s4256_s1 }
0x2579   :  { %1527 = vrot.lane.b32.xlu1 %v1525_v60, %s4256_s1  ;;  %v4104_v19 = vpop.eup %4103 }
0x257a   :  { %v1711_v27 = vsub.f32 1.0, %v4104_v19  ;;  %v1717_v57 = vmul.f32 %v4104_v19, %v4770_v7 }
0x257d   :  { %1952 = vrot.lane.b32.xlu1 %v1950_v29, %s4256_s1 }
0x2581   :  { %2340 = vrot.lane.b32.xlu1 %v2338_v62, %s4256_s1 }
0x2585   :  { %2728 = vrot.lane.b32.xlu1 %v2726_v50, %s4256_s1 }
0x2589   :  { %3116 = vrot.lane.b32.xlu1 %v3114_v44, %s4256_s1 }
0x25db   :  { %v1714_v40 = vpop.permute.xlu1 %1713 }
0x25dc   :  { %v1716_v5 = vmul.f32 %v1714_v40, %v1711_v27 }
0x25de   :  { %v1718_v25 = vadd.f32 %v1717_v57, %v1716_v5 }
0x25df   :  { %v329_v59 = vpop.permute.xlu1 %328 }
0x25e0   :  { %331 = vst.msk [vmem:[#allocation10] sm:$0xff] %vm106_vm1, %v329_v59  ;;  %v1732_v37 = vsel %vm1724_vm4, %v1718_v25, %v4770_v7  ;;  %v1725_v21 = vsel %vm1724_vm4, %v1718_v25, 0.0 }
0x25e1   :  { %3317 = vrot.lane.b32.xlu1 %v1732_v37, %s4256_s1 }
0x25e3   :  { %v728_v3 = vpop.permute.xlu1 %727 }
0x25e4   :  { %731 = vst.msk [vmem:[#allocation10 + $0x10] sm:$0xff] %vm106_vm1, %v728_v3 }
0x25e7   :  { %v1128_v63 = vpop.permute.xlu1 %1127  ;;  %v3307_v3 = vld [vmem:[#allocation10] sm:$0xff] }
0x25e8   :  { %1131 = vst.msk [vmem:[#allocation10 + $0x20] sm:$0xff] %vm106_vm1, %v1128_v63 }
0x25eb   :  { %v1528_v0 = vpop.permute.xlu1 %1527  ;;  %v2919_v25 = vld [vmem:[#allocation10 + $0x10] sm:$0xff] }
0x25ec   :  { %1531 = vst.msk [vmem:[#allocation10 + $0x30] sm:$0xff] %vm106_vm1, %v1528_v0 }
0x25ef   :  { %v5147_v15 = vpop.permute.xlu1 %1952  ;;  %v2531_v27 = vld [vmem:[#allocation10 + $0x20] sm:$0xff] }
0x25f3   :  { %v5149_v7 = vpop.permute.xlu1 %2340  ;;  %v2143_v14 = vld [vmem:[#allocation10 + $0x30] sm:$0xff] }
0x25f7   :  { %v2729_v17 = vpop.permute.xlu1 %2728 }
0x25fb   :  { %v3117_v28 = vpop.permute.xlu1 %3116 }
0x2618   :  { %v3267_v51 = vpop.f32.mrf.mxu1 }
0x2619   :  { %v3287_v32 = vadd.f32 %v3267_v51, %v4891_v13  ;;  %v3271_v33 = vadd.f32 %v3267_v51, %v4914_v47  ;;  %v1325_v47 = vsel %vm1324_vm13, %v4693_v45, 0.0 }
0x261a   :  { %v3938_v11 = vpop.f32.mrf.mxu1 }
0x261b   :  { %3289 = vrot.lane.b32.xlu0 %v3287_v32, %s4253_s21  ;;  %v3272_v36 = vadd.f32 %v3271_v33, %v4906_v18  ;;  %v525_v18 = vsel %vm524_vm5, %v4569_v12, 0.0  ;;  %v2532_v12 = vsel %vm1124_vm11, %v5010_v61, 0.0  ;;  %v3279_v56 = vadd.f32 %v3271_v33, %v4926_v55 }
0x261d   :  { %v3425_v38 = vmul.f32 -1.442695, %v3272_v36  ;;  %v3426_v42 = vmul.f32 -1.442695, %v3279_v56 }
0x261f   :  { %4105 = vpow2.f32 %v3425_v38 }
0x262c   :  { %v4106_v2 = vpop.eup %4105 }
0x262d   :  { %v3276_v13 = vadd.f32 1.0, %v4106_v2 }
0x262f   :  { %4107 = vrcp.f32 %v3276_v13 }
0x263c   :  { %v4108_v39 = vpop.eup %4107 }
0x2653   :  { %v3318_v26 = vpop.permute.xlu1 %3317 }
0x2654   :  { %3320 = vst.msk [vmem:[#allocation11] sm:$0xff] %vm106_vm1, %v3318_v26 }
0x268d   :  { %v3290_v16 = vpop.permute.xlu0 %3289 }
0x268e   :  { %v3292_v10 = vmul.f32 %v4108_v39, %v3290_v16 }
0x2690   :  { %3294 = vrot.lane.b32.xlu0 %v3292_v10, %s4253_s21 }
0x2702   :  { %v3295_v24 = vpop.permute.xlu0 %3294 }
0x2703   :  { %v3297_v20 = vadd.f32 %v3295_v24, %v3286_v43 }
0x2705   :  { %4109 = vtanh.f32 %v3297_v20 }
0x2706   :  { %4111 = vpow2.f32 %v3426_v42 }
0x2712   :  { %v4110_v8 = vpop.eup %4109 }
0x2713   :  { %3301 = vrot.lane.b32.xlu0 %v4110_v8, %s4256_s1  ;;  %v4112_v45 = vpop.eup %4111 }
0x2714   :  { %v3283_v34 = vadd.f32 1.0, %v4112_v45 }
0x2716   :  { %4113 = vrcp.f32 %v3283_v34 }
0x2717   :  { %527 = vrot.lane.b32.xlu0 %v525_v18, %s4256_s1 }
0x271b   :  { %927 = vrot.lane.b32.xlu0 %v925_v4, %s4256_s1 }
0x271f   :  { %1327 = vrot.lane.b32.xlu0 %v1325_v47, %s4256_s1 }
0x2723   :  { %1727 = vrot.lane.b32.xlu0 %v1725_v21, %s4256_s1  ;;  %v4114_v48 = vpop.eup %4113 }
0x2724   :  { %v3299_v31 = vsub.f32 1.0, %v4114_v48  ;;  %v3305_v46 = vmul.f32 %v4114_v48, %v5095_v41 }
0x2727   :  { %2146 = vrot.lane.b32.xlu0 %v2144_v9, %s4256_s1 }
0x272b   :  { %2534 = vrot.lane.b32.xlu0 %v2532_v12, %s4256_s1 }
0x272f   :  { %2922 = vrot.lane.b32.xlu0 %v2920_v52, %s4256_s1 }
0x2785   :  { %v3302_v22 = vpop.permute.xlu0 %3301 }
0x2786   :  { %v3304_v61 = vmul.f32 %v3302_v22, %v3299_v31 }
0x2788   :  { %v3306_v30 = vadd.f32 %v3305_v46, %v3304_v61 }
0x2789   :  { %v528_v54 = vpop.permute.xlu0 %527 }
0x278a   :  { %531 = vst.msk [vmem:[#allocation10 + $0x8] sm:$0xff] %vm106_vm1, %v528_v54  ;;  %v3308_v58 = vsel %vm325_vm3, %v3306_v30, 0.0  ;;  %v3315_v35 = vsel %vm325_vm3, %v3306_v30, %v5095_v41 }
0x278b   :  { %3310 = vrot.lane.b32.xlu0 %v3308_v58, %s4256_s1 }
0x278d   :  { %v928_v55 = vpop.permute.xlu0 %927 }
0x278e   :  { %931 = vst.msk [vmem:[#allocation10 + $0x18] sm:$0xff] %vm106_vm1, %v928_v55 }
0x278f   :  { %3322 = vrot.lane.b32.xlu0 %v3315_v35, %s4256_s1 }
0x2791   :  { %v3113_v53 = vld [vmem:[#allocation10 + $0x8] sm:$0xff]  ;;  %v1328_v60 = vpop.permute.xlu0 %1327 }
0x2792   :  { %v3119_v29 = vadd.f32 %v3117_v28, %v3113_v53  ;;  %1331 = vst.msk [vmem:[#allocation10 + $0x28] sm:$0xff] %vm106_vm1, %v1328_v60 }
0x2794   :  { %3120 = vst.msk [vmem:[#allocation10 + $0x8] sm:$0xff] %vm106_vm1, %v3119_v29 }
0x2795   :  { %v2725_v62 = vld [vmem:[#allocation10 + $0x18] sm:$0xff]  ;;  %v1728_v50 = vpop.permute.xlu0 %1727 }
0x2796   :  { %v2731_v44 = vadd.f32 %v2729_v17, %v2725_v62  ;;  %1731 = vst.msk [vmem:[#allocation10 + $0x38] sm:$0xff] %vm106_vm1, %v1728_v50 }
0x2798   :  { %2732 = vst.msk [vmem:[#allocation10 + $0x18] sm:$0xff] %vm106_vm1, %v2731_v44 }
0x2799   :  { %v2337_v49 = vld [vmem:[#allocation10 + $0x28] sm:$0xff]  ;;  %v2147_v23 = vpop.permute.xlu0 %2146 }
0x279a   :  { %v2343_v41 = vadd.f32 %v5149_v7, %v2337_v49  ;;  %v2149_v6 = vadd.f32 %v2147_v23, %v2143_v14 }
0x279c   :  { %2344 = vst.msk [vmem:[#allocation10 + $0x28] sm:$0xff] %vm106_vm1, %v2343_v41  ;;  %2150 = vst.msk [vmem:[#allocation10 + $0x30] sm:$0xff] %vm106_vm1, %v2149_v6 }
0x279d   :  { %v1949_v1 = vld [vmem:[#allocation10 + $0x38] sm:$0xff]  ;;  %v2535_v19 = vpop.permute.xlu0 %2534 }
0x279e   :  { %v1955_v40 = vadd.f32 %v5147_v15, %v1949_v1  ;;  %v2537_v57 = vadd.f32 %v2535_v19, %v2531_v27 }
0x27a0   :  { %1956 = vst.msk [vmem:[#allocation10 + $0x38] sm:$0xff] %vm106_vm1, %v1955_v40  ;;  %2538 = vst.msk [vmem:[#allocation10 + $0x20] sm:$0xff] %vm106_vm1, %v2537_v57 }
0x27a1   :  { %v2923_v5 = vpop.permute.xlu0 %2922 }
0x27a2   :  { %v2925_v59 = vadd.f32 %v2923_v5, %v2919_v25 }
0x27a4   :  { %2926 = vst.msk [vmem:[#allocation10 + $0x10] sm:$0xff] %vm106_vm1, %v2925_v59 }
0x27fd   :  { %v3311_v37 = vpop.permute.xlu0 %3310 }
0x27fe   :  { %v3313_v63 = vadd.f32 %v3311_v37, %v3307_v3 }
0x2800   :  { %3314 = vst.msk [vmem:[#allocation10] sm:$0xff] %vm106_vm1, %v3313_v63 }
0x2801   :  { %v3323_v0 = vpop.permute.xlu0 %3322 }
0x2802   :  { %4206 = shalt.err (!%p4203_p10)
}
0x2803   :  { %3338 = dma.vmem_to_hbm [thread:$0]  %s3333_s27, 1024, %s5227_s6, [#allocation4], %s4247_s29, %s4247_s29, %s4248_s30   ;;  %3326 = vst.msk [vmem:[#allocation11 + $0x8] sm:$0xff] %vm106_vm1, %v3323_v0 }
0x2804   :  { %s4215_s12 = scalar_lea.vmem %s3345_s8, 256  ;;  %p4220_p12 = scmp.lt.s32.totalorder %s3345_s8, %s3345_s8 }
0x2805   :  { %p4216_p11 = scmp.ne.s32.totalorder %s3345_s8, %s4215_s12  ;;  %p4221_p13 = scmp.lt.s32.totalorder %s4215_s12, %s4215_s12 }
0x2807   :  { %p4222_p0 = por %p4221_p13, %p4220_p12 }
0x2809   :  { %p4223_p1 = pnand %p4222_p0, %p4216_p11 }
0x280b   :  { %4226 = shalt.err (!%p4223_p1)
}
0x280c   :  { %3350 = dma.vmem_to_hbm [thread:$0]  %s3345_s8, 256, %s5228_s7, [#allocation12], %s4247_s29, %s4247_s29, %s4248_s30  }
0x280d   :  { %4241 = dma.done.wait [#allocation4], 1024  }
0x280e   :  { %4242 = vsyncadd [#allocation4], 4294966272 }
0x280f   :  { %4243 = dma.done.wait [#allocation12], 256  }
0x2810   :  { %4244 = vsyncadd [#allocation12], 4294967040 }
0x2811   :  { %3357 = vsyncpa [#allocation3], 1 }
0x2812   :  { %3358 = vsyncpa [#allocation6], 1 }
0x2813   :  { %3359 = vsyncpa [#allocation9], 1 }
0x2814   :  { %3360 = vsyncpa [#allocation4], 1 }
0x2815   :  { %3361 = vsyncpa [#allocation12], 1 }

</bundles_post_ra>
